<compile_context>
chip_gen: v7x
topology: tpu7x:2x2x1
jax: 0.10.0
libtpu: 0.0.40
codegen_flags: <defaults>
</compile_context>

<pallas_src>
import math

import jax
import jax.numpy as jnp
from jax import lax
from jax.experimental import pallas as pl
from jax.experimental.pallas import tpu as pltpu

# ----------------------------- configuration --------------------------------
HIDDEN = 128          # transformer hidden size
FFN = 256             # feed-forward inner size
PROJ = 128            # projection output dim (nn.Linear(hidden, 128))
NUM_CLASSES = 3
TEMPERATURE = 0.05
SEQ = 8               # sequence length (power of two -> shift-based seq ids)
SEQ_LOG2 = 3
VOCAB = 64            # synthetic vocab size
VOCAB_PAD = 128       # vocab zero-padded to a full lane width for the gather
NEG_K = 2             # negatives per anchor
LN_EPS = 1e-5
LOGITS_PAD = 128      # classifier output / packed epilogue padded to 128 lanes

_VMEM = pl.BlockSpec(memory_space=pltpu.MemorySpace.VMEM)

# rows of the packed `vecs` parameter (all HIDDEN-wide f32 vectors)
_BO, _LN1_G, _LN1_B, _B2, _LN2_G, _LN2_B, _BP2, _SPARE = range(8)


def _round8(n):
    return ((n + 7) // 8) * 8


def _layer_norm(x, g, b):
    mu = jnp.mean(x, axis=-1, keepdims=True)
    var = jnp.mean((x - mu) * (x - mu), axis=-1, keepdims=True)
    return (x - mu) * lax.rsqrt(var + LN_EPS) * g + b


# ------------------------------ kernel ---------------------------------------
def _make_fused_kernel(seg, negseg):
    """Build the fused kernel for static segment sizes (multiples of 8)."""
    bt = 2 * seg + negseg           # total sequences: anchor | positive | negs
    bs = bt * SEQ                   # total tokens

    def kernel(ids_ref, mask_ref, tok_emb_ref, pos_emb_ref,
               w_qkv_ref, b_qkv_ref, wo_ref, w1_ref, b1_ref, w2_ref,
               w_pc_ref, b_pc_ref, wp2_ref, vecs_ref,
               emb_ref, packed_ref):
        f32 = jnp.float32
        bf16 = jnp.bfloat16
        vecs = vecs_ref[...]                       # (8, H) f32
        row = lambda i: vecs[i:i + 1, :]           # (1, H) static sublane slice

        # ---- token + positional embeddings (transposed one-hot on the MXU) --
        ids = ids_ref[...]                                        # (1, bs) i32
        vocab_iota = lax.broadcasted_iota(jnp.int32, (VOCAB_PAD, bs), 0)
        onehot_t = (ids == vocab_iota).astype(bf16)               # (VOCAB_PAD,bs)
        x = lax.dot_general(onehot_t, tok_emb_ref[...],
                            (((0,), (0,)), ((), ())),
                            preferred_element_type=f32)           # (bs, H)
        pos = jnp.broadcast_to(pos_emb_ref[...][None],
                               (bt, SEQ, HIDDEN)).reshape(bs, HIDDEN)
        x = x + pos                                               # f32 residual

        # ---- single-head self-attention (block-diagonal over sequences) ----
        qkv = (jnp.dot(x.astype(bf16), w_qkv_ref[...],
                       preferred_element_type=f32) + b_qkv_ref[...])  # (bs,3H)
        q = qkv[:, :HIDDEN]
        k = qkv[:, HIDDEN:2 * HIDDEN]
        v = qkv[:, 2 * HIDDEN:]

        scale = f32(1.0 / (HIDDEN ** 0.5))
        scores = lax.dot_general(q.astype(bf16), k.astype(bf16),
                                 (((1,), (1,)), ((), ())),
                                 preferred_element_type=f32) * scale  # (bs,bs)

        # block-diagonal + key-padding mask built in-kernel (no (bs,bs) DMA)
        ri = lax.broadcasted_iota(jnp.int32, (bs, bs), 0)
        ci = lax.broadcasted_iota(jnp.int32, (bs, bs), 1)
        same_seq = (jnp.right_shift(ri, SEQ_LOG2)
                    == jnp.right_shift(ci, SEQ_LOG2))
        key_ok = mask_ref[...] > f32(0.5)                         # (1, bs)
        scores = jnp.where(jnp.logical_and(same_seq, key_ok),
                           scores, f32(-1e9))

        scores = scores - jnp.max(scores, axis=-1, keepdims=True)
        p = jnp.exp(scores)
        p = p * pl.reciprocal(jnp.sum(p, axis=-1, keepdims=True), approx=True)

        ctx = jnp.dot(p.astype(bf16), v.astype(bf16),
                      preferred_element_type=f32)                 # (bs, H)
        attn = (jnp.dot(ctx.astype(bf16), wo_ref[...],
                        preferred_element_type=f32) + row(_BO))
        h = _layer_norm(x + attn, row(_LN1_G), row(_LN1_B))

        # ---- feed-forward ----------------------------------------------------
        ff = jnp.maximum(
            jnp.dot(h.astype(bf16), w1_ref[...],
                    preferred_element_type=f32) + b1_ref[...], 0.0)
        ff = (jnp.dot(ff.astype(bf16), w2_ref[...],
                      preferred_element_type=f32) + row(_B2))
        enc = _layer_norm(h + ff, row(_LN2_G), row(_LN2_B))       # (bs, H) f32

        # ---- CLS pooling as a selection matmul -------------------------------
        # NOTE: padded query positions carry unmasked attention output, but only
        # the CLS token (position 0) is pooled, so they never escape.
        tok_iota = lax.broadcasted_iota(jnp.int32, (bt, bs), 1)
        cls_pos = lax.broadcasted_iota(jnp.int32, (bt, bs), 0) * SEQ
        sel = (tok_iota == cls_pos).astype(bf16)                  # (bt, bs)
        pooled = jnp.dot(sel, enc.astype(bf16),
                         preferred_element_type=f32)              # (bt, H)

        # ---- fused projection-head layer 1 + classifier (one N=256 matmul) --
        z = (jnp.dot(pooled.astype(bf16), w_pc_ref[...],
                     preferred_element_type=f32) + b_pc_ref[...])  # (bt, H+128)
        hp = jnp.maximum(z[:, :HIDDEN], 0.0)                       # proj hidden
        logits_all = z[:, HIDDEN:]         # (bt, 128); exactly 0 past NUM_CLASSES

        e = (jnp.dot(hp.astype(bf16), wp2_ref[...],
                     preferred_element_type=f32) + row(_BP2))     # (bt, PROJ)
        # F.normalize(p=2, dim=1): x / max(||x||, 1e-12)
        ssq = jnp.sum(e * e, axis=-1, keepdims=True)
        emb = e * lax.rsqrt(jnp.maximum(ssq, f32(1e-24)))

        # ---- outputs (all slices sublane-aligned: seg/negseg are x8) --------
        a = emb[:seg]                        # anchors
        pvec = emb[seg:2 * seg]              # positives
        n = emb[2 * seg:]                    # negatives (negseg, PROJ)
        emb_ref[...] = a

        inv_t = f32(1.0 / TEMPERATURE)
        pos_sim = jnp.sum(a * pvec, axis=-1, keepdims=True) * inv_t    # (seg,1)
        neg_sim = lax.dot_general(a, n, (((1,), (1,)), ((), ())),
                                  preferred_element_type=f32) * inv_t  # (seg,negseg)

        # lane-dense packed epilogue: [logits(0..C-1) | pos_sim(C) | neg_sim]
        lanes = lax.broadcasted_iota(jnp.int32, (seg, LOGITS_PAD), 1)
        packed = logits_all[:seg] + jnp.where(lanes == NUM_CLASSES,
                                              pos_sim, 0.0)
        pr = lax.broadcasted_iota(jnp.int32, (negseg, LOGITS_PAD), 0)
        pc = lax.broadcasted_iota(jnp.int32, (negseg, LOGITS_PAD), 1)
        place = (pc == pr + (NUM_CLASSES + 1)).astype(f32)        # (negseg,128)
        packed = packed + jnp.dot(neg_sim, place, preferred_element_type=f32)
        packed_ref[...] = packed

    return kernel, bt, bs


# ------------------------------ wrapper ---------------------------------------
def _pad_rows(x, target_rows, fill):
    pad = target_rows - x.shape[0]
    if pad == 0:
        return x
    return jnp.concatenate(
        [x, jnp.full((pad,) + x.shape[1:], fill, x.dtype)], axis=0)


def _fused_forward(params, ids_all, mask_all, seg, negseg):
    kernel, bt, bs = _make_fused_kernel(seg, negseg)

    ids_row = ids_all.reshape(1, bs).astype(jnp.int32)     # lane-major ids
    mask_row = mask_all.reshape(1, bs).astype(jnp.float32)  # lane-major key mask

    args = (ids_row, mask_row,
            params['tok_emb'], params['pos_emb'],
            params['w_qkv'], params['b_qkv'], params['wo'],
            params['w1'], params['b1'], params['w2'],
            params['w_pc'], params['b_pc'], params['wp2'], params['vecs'])

    out_shape = (
        jax.ShapeDtypeStruct((seg, PROJ), jnp.float32),        # anchor embeddings
        jax.ShapeDtypeStruct((seg, LOGITS_PAD), jnp.float32),  # packed epilogue
    )

    # advisory cost estimate so XLA can schedule around the custom call
    h, f, pdim, lp = HIDDEN, FFN, PROJ, LOGITS_PAD
    flops = 2 * (bs * VOCAB_PAD * h          # embedding gather
                 + bs * h * 3 * h            # qkv
                 + bs * bs * h               # scores
                 + bs * bs * h               # p @ v
                 + bs * h * h                # wo
                 + bs * h * f + bs * f * h   # ffn
                 + bt * bs * h               # cls pooling
                 + bt * h * (h + lp)         # proj1 + classifier (fused)
                 + bt * h * pdim             # proj2
                 + seg * pdim * negseg       # neg_sim
                 + seg * negseg * lp)        # neg_sim lane placement
    bytes_accessed = sum(int(a.size) * a.dtype.itemsize for a in args)
    bytes_accessed += sum(math.prod(s.shape) * jnp.dtype(s.dtype).itemsize
                          for s in out_shape)

    return pl.pallas_call(
        kernel,
        out_shape=out_shape,
        in_specs=[_VMEM] * len(args),
        out_specs=tuple([_VMEM] * len(out_shape)),
        cost_estimate=pl.CostEstimate(
            flops=int(flops),
            transcendentals=int(bs * bs),
            bytes_accessed=int(bytes_accessed)),
    )(*args)


@jax.jit
def simcse_forward(params, input_ids, attention_mask,
                   positive_ids, positive_mask,
                   negative_ids, negative_masks):
    """Supervised SimCSE forward pass (matches the PyTorch module)."""
    batch, num_neg, seq = negative_ids.shape
    assert seq == SEQ
    seg = _round8(batch)                    # anchor / positive segment rows
    negseg = _round8(batch * num_neg)       # negatives segment rows
    assert NUM_CLASSES + 1 + negseg <= LOGITS_PAD, "packed epilogue overflow"

    # One concatenated batch [anchor | positive | negatives], each segment
    # padded to a multiple of 8 sequences (padded sequences use id 0 / mask 1;
    # their results are discarded by the wrapper-side slices below).
    ids_all = jnp.concatenate([
        _pad_rows(input_ids.astype(jnp.int32), seg, 0),
        _pad_rows(positive_ids.astype(jnp.int32), seg, 0),
        _pad_rows(negative_ids.reshape(-1, seq).astype(jnp.int32), negseg, 0),
    ], axis=0)
    mask_all = jnp.concatenate([
        _pad_rows(attention_mask.astype(jnp.float32), seg, 1.0),
        _pad_rows(positive_mask.astype(jnp.float32), seg, 1.0),
        _pad_rows(negative_masks.reshape(-1, seq).astype(jnp.float32),
                  negseg, 1.0),
    ], axis=0)

    emb_a, packed = _fused_forward(params, ids_all, mask_all, seg, negseg)

    logits = packed[:batch, :NUM_CLASSES]
    pos_sim = packed[:batch, NUM_CLASSES:NUM_CLASSES + 1]
    neg_flat = packed[:batch,
                      NUM_CLASSES + 1:NUM_CLASSES + 1 + batch * num_neg]

    # PyTorch broadcasting (B,1,1,P)*(B,N,P) -> (B,B,N,P) -> sum(-1) -> (B,B,N)
    return {
        'embeddings': emb_a[:batch],
        'logits': logits,
        'positive_sim': pos_sim,
        'negative_sim': neg_flat.reshape(batch, batch, num_neg),
    }


# ---------------------------- parameter init ---------------------------------
def init_params(key):
    ks = jax.random.split(key, 10)
    s = 0.02
    f32 = jnp.float32
    bf16 = jnp.bfloat16

    # packed HIDDEN-wide f32 vectors: bo, ln1_g, ln1_b, b2, ln2_g, ln2_b, bp2
    vecs = jnp.zeros((8, HIDDEN), f32)
    vecs = vecs.at[_LN1_G].set(1.0).at[_LN2_G].set(1.0)

    # token embedding zero-padded to 128 vocab rows (lane-dense gather K dim)
    tok_emb = jnp.zeros((VOCAB_PAD, HIDDEN), f32)
    tok_emb = tok_emb.at[:VOCAB].set(
        jax.random.normal(ks[0], (VOCAB, HIDDEN), f32) * s)

    # projection layer-1 and classifier (zero-padded to 128 out lanes), fused
    wp1 = jax.random.normal(ks[6], (HIDDEN, HIDDEN), f32) * s
    wc_pad = jnp.zeros((HIDDEN, LOGITS_PAD), f32)
    wc_pad = wc_pad.at[:, :NUM_CLASSES].set(
        jax.random.normal(ks[8], (HIDDEN, NUM_CLASSES), f32) * s)
    w_pc = jnp.concatenate([wp1, wc_pad], axis=1)            # (H, H+128)
    b_pc = jnp.zeros((1, HIDDEN + LOGITS_PAD), f32)          # bp1 | bc (padded)

    return {
        'tok_emb': tok_emb.astype(bf16),
        'pos_emb': jax.random.normal(ks[1], (SEQ, HIDDEN), f32) * s,
        # fused Wq|Wk|Wv and its bias
        'w_qkv': (jax.random.normal(ks[2], (HIDDEN, 3 * HIDDEN), f32)
                  * s).astype(bf16),
        'b_qkv': jnp.zeros((1, 3 * HIDDEN), f32),
        'wo': (jax.random.normal(ks[3], (HIDDEN, HIDDEN), f32) * s).astype(bf16),
        'w1': (jax.random.normal(ks[4], (HIDDEN, FFN), f32) * s).astype(bf16),
        'b1': jnp.zeros((1, FFN), f32),
        'w2': (jax.random.normal(ks[5], (FFN, HIDDEN), f32) * s).astype(bf16),
        'w_pc': w_pc.astype(bf16),
        'b_pc': b_pc,
        'wp2': (jax.random.normal(ks[7], (HIDDEN, PROJ), f32) * s).astype(bf16),
        'vecs': vecs,
    }


# --------------------------------- main ---------------------------------------
if __name__ == "__main__":
    key = jax.random.PRNGKey(0)
    kp, k1, k2, k3 = jax.random.split(key, 4)
    params = init_params(kp)

    B = 2
    input_ids = jax.random.randint(k1, (B, SEQ), 0, VOCAB, dtype=jnp.int32)
    positive_ids = jax.random.randint(k2, (B, SEQ), 0, VOCAB, dtype=jnp.int32)
    negative_ids = jax.random.randint(k3, (B, NEG_K, SEQ), 0, VOCAB,
                                      dtype=jnp.int32)

    attention_mask = jnp.ones((B, SEQ), jnp.int32).at[:, -1].set(0)
    positive_mask = jnp.ones((B, SEQ), jnp.int32)
    negative_masks = jnp.ones((B, NEG_K, SEQ), jnp.int32).at[:, :, -2:].set(0)

    out = simcse_forward(params, input_ids, attention_mask,
                         positive_ids, positive_mask,
                         negative_ids, negative_masks)
    out = jax.block_until_ready(out)

    assert out['embeddings'].shape == (B, PROJ)
    assert out['logits'].shape == (B, NUM_CLASSES)
    assert out['positive_sim'].shape == (B, 1)
    assert out['negative_sim'].shape == (B, B, NEG_K)
    assert bool(jnp.all(jnp.isfinite(out['embeddings'])))
    assert bool(jnp.all(jnp.isfinite(out['logits'])))
    assert bool(jnp.all(jnp.isfinite(out['negative_sim'])))
    # embeddings must be L2-normalized
    norms = jnp.linalg.norm(out['embeddings'], axis=-1)
    assert bool(jnp.all(jnp.abs(norms - 1.0) < 1e-2))

    print("KERNEL_OK")
</pallas_src>

<mosaic_0001>
module attributes {stable_mosaic.version = 11 : i64} {
  func.func @kernel(%arg0: memref<1x192xi32, #tpu.memory_space<vmem>>, %arg1: memref<1x192xf32, #tpu.memory_space<vmem>>, %arg2: memref<128x128xbf16, #tpu.memory_space<vmem>>, %arg3: memref<8x128xf32, #tpu.memory_space<vmem>>, %arg4: memref<128x384xbf16, #tpu.memory_space<vmem>>, %arg5: memref<1x384xf32, #tpu.memory_space<vmem>>, %arg6: memref<128x128xbf16, #tpu.memory_space<vmem>>, %arg7: memref<128x256xbf16, #tpu.memory_space<vmem>>, %arg8: memref<1x256xf32, #tpu.memory_space<vmem>>, %arg9: memref<256x128xbf16, #tpu.memory_space<vmem>>, %arg10: memref<128x256xbf16, #tpu.memory_space<vmem>>, %arg11: memref<1x256xf32, #tpu.memory_space<vmem>>, %arg12: memref<128x128xbf16, #tpu.memory_space<vmem>>, %arg13: memref<8x128xf32, #tpu.memory_space<vmem>>, %arg14: memref<8x128xf32, #tpu.memory_space<vmem>>, %arg15: memref<8x128xf32, #tpu.memory_space<vmem>>) attributes {dimension_semantics = [], scalar_prefetch = 0 : i64, scratch_operands = 0 : i64, tpu.core_type = #tpu.core_type<tc>} {
    %c0 = arith.constant 0 : index
    %c0_0 = arith.constant 0 : index
    %0 = vector.load %arg13[%c0, %c0_0] : memref<8x128xf32, #tpu.memory_space<vmem>>, vector<8x128xf32>
    %c0_1 = arith.constant 0 : index
    %c0_2 = arith.constant 0 : index
    %1 = vector.load %arg0[%c0_1, %c0_2] : memref<1x192xi32, #tpu.memory_space<vmem>>, vector<1x192xi32>
    %2 = tpu.iota {dimensions = array<i32: 0>} : vector<128x192xi32>
    %3 = vector.broadcast %1 : vector<1x192xi32> to vector<128x192xi32>
    %4 = arith.cmpi eq, %3, %2 : vector<128x192xi32>
    %5 = arith.extui %4 : vector<128x192xi1> to vector<128x192xi32>
    %6 = arith.sitofp %5 : vector<128x192xi32> to vector<128x192xf32>
    %7 = arith.truncf %6 : vector<128x192xf32> to vector<128x192xbf16>
    %c0_3 = arith.constant 0 : index
    %c0_4 = arith.constant 0 : index
    %8 = vector.load %arg2[%c0_3, %c0_4] : memref<128x128xbf16, #tpu.memory_space<vmem>>, vector<128x128xbf16>
    %cst = arith.constant dense<0.000000e+00> : vector<192x128xf32>
    %9 = tpu.matmul %7, %8, %cst {dimension_numbers = #tpu.dot_dimension_numbers<[0], [0], [1], [1], [0, 1, 1, 1], [], []>} : vector<128x192xbf16>, vector<128x128xbf16>, vector<192x128xf32> -> vector<192x128xf32>
    %c0_5 = arith.constant 0 : index
    %c0_6 = arith.constant 0 : index
    %10 = vector.load %arg3[%c0_5, %c0_6] : memref<8x128xf32, #tpu.memory_space<vmem>>, vector<8x128xf32>
    %11 = vector.shape_cast %10 : vector<8x128xf32> to vector<1x8x128xf32>
    %12 = vector.shape_cast %11 : vector<1x8x128xf32> to vector<1x8x128xf32>
    %13 = vector.broadcast %12 : vector<1x8x128xf32> to vector<24x8x128xf32>
    %14 = vector.shape_cast %13 : vector<24x8x128xf32> to vector<192x128xf32>
    %15 = arith.addf %9, %14 : vector<192x128xf32>
    %16 = arith.truncf %15 : vector<192x128xf32> to vector<192x128xbf16>
    %c0_7 = arith.constant 0 : index
    %c0_8 = arith.constant 0 : index
    %17 = vector.load %arg4[%c0_7, %c0_8] : memref<128x384xbf16, #tpu.memory_space<vmem>>, vector<128x384xbf16>
    %cst_9 = arith.constant dense<0.000000e+00> : vector<192x384xf32>
    %18 = tpu.matmul %16, %17, %cst_9 {dimension_numbers = #tpu.dot_dimension_numbers<[1], [0], [0], [1], [0, 0, 1, 1], [], []>} : vector<192x128xbf16>, vector<128x384xbf16>, vector<192x384xf32> -> vector<192x384xf32>
    %c0_10 = arith.constant 0 : index
    %c0_11 = arith.constant 0 : index
    %19 = vector.load %arg5[%c0_10, %c0_11] : memref<1x384xf32, #tpu.memory_space<vmem>>, vector<1x384xf32>
    %20 = vector.broadcast %19 : vector<1x384xf32> to vector<192x384xf32>
    %21 = arith.addf %18, %20 : vector<192x384xf32>
    %22 = vector.extract_strided_slice %21 {offsets = [0, 0], sizes = [192, 128], strides = [1, 1]} : vector<192x384xf32> to vector<192x128xf32>
    %23 = vector.extract_strided_slice %21 {offsets = [0, 128], sizes = [192, 128], strides = [1, 1]} : vector<192x384xf32> to vector<192x128xf32>
    %24 = vector.extract_strided_slice %21 {offsets = [0, 256], sizes = [192, 128], strides = [1, 1]} : vector<192x384xf32> to vector<192x128xf32>
    %25 = arith.truncf %22 : vector<192x128xf32> to vector<192x128xbf16>
    %26 = arith.truncf %23 : vector<192x128xf32> to vector<192x128xbf16>
    %cst_12 = arith.constant dense<0.000000e+00> : vector<192x192xf32>
    %27 = tpu.matmul %25, %26, %cst_12 {dimension_numbers = #tpu.dot_dimension_numbers<[1], [1], [0], [0], [0, 0, 1, 0], [], []>} : vector<192x128xbf16>, vector<192x128xbf16>, vector<192x192xf32> -> vector<192x192xf32>
    %cst_13 = arith.constant 0.0883883461 : f32
    %28 = vector.broadcast %cst_13 : f32 to vector<192x192xf32>
    %29 = arith.mulf %27, %28 : vector<192x192xf32>
    %30 = tpu.iota {dimensions = array<i32: 0>} : vector<192x192xi32>
    %31 = tpu.iota {dimensions = array<i32: 1>} : vector<192x192xi32>
    %c3_i32 = arith.constant 3 : i32
    %32 = vector.broadcast %c3_i32 : i32 to vector<192x192xi32>
    %33 = arith.shrsi %30, %32 : vector<192x192xi32>
    %c3_i32_14 = arith.constant 3 : i32
    %34 = vector.broadcast %c3_i32_14 : i32 to vector<192x192xi32>
    %35 = arith.shrsi %31, %34 : vector<192x192xi32>
    %36 = arith.cmpi eq, %33, %35 : vector<192x192xi32>
    %c0_15 = arith.constant 0 : index
    %c0_16 = arith.constant 0 : index
    %37 = vector.load %arg1[%c0_15, %c0_16] : memref<1x192xf32, #tpu.memory_space<vmem>>, vector<1x192xf32>
    %cst_17 = arith.constant 5.000000e-01 : f32
    %38 = vector.broadcast %cst_17 : f32 to vector<1x192xf32>
    %39 = arith.cmpf ogt, %37, %38 : vector<1x192xf32>
    %40 = vector.broadcast %39 : vector<1x192xi1> to vector<192x192xi1>
    %41 = arith.andi %36, %40 : vector<192x192xi1>
    %cst_18 = arith.constant -1.000000e+09 : f32
    %42 = vector.broadcast %cst_18 : f32 to vector<192x192xf32>
    %43 = arith.select %41, %29, %42 : vector<192x192xi1>, vector<192x192xf32>
    %cst_19 = arith.constant dense<0xFF800000> : vector<192xf32>
    %44 = vector.multi_reduction <maximumf>, %43, %cst_19 [1] : vector<192x192xf32> to vector<192xf32>
    %45 = vector.shape_cast %44 : vector<192xf32> to vector<192x1xf32>
    %46 = vector.broadcast %45 : vector<192x1xf32> to vector<192x192xf32>
    %47 = arith.subf %43, %46 : vector<192x192xf32>
    %48 = math.exp %47 : vector<192x192xf32>
    %cst_20 = arith.constant dense<0.000000e+00> : vector<192xf32>
    %49 = vector.multi_reduction <add>, %48, %cst_20 [1] : vector<192x192xf32> to vector<192xf32>
    %50 = vector.shape_cast %49 : vector<192xf32> to vector<192x1xf32>
    %51 = tpu.reciprocal %50 {approx = true} : vector<192x1xf32> -> vector<192x1xf32>
    %52 = vector.broadcast %51 : vector<192x1xf32> to vector<192x192xf32>
    %53 = arith.mulf %48, %52 : vector<192x192xf32>
    %54 = arith.truncf %53 : vector<192x192xf32> to vector<192x192xbf16>
    %55 = arith.truncf %24 : vector<192x128xf32> to vector<192x128xbf16>
    %cst_21 = arith.constant dense<0.000000e+00> : vector<192x128xf32>
    %56 = tpu.matmul %54, %55, %cst_21 {dimension_numbers = #tpu.dot_dimension_numbers<[1], [0], [0], [1], [0, 0, 1, 1], [], []>} : vector<192x192xbf16>, vector<192x128xbf16>, vector<192x128xf32> -> vector<192x128xf32>
    %57 = arith.truncf %56 : vector<192x128xf32> to vector<192x128xbf16>
    %c0_22 = arith.constant 0 : index
    %c0_23 = arith.constant 0 : index
    %58 = vector.load %arg6[%c0_22, %c0_23] : memref<128x128xbf16, #tpu.memory_space<vmem>>, vector<128x128xbf16>
    %cst_24 = arith.constant dense<0.000000e+00> : vector<192x128xf32>
    %59 = tpu.matmul %57, %58, %cst_24 {dimension_numbers = #tpu.dot_dimension_numbers<[1], [0], [0], [1], [0, 0, 1, 1], [], []>} : vector<192x128xbf16>, vector<128x128xbf16>, vector<192x128xf32> -> vector<192x128xf32>
    %60 = vector.extract_strided_slice %0 {offsets = [0, 0], sizes = [1, 128], strides = [1, 1]} : vector<8x128xf32> to vector<1x128xf32>
    %61 = vector.broadcast %60 : vector<1x128xf32> to vector<192x128xf32>
    %62 = arith.addf %59, %61 : vector<192x128xf32>
    %63 = arith.addf %15, %62 : vector<192x128xf32>
    %64 = vector.extract_strided_slice %0 {offsets = [1, 0], sizes = [1, 128], strides = [1, 1]} : vector<8x128xf32> to vector<1x128xf32>
    %65 = vector.extract_strided_slice %0 {offsets = [2, 0], sizes = [1, 128], strides = [1, 1]} : vector<8x128xf32> to vector<1x128xf32>
    %cst_25 = arith.constant dense<0.000000e+00> : vector<192xf32>
    %66 = vector.multi_reduction <add>, %63, %cst_25 [1] : vector<192x128xf32> to vector<192xf32>
    %67 = vector.shape_cast %66 : vector<192xf32> to vector<192x1xf32>
    %cst_26 = arith.constant 1.280000e+02 : f32
    %68 = vector.broadcast %cst_26 : f32 to vector<192x1xf32>
    %69 = arith.divf %67, %68 : vector<192x1xf32>
    %70 = vector.broadcast %69 : vector<192x1xf32> to vector<192x128xf32>
    %71 = arith.subf %63, %70 : vector<192x128xf32>
    %72 = vector.broadcast %69 : vector<192x1xf32> to vector<192x128xf32>
    %73 = arith.subf %63, %72 : vector<192x128xf32>
    %74 = arith.mulf %71, %73 : vector<192x128xf32>
    %cst_27 = arith.constant dense<0.000000e+00> : vector<192xf32>
    %75 = vector.multi_reduction <add>, %74, %cst_27 [1] : vector<192x128xf32> to vector<192xf32>
    %76 = vector.shape_cast %75 : vector<192xf32> to vector<192x1xf32>
    %cst_28 = arith.constant 1.280000e+02 : f32
    %77 = vector.broadcast %cst_28 : f32 to vector<192x1xf32>
    %78 = arith.divf %76, %77 : vector<192x1xf32>
    %79 = vector.broadcast %69 : vector<192x1xf32> to vector<192x128xf32>
    %80 = arith.subf %63, %79 : vector<192x128xf32>
    %cst_29 = arith.constant 9.99999974E-6 : f32
    %81 = vector.broadcast %cst_29 : f32 to vector<192x1xf32>
    %82 = arith.addf %78, %81 : vector<192x1xf32>
    %83 = math.rsqrt %82 : vector<192x1xf32>
    %84 = vector.broadcast %83 : vector<192x1xf32> to vector<192x128xf32>
    %85 = arith.mulf %80, %84 : vector<192x128xf32>
    %86 = vector.broadcast %64 : vector<1x128xf32> to vector<192x128xf32>
    %87 = arith.mulf %85, %86 : vector<192x128xf32>
    %88 = vector.broadcast %65 : vector<1x128xf32> to vector<192x128xf32>
    %89 = arith.addf %87, %88 : vector<192x128xf32>
    %90 = arith.truncf %89 : vector<192x128xf32> to vector<192x128xbf16>
    %c0_30 = arith.constant 0 : index
    %c0_31 = arith.constant 0 : index
    %91 = vector.load %arg7[%c0_30, %c0_31] : memref<128x256xbf16, #tpu.memory_space<vmem>>, vector<128x256xbf16>
    %cst_32 = arith.constant dense<0.000000e+00> : vector<192x256xf32>
    %92 = tpu.matmul %90, %91, %cst_32 {dimension_numbers = #tpu.dot_dimension_numbers<[1], [0], [0], [1], [0, 0, 1, 1], [], []>} : vector<192x128xbf16>, vector<128x256xbf16>, vector<192x256xf32> -> vector<192x256xf32>
    %c0_33 = arith.constant 0 : index
    %c0_34 = arith.constant 0 : index
    %93 = vector.load %arg8[%c0_33, %c0_34] : memref<1x256xf32, #tpu.memory_space<vmem>>, vector<1x256xf32>
    %94 = vector.broadcast %93 : vector<1x256xf32> to vector<192x256xf32>
    %95 = arith.addf %92, %94 : vector<192x256xf32>
    %cst_35 = arith.constant 0.000000e+00 : f32
    %96 = vector.broadcast %cst_35 : f32 to vector<192x256xf32>
    %97 = arith.maximumf %95, %96 : vector<192x256xf32>
    %98 = arith.truncf %97 : vector<192x256xf32> to vector<192x256xbf16>
    %c0_36 = arith.constant 0 : index
    %c0_37 = arith.constant 0 : index
    %99 = vector.load %arg9[%c0_36, %c0_37] : memref<256x128xbf16, #tpu.memory_space<vmem>>, vector<256x128xbf16>
    %cst_38 = arith.constant dense<0.000000e+00> : vector<192x128xf32>
    %100 = tpu.matmul %98, %99, %cst_38 {dimension_numbers = #tpu.dot_dimension_numbers<[1], [0], [0], [1], [0, 0, 1, 1], [], []>} : vector<192x256xbf16>, vector<256x128xbf16>, vector<192x128xf32> -> vector<192x128xf32>
    %101 = vector.extract_strided_slice %0 {offsets = [3, 0], sizes = [1, 128], strides = [1, 1]} : vector<8x128xf32> to vector<1x128xf32>
    %102 = vector.broadcast %101 : vector<1x128xf32> to vector<192x128xf32>
    %103 = arith.addf %100, %102 : vector<192x128xf32>
    %104 = arith.addf %89, %103 : vector<192x128xf32>
    %105 = vector.extract_strided_slice %0 {offsets = [4, 0], sizes = [1, 128], strides = [1, 1]} : vector<8x128xf32> to vector<1x128xf32>
    %106 = vector.extract_strided_slice %0 {offsets = [5, 0], sizes = [1, 128], strides = [1, 1]} : vector<8x128xf32> to vector<1x128xf32>
    %cst_39 = arith.constant dense<0.000000e+00> : vector<192xf32>
    %107 = vector.multi_reduction <add>, %104, %cst_39 [1] : vector<192x128xf32> to vector<192xf32>
    %108 = vector.shape_cast %107 : vector<192xf32> to vector<192x1xf32>
    %cst_40 = arith.constant 1.280000e+02 : f32
    %109 = vector.broadcast %cst_40 : f32 to vector<192x1xf32>
    %110 = arith.divf %108, %109 : vector<192x1xf32>
    %111 = vector.broadcast %110 : vector<192x1xf32> to vector<192x128xf32>
    %112 = arith.subf %104, %111 : vector<192x128xf32>
    %113 = vector.broadcast %110 : vector<192x1xf32> to vector<192x128xf32>
    %114 = arith.subf %104, %113 : vector<192x128xf32>
    %115 = arith.mulf %112, %114 : vector<192x128xf32>
    %cst_41 = arith.constant dense<0.000000e+00> : vector<192xf32>
    %116 = vector.multi_reduction <add>, %115, %cst_41 [1] : vector<192x128xf32> to vector<192xf32>
    %117 = vector.shape_cast %116 : vector<192xf32> to vector<192x1xf32>
    %cst_42 = arith.constant 1.280000e+02 : f32
    %118 = vector.broadcast %cst_42 : f32 to vector<192x1xf32>
    %119 = arith.divf %117, %118 : vector<192x1xf32>
    %120 = vector.broadcast %110 : vector<192x1xf32> to vector<192x128xf32>
    %121 = arith.subf %104, %120 : vector<192x128xf32>
    %cst_43 = arith.constant 9.99999974E-6 : f32
    %122 = vector.broadcast %cst_43 : f32 to vector<192x1xf32>
    %123 = arith.addf %119, %122 : vector<192x1xf32>
    %124 = math.rsqrt %123 : vector<192x1xf32>
    %125 = vector.broadcast %124 : vector<192x1xf32> to vector<192x128xf32>
    %126 = arith.mulf %121, %125 : vector<192x128xf32>
    %127 = vector.broadcast %105 : vector<1x128xf32> to vector<192x128xf32>
    %128 = arith.mulf %126, %127 : vector<192x128xf32>
    %129 = vector.broadcast %106 : vector<1x128xf32> to vector<192x128xf32>
    %130 = arith.addf %128, %129 : vector<192x128xf32>
    %131 = tpu.iota {dimensions = array<i32: 1>} : vector<24x192xi32>
    %132 = tpu.iota {dimensions = array<i32: 0>} : vector<24x192xi32>
    %c8_i32 = arith.constant 8 : i32
    %133 = vector.broadcast %c8_i32 : i32 to vector<24x192xi32>
    %134 = arith.muli %132, %133 : vector<24x192xi32>
    %135 = arith.cmpi eq, %131, %134 : vector<24x192xi32>
    %136 = arith.extui %135 : vector<24x192xi1> to vector<24x192xi32>
    %137 = arith.sitofp %136 : vector<24x192xi32> to vector<24x192xf32>
    %138 = arith.truncf %137 : vector<24x192xf32> to vector<24x192xbf16>
    %139 = arith.truncf %130 : vector<192x128xf32> to vector<192x128xbf16>
    %cst_44 = arith.constant dense<0.000000e+00> : vector<24x128xf32>
    %140 = tpu.matmul %138, %139, %cst_44 {dimension_numbers = #tpu.dot_dimension_numbers<[1], [0], [0], [1], [0, 0, 1, 1], [], []>} : vector<24x192xbf16>, vector<192x128xbf16>, vector<24x128xf32> -> vector<24x128xf32>
    %141 = arith.truncf %140 : vector<24x128xf32> to vector<24x128xbf16>
    %c0_45 = arith.constant 0 : index
    %c0_46 = arith.constant 0 : index
    %142 = vector.load %arg10[%c0_45, %c0_46] : memref<128x256xbf16, #tpu.memory_space<vmem>>, vector<128x256xbf16>
    %cst_47 = arith.constant dense<0.000000e+00> : vector<24x256xf32>
    %143 = tpu.matmul %141, %142, %cst_47 {dimension_numbers = #tpu.dot_dimension_numbers<[1], [0], [0], [1], [0, 0, 1, 1], [], []>} : vector<24x128xbf16>, vector<128x256xbf16>, vector<24x256xf32> -> vector<24x256xf32>
    %c0_48 = arith.constant 0 : index
    %c0_49 = arith.constant 0 : index
    %144 = vector.load %arg11[%c0_48, %c0_49] : memref<1x256xf32, #tpu.memory_space<vmem>>, vector<1x256xf32>
    %145 = vector.broadcast %144 : vector<1x256xf32> to vector<24x256xf32>
    %146 = arith.addf %143, %145 : vector<24x256xf32>
    %147 = vector.extract_strided_slice %146 {offsets = [0, 0], sizes = [24, 128], strides = [1, 1]} : vector<24x256xf32> to vector<24x128xf32>
    %cst_50 = arith.constant 0.000000e+00 : f32
    %148 = vector.broadcast %cst_50 : f32 to vector<24x128xf32>
    %149 = arith.maximumf %147, %148 : vector<24x128xf32>
    %150 = vector.extract_strided_slice %146 {offsets = [0, 128], sizes = [24, 128], strides = [1, 1]} : vector<24x256xf32> to vector<24x128xf32>
    %151 = arith.truncf %149 : vector<24x128xf32> to vector<24x128xbf16>
    %c0_51 = arith.constant 0 : index
    %c0_52 = arith.constant 0 : index
    %152 = vector.load %arg12[%c0_51, %c0_52] : memref<128x128xbf16, #tpu.memory_space<vmem>>, vector<128x128xbf16>
    %cst_53 = arith.constant dense<0.000000e+00> : vector<24x128xf32>
    %153 = tpu.matmul %151, %152, %cst_53 {dimension_numbers = #tpu.dot_dimension_numbers<[1], [0], [0], [1], [0, 0, 1, 1], [], []>} : vector<24x128xbf16>, vector<128x128xbf16>, vector<24x128xf32> -> vector<24x128xf32>
    %154 = vector.extract_strided_slice %0 {offsets = [6, 0], sizes = [1, 128], strides = [1, 1]} : vector<8x128xf32> to vector<1x128xf32>
    %155 = vector.broadcast %154 : vector<1x128xf32> to vector<24x128xf32>
    %156 = arith.addf %153, %155 : vector<24x128xf32>
    %157 = arith.mulf %156, %156 : vector<24x128xf32>
    %cst_54 = arith.constant dense<0.000000e+00> : vector<24xf32>
    %158 = vector.multi_reduction <add>, %157, %cst_54 [1] : vector<24x128xf32> to vector<24xf32>
    %159 = vector.shape_cast %158 : vector<24xf32> to vector<24x1xf32>
    %cst_55 = arith.constant 1.000000e-24 : f32
    %160 = vector.broadcast %cst_55 : f32 to vector<24x1xf32>
    %161 = arith.maximumf %159, %160 : vector<24x1xf32>
    %162 = math.rsqrt %161 : vector<24x1xf32>
    %163 = vector.broadcast %162 : vector<24x1xf32> to vector<24x128xf32>
    %164 = arith.mulf %156, %163 : vector<24x128xf32>
    %165 = vector.extract_strided_slice %164 {offsets = [0, 0], sizes = [8, 128], strides = [1, 1]} : vector<24x128xf32> to vector<8x128xf32>
    %166 = vector.extract_strided_slice %164 {offsets = [8, 0], sizes = [8, 128], strides = [1, 1]} : vector<24x128xf32> to vector<8x128xf32>
    %167 = vector.extract_strided_slice %164 {offsets = [16, 0], sizes = [8, 128], strides = [1, 1]} : vector<24x128xf32> to vector<8x128xf32>
    %c0_56 = arith.constant 0 : index
    %c0_57 = arith.constant 0 : index
    %168 = vector.load %arg14[%c0_56, %c0_57] : memref<8x128xf32, #tpu.memory_space<vmem>>, vector<8x128xf32>
    tpu.vector_store %arg14[%c0_56, %c0_57], %165 {strides = array<i32>} : memref<8x128xf32, #tpu.memory_space<vmem>>, vector<8x128xf32>,
    %169 = arith.mulf %165, %166 : vector<8x128xf32>
    %cst_58 = arith.constant dense<0.000000e+00> : vector<8xf32>
    %170 = vector.multi_reduction <add>, %169, %cst_58 [1] : vector<8x128xf32> to vector<8xf32>
    %171 = vector.shape_cast %170 : vector<8xf32> to vector<8x1xf32>
    %cst_59 = arith.constant 2.000000e+01 : f32
    %172 = vector.broadcast %cst_59 : f32 to vector<8x1xf32>
    %173 = arith.mulf %171, %172 : vector<8x1xf32>
    %cst_60 = arith.constant dense<0.000000e+00> : vector<8x8xf32>
    %174 = tpu.matmul %165, %167, %cst_60 {dimension_numbers = #tpu.dot_dimension_numbers<[1], [1], [0], [0], [0, 0, 1, 0], [], []>} : vector<8x128xf32>, vector<8x128xf32>, vector<8x8xf32> -> vector<8x8xf32>
    %cst_61 = arith.constant 2.000000e+01 : f32
    %175 = vector.broadcast %cst_61 : f32 to vector<8x8xf32>
    %176 = arith.mulf %174, %175 : vector<8x8xf32>
    %177 = tpu.iota {dimensions = array<i32: 1>} : vector<8x128xi32>
    %178 = vector.extract_strided_slice %150 {offsets = [0, 0], sizes = [8, 128], strides = [1, 1]} : vector<24x128xf32> to vector<8x128xf32>
    %c3_i32_62 = arith.constant 3 : i32
    %179 = vector.broadcast %c3_i32_62 : i32 to vector<8x128xi32>
    %180 = arith.cmpi eq, %177, %179 : vector<8x128xi32>
    %cst_63 = arith.constant 0.000000e+00 : f32
    %181 = vector.shape_cast %173 : vector<8x1xf32> to vector<8x1xf32>
    %182 = vector.broadcast %181 : vector<8x1xf32> to vector<8x128xf32>
    %183 = vector.broadcast %cst_63 : f32 to vector<8x128xf32>
    %184 = arith.select %180, %182, %183 : vector<8x128xi1>, vector<8x128xf32>
    %185 = arith.addf %178, %184 : vector<8x128xf32>
    %186 = tpu.iota {dimensions = array<i32: 0>} : vector<8x128xi32>
    %187 = tpu.iota {dimensions = array<i32: 1>} : vector<8x128xi32>
    %c4_i32 = arith.constant 4 : i32
    %188 = vector.broadcast %c4_i32 : i32 to vector<8x128xi32>
    %189 = arith.addi %186, %188 : vector<8x128xi32>
    %190 = arith.cmpi eq, %187, %189 : vector<8x128xi32>
    %191 = arith.extui %190 : vector<8x128xi1> to vector<8x128xi32>
    %192 = arith.sitofp %191 : vector<8x128xi32> to vector<8x128xf32>
    %cst_64 = arith.constant dense<0.000000e+00> : vector<8x128xf32>
    %193 = tpu.matmul %176, %192, %cst_64 {dimension_numbers = #tpu.dot_dimension_numbers<[1], [0], [0], [1], [0, 0, 1, 1], [], []>} : vector<8x8xf32>, vector<8x128xf32>, vector<8x128xf32> -> vector<8x128xf32>
    %194 = arith.addf %185, %193 : vector<8x128xf32>
    %c0_65 = arith.constant 0 : index
    %c0_66 = arith.constant 0 : index
    %195 = vector.load %arg15[%c0_65, %c0_66] : memref<8x128xf32, #tpu.memory_space<vmem>>, vector<8x128xf32>
    tpu.vector_store %arg15[%c0_65, %c0_66], %194 {strides = array<i32>} : memref<8x128xf32, #tpu.memory_space<vmem>>, vector<8x128xf32>,
    return
  }
}

</mosaic_0001>

<bundles_post_ra>
// kernel: simcse_forward.1
= control target key start
LH: loop header
LB: loop body
LE: loop exit
PB: predicated region body
PF: predicated region fallthrough
CT: control target
= control target key end

     0   :  { %21 = vsyncpa [#allocation3], 0  ;;  %s7597_s0 = inlined_call_operand.vmem [shape: s32[1,192], index: 0, kind: input, shape index: {}]   ;;  %s7598_s1 = inlined_call_operand.vmem [shape: f32[1,192], index: 1, kind: input, shape index: {}]   ;;  %s7599_s2 = inlined_call_operand.hbm [shape: bf16[128,128], index: 2, kind: input, shape index: {}]   ;;  %s7600_s3 = inlined_call_operand.vmem [shape: f32[8,128], index: 3, kind: input, shape index: {}]   ;;  %s7601_s4 = inlined_call_operand.vmem [shape: bf16[128,384], index: 4, kind: input, shape index: {}]   ;;  %s7602_s5 = inlined_call_operand.vmem [shape: f32[1,384], index: 5, kind: input, shape index: {}]   ;;  %s7603_s6 = inlined_call_operand.hbm [shape: bf16[128,128], index: 6, kind: input, shape index: {}]   ;;  %s7604_s7 = inlined_call_operand.hbm [shape: bf16[128,256], index: 7, kind: input, shape index: {}]   ;;  %s7605_s8 = inlined_call_operand.vmem [shape: f32[1,256], index: 8, kind: input, shape index: {}]   ;;  %s7606_s9 = inlined_call_operand.hbm [shape: bf16[256,128], index: 9, kind: input, shape index: {}]   ;;  %s7607_s10 = inlined_call_operand.hbm [shape: bf16[128,256], index: 10, kind: input, shape index: {}]   ;;  %s7608_s11 = inlined_call_operand.vmem [shape: f32[1,256], index: 11, kind: input, shape index: {}]   ;;  %s7609_s12 = inlined_call_operand.hbm [shape: bf16[128,128], index: 12, kind: input, shape index: {}]   ;;  %s7610_s13 = inlined_call_operand.vmem [shape: f32[8,128], index: 13, kind: input, shape index: {}]   ;;  %s7611_s14 = inlined_call_operand.vmem [shape: f32[8,128], index: 14, kind: output, shape index: {0}]   ;;  %s7612_s15 = inlined_call_operand.vmem [shape: f32[8,128], index: 15, kind: output, shape index: {1}]  }
   0x1   :  { %22 = vsyncpa [#allocation5], 0 }
   0x2   :  { %23 = vsyncpa [#allocation8], 0 }
   0x3   :  { %24 = vsyncpa [#allocation11], 0  ;;  %s5051_s18 = smov [#allocation4]   ;;  %s5052_s20 = smov [#allocation7]  }
   0x4   :  { %s52_s19 = sshll.u32 %s5051_s18, 4  ;;  %s78_s21 = sshll.u32 %s5052_s20, 4  ;;  %s53_s19 = int_to_ptr.vmem [resolvable:$true] %s52_s19  ;;  %s5146_s21 = int_to_ptr.vmem [resolvable:$true] %s78_s21 }
   0x5   :  { %s4911_s24 = scalar_lea.hbm %s7603_s6, 1024 }
   0x6   :  { %p4912_p0 = scmp.ne.s32.totalorder %s7603_s6, %s4911_s24  ;;  %p4915_p1 = scmp.lt.u32.totalorder %s4911_s24, %s7603_s6 }
   0x8   :  { %p4917_p2 = pnand %p4915_p1, %p4912_p0 }
   0xa   :  { %4920 = shalt.err (!%p4917_p2)
}
   0xb   :  { %s4921_s29 = scalar_lea.vmem %s53_s19, 1024  ;;  %p4926_p4 = scmp.lt.s32.totalorder %s53_s19, %s53_s19 }
   0xc   :  { %p4922_p3 = scmp.ne.s32.totalorder %s53_s19, %s4921_s29  ;;  %p4927_p5 = scmp.lt.s32.totalorder %s4921_s29, %s4921_s29 }
   0xe   :  { %p4928_p6 = por %p4927_p5, %p4926_p4 }
  0x10   :  { %p4929_p7 = pnand %p4928_p6, %p4922_p3 }
  0x12   :  { %4932 = shalt.err (!%p4929_p7)
}
  0x13   :  { %s5053_s30 = smov 64   ;;  %s5054_s16 = smov 4  }
  0x14   :  { %58 = dma.hbm_to_vmem [thread:$0]  %s7603_s6, 1024, %s53_s19, [#allocation5], %s5053_s30, %s5053_s30, %s5054_s16  }
  0x15   :  { %s4933_s23 = scalar_lea.hbm %s7606_s9, 2048 }
  0x16   :  { %p4934_p8 = scmp.ne.s32.totalorder %s7606_s9, %s4933_s23  ;;  %p4937_p9 = scmp.lt.u32.totalorder %s4933_s23, %s7606_s9 }
  0x18   :  { %p4939_p10 = pnand %p4937_p9, %p4934_p8 }
  0x1a   :  { %4942 = shalt.err (!%p4939_p10)
}
  0x1b   :  { %s4943_s28 = scalar_lea.vmem %s5146_s21, 2048  ;;  %p4948_p12 = scmp.lt.s32.totalorder %s5146_s21, %s5146_s21 }
  0x1c   :  { %p4944_p11 = scmp.ne.s32.totalorder %s5146_s21, %s4943_s28  ;;  %p4949_p13 = scmp.lt.s32.totalorder %s4943_s28, %s4943_s28 }
  0x1e   :  { %p4950_p0 = por %p4949_p13, %p4948_p12 }
  0x20   :  { %p4951_p1 = pnand %p4950_p0, %p4944_p11 }
  0x22   :  { %4954 = shalt.err (!%p4951_p1)
}
  0x23   :  { %84 = dma.hbm_to_vmem [thread:$0]  %s7606_s9, 2048, %s5146_s21, [#allocation8], %s5053_s30, %s5053_s30, %s5054_s16  }
  0x24   :  { %s5055_s29 = smov [#allocation2]   ;;  %s5056_s18 = smov [#allocation6]  }
  0x25   :  { %s34_s17 = sshll.u32 %s5055_s29, 4  ;;  %s64_s20 = sshll.u32 %s5056_s18, 4  ;;  %s35_s17 = int_to_ptr.vmem [resolvable:$true] %s34_s17  ;;  %s5183_s20 = int_to_ptr.vmem [resolvable:$true] %s64_s20 }
  0x26   :  { %s4955_s24 = scalar_lea.hbm %s7599_s2, 1024 }
  0x27   :  { %p4956_p2 = scmp.ne.s32.totalorder %s7599_s2, %s4955_s24  ;;  %p4959_p3 = scmp.lt.u32.totalorder %s4955_s24, %s7599_s2 }
  0x29   :  { %p4961_p4 = pnand %p4959_p3, %p4956_p2 }
  0x2b   :  { %4964 = shalt.err (!%p4961_p4)
}
  0x2c   :  { %s4965_s9 = scalar_lea.vmem %s35_s17, 1024  ;;  %p4970_p6 = scmp.lt.s32.totalorder %s35_s17, %s35_s17 }
  0x2d   :  { %p4966_p5 = scmp.ne.s32.totalorder %s35_s17, %s4965_s9  ;;  %p4971_p7 = scmp.lt.s32.totalorder %s4965_s9, %s4965_s9 }
  0x2f   :  { %p4972_p8 = por %p4971_p7, %p4970_p6 }
  0x31   :  { %p4973_p9 = pnand %p4972_p8, %p4966_p5 }
  0x33   :  { %4976 = shalt.err (!%p4973_p9)
}
  0x34   :  { %40 = dma.hbm_to_vmem [thread:$0]  %s7599_s2, 1024, %s35_s17, [#allocation3], %s5053_s30, %s5053_s30, %s5054_s16  }
  0x35   :  { %s4977_s18 = scalar_lea.hbm %s7604_s7, 2048 }
  0x36   :  { %p4978_p10 = scmp.ne.s32.totalorder %s7604_s7, %s4977_s18  ;;  %p4981_p11 = scmp.lt.u32.totalorder %s4977_s18, %s7604_s7 }
  0x38   :  { %p4983_p12 = pnand %p4981_p11, %p4978_p10 }
  0x3a   :  { %4986 = shalt.err (!%p4983_p12)
}
  0x3b   :  { %s4987_s26 = scalar_lea.vmem %s5183_s20, 2048  ;;  %p4992_p0 = scmp.lt.s32.totalorder %s5183_s20, %s5183_s20 }
  0x3c   :  { %p4988_p13 = scmp.ne.s32.totalorder %s5183_s20, %s4987_s26  ;;  %p4993_p1 = scmp.lt.s32.totalorder %s4987_s26, %s4987_s26 }
  0x3e   :  { %p4994_p2 = por %p4993_p1, %p4992_p0 }
  0x40   :  { %p4995_p3 = pnand %p4994_p2, %p4988_p13 }
  0x42   :  { %4998 = shalt.err (!%p4995_p3)
}
  0x43   :  { %s5057_s2 = smov 128   ;;  %s5058_s17 = smov 8  }
  0x44   :  { %70 = dma.hbm_to_vmem [thread:$0]  %s7604_s7, 2048, %s5183_s20, [#allocation5], %s5057_s2, %s5057_s2, %s5058_s17  }
  0x45   :  { %s5059_s9 = smov [#allocation9]   ;;  %s5060_s6 = smov [#allocation10]  }
  0x46   :  { %s90_s21 = sshll.u32 %s5059_s9, 4  ;;  %s104_s19 = sshll.u32 %s5060_s6, 4  ;;  %s91_s21 = int_to_ptr.vmem [resolvable:$true] %s90_s21  ;;  %s5217_s19 = int_to_ptr.vmem [resolvable:$true] %s104_s19 }
  0x47   :  { %s4999_s22 = scalar_lea.hbm %s7607_s10, 2048 }
  0x48   :  { %p5000_p4 = scmp.ne.s32.totalorder %s7607_s10, %s4999_s22  ;;  %p5003_p5 = scmp.lt.u32.totalorder %s4999_s22, %s7607_s10 }
  0x4a   :  { %p5005_p6 = pnand %p5003_p5, %p5000_p4 }
  0x4c   :  { %5008 = shalt.err (!%p5005_p6)
}
  0x4d   :  { %s5009_s7 = scalar_lea.vmem %s91_s21, 2048  ;;  %p5014_p8 = scmp.lt.s32.totalorder %s91_s21, %s91_s21 }
  0x4e   :  { %p5010_p7 = scmp.ne.s32.totalorder %s91_s21, %s5009_s7  ;;  %p5015_p9 = scmp.lt.s32.totalorder %s5009_s7, %s5009_s7 }
  0x50   :  { %p5016_p10 = por %p5015_p9, %p5014_p8 }
  0x52   :  { %p5017_p11 = pnand %p5016_p10, %p5010_p7 }
  0x54   :  { %5020 = shalt.err (!%p5017_p11)
}
  0x55   :  { %96 = dma.hbm_to_vmem [thread:$0]  %s7607_s10, 2048, %s91_s21, [#allocation8], %s5057_s2, %s5057_s2, %s5058_s17  }
  0x56   :  { %s5021_s6 = scalar_lea.hbm %s7609_s12, 1024 }
  0x57   :  { %p5022_p12 = scmp.ne.s32.totalorder %s7609_s12, %s5021_s6  ;;  %p5025_p13 = scmp.lt.u32.totalorder %s5021_s6, %s7609_s12 }
  0x59   :  { %p5027_p0 = pnand %p5025_p13, %p5022_p12 }
  0x5b   :  { %5030 = shalt.err (!%p5027_p0)
}
  0x5c   :  { %s5031_s24 = scalar_lea.vmem %s5217_s19, 1024  ;;  %p5036_p2 = scmp.lt.s32.totalorder %s5217_s19, %s5217_s19 }
  0x5d   :  { %p5032_p1 = scmp.ne.s32.totalorder %s5217_s19, %s5031_s24  ;;  %p5037_p3 = scmp.lt.s32.totalorder %s5031_s24, %s5031_s24 }
  0x5f   :  { %p5038_p4 = por %p5037_p3, %p5036_p2 }
  0x61   :  { %p5039_p5 = pnand %p5038_p4, %p5032_p1 }
  0x63   :  { %5042 = shalt.err (!%p5039_p5)
}
  0x64   :  { %110 = dma.hbm_to_vmem [thread:$0]  %s7609_s12, 1024, %s5217_s19, [#allocation11], %s5053_s30, %s5053_s30, %s5054_s16  }
  0x65   :  { %5043 = dma.done.wait [#allocation3], 1024  }
  0x66   :  { %5044 = vsyncadd [#allocation3], 4294966272 }
  0x67   :  { %5045 = dma.done.wait [#allocation5], 3072  }
  0x68   :  { %5046 = vsyncadd [#allocation5], 4294964224 }
  0x69   :  { %5047 = dma.done.wait [#allocation8], 4096  }
  0x6a   :  { %5048 = vsyncadd [#allocation8], 4294963200 }
  0x6b   :  { %5049 = dma.done.wait [#allocation11], 1024  }
  0x6c   :  { %5050 = vsyncadd [#allocation11], 4294966272  ;;  %v7616_v0 = vlaneseq  ;;  %v133_v6 = vld [vmem:[%s7597_s0] sm:$0x3]  ;;  %v4544_v12 = vld [vmem:[#allocation2 + $0x8] sm:$0xff]   ;;  %v7613_v13 = vmov 0.0  }
  0x6d   :  { %v4543_v11 = vld [vmem:[#allocation2] sm:$0xff]   ;;  %v4545_v20 = vld [vmem:[#allocation2 + $0x10] sm:$0xff]   ;;  %v4546_v26 = vld [vmem:[#allocation2 + $0x18] sm:$0xff]  }
  0x6e   :  { %v5252_v1 = vshrl.u32 %v7616_v0, 7  ;;  %4378 = vmatprep.subr.bf16.mxu0 %v4543_v11  ;;  %v4547_v35 = vld [vmem:[#allocation2 + $0x20] sm:$0xff]   ;;  %v4548_v42 = vld [vmem:[#allocation2 + $0x28] sm:$0xff]   ;;  %v4549_v52 = vld [vmem:[#allocation2 + $0x30] sm:$0xff]  }
  0x6f   :  { %4379 = vmatpush3.bf16.msra.mxu0 %v4543_v11  ;;  %v4550_v59 = vld [vmem:[#allocation2 + $0x38] sm:$0xff]   ;;  %v4551_v62 = vld [vmem:[%s7601_s4 + $0x4] ss:$12 sps:$4 sm:$0xff]   ;;  %v4553_v63 = vld [vmem:[%s7601_s4] ss:$12 sps:$4 sm:$0xff]  }
  0x70   :  { %7653 = vst [vmem:[#allocation16_spill] sm:$0xff] %v5252_v1  ;;  %v5255_v2 = vsub.s32 0, %v5252_v1  ;;  %v5258_v3 = vadd.s32 8, %v5252_v1  ;;  %v5261_v4 = vadd.s32 16, %v5252_v1  ;;  %v5264_v5 = vadd.s32 24, %v5252_v1  ;;  %4380 = vmatprep.subr.bf16.mxu0 %v4544_v12  ;;  %686 = vmatprep.subr.bf16.mxu1 %v4551_v62 }
  0x71   :  { %v5273_v8 = vadd.s32 32, %v5252_v1  ;;  %v5276_v9 = vadd.s32 40, %v5252_v1  ;;  %v5279_v10 = vadd.s32 48, %v5252_v1  ;;  %v5298_v19 = vadd.s32 56, %v5252_v1  ;;  %v4555_v11 = vld [vmem:[%s7601_s4 + $0x1c] ss:$12 sps:$4 sm:$0xff]   ;;  %687 = vmatpush1.bf16.msra.mxu1 %v4553_v63 }
  0x72   :  { %7654 = vst [vmem:[#allocation17_spill] sm:$0xff] %v5258_v3  ;;  %7655 = vst [vmem:[#allocation18_spill] sm:$0xff] %v5261_v4  ;;  %v5270_v7 = vrot.slane %v133_v6, %v5255_v2  ;;  %v5301_v22 = vadd.s32 64, %v5252_v1  ;;  %v5310_v25 = vadd.s32 72, %v5252_v1  ;;  %v5313_v28 = vadd.s32 80, %v5252_v1  ;;  %688 = vmatprep.subr.bf16.mxu1 %v4555_v11 }
  0x73   :  { %4381 = vmatpush3.bf16.msra.mxu0 %v4544_v12  ;;  %v5316_v29 = vadd.s32 88, %v5252_v1  ;;  %v5323_v32 = vsub.s32 1, %v5252_v1  ;;  %v5328_v33 = vadd.s32 96, %v5252_v1  ;;  %v5331_v34 = vadd.s32 104, %v5252_v1  ;;  %v4577_v11 = vld [vmem:[%s7601_s4 + $0x90] ss:$12 sps:$4 sm:$0xff]  }
  0x74   :  { %vm159_vm0 = vcmp.eq.s32.totalorder %v5270_v7, %v5252_v1  ;;  %vm161_vm1 = vcmp.eq.s32.totalorder %v5270_v7, %v5258_v3  ;;  %vm163_vm2 = vcmp.eq.s32.totalorder %v5270_v7, %v5261_v4  ;;  %vm165_vm3 = vcmp.eq.s32.totalorder %v5270_v7, %v5264_v5  ;;  %4382 = vmatprep.subr.bf16.mxu0 %v4545_v20 }
  0x75   :  { %v4061_v14 = vsel %vm159_vm0, 1.0, %v7613_v13  ;;  %v4063_v15 = vsel %vm161_vm1, 1.0, %v7613_v13  ;;  %v4065_v16 = vsel %vm163_vm2, 1.0, %v7613_v13  ;;  %v4067_v17 = vsel %vm165_vm3, 1.0, %v7613_v13  ;;  %7656 = vst [vmem:[#allocation19_spill] sm:$0xff] %v5323_v32 }
  0x76   :  { %v255_v18 = vpack.c.bf16 %v4063_v15, %v4061_v14  ;;  %vm167_vm4 = vcmp.eq.s32.totalorder %v5270_v7, %v5273_v8  ;;  %vm169_vm5 = vcmp.eq.s32.totalorder %v5270_v7, %v5276_v9  ;;  %v257_v21 = vpack.c.bf16 %v4067_v17, %v4065_v16  ;;  %v4557_v17 = vld [vmem:[%s7601_s4 + $0x18] ss:$12 sps:$4 sm:$0xff]  }
  0x77   :  { %v4069_v23 = vsel %vm167_vm4, 1.0, %v7613_v13  ;;  %v4071_v24 = vsel %vm169_vm5, 1.0, %v7613_v13  ;;  %vm171_vm6 = vcmp.eq.s32.totalorder %v5270_v7, %v5279_v10  ;;  %vm173_vm7 = vcmp.eq.s32.totalorder %v5270_v7, %v5298_v19  ;;  %4383 = vmatpush3.bf16.msra.mxu0 %v4545_v20  ;;  %v4559_v20 = vld [vmem:[%s7601_s4 + $0x34] ss:$12 sps:$4 sm:$0xff]   ;;  %689 = vmatpush1.bf16.msra.mxu1 %v4557_v17 }
  0x78   :  { %288 = vxpose.xlu0.c.b16.start [1/8] %v255_v18, 128  ;;  %v259_v27 = vpack.c.bf16 %v4071_v24, %v4069_v23  ;;  %v4073_v30 = vsel %vm171_vm6, 1.0, %v7613_v13  ;;  %v4075_v31 = vsel %vm173_vm7, 1.0, %v7613_v13  ;;  %vm175_vm8 = vcmp.eq.s32.totalorder %v5270_v7, %v5301_v22  ;;  %4384 = vmatprep.subr.bf16.mxu0 %v4546_v26  ;;  %v4554_v18 = vld [vmem:[%s7601_s4 + $0x8] ss:$12 sps:$4 sm:$0xff]  }
  0x79   :  { %vm177_vm9 = vcmp.eq.s32.totalorder %v5270_v7, %v5310_v25  ;;  %v5334_v36 = vadd.s32 112, %v5252_v1  ;;  %v5337_v37 = vadd.s32 120, %v5252_v1  ;;  %v5340_v38 = vrot.slane %v133_v6, %v5323_v32  ;;  %690 = vmatprep.subr.bf16.mxu1 %v4559_v20  ;;  %v5494_v20 = vld [vmem:[%s7600_s3] sm:$0xff] }
  0x7a   :  { %v261_v39 = vpack.c.bf16 %v4075_v31, %v4073_v30  ;;  %v4077_v40 = vsel %vm175_vm8, 1.0, %v7613_v13  ;;  %vm179_vm10 = vcmp.eq.s32.totalorder %v5270_v7, %v5313_v28  ;;  %v4079_v41 = vsel %vm177_vm9, 1.0, %v7613_v13  ;;  %v4563_v30 = vld [vmem:[%s7601_s4 + $0x4c] ss:$12 sps:$4 sm:$0xff]   ;;  %v4565_v31 = vld [vmem:[%s7601_s4 + $0x48] ss:$12 sps:$4 sm:$0xff]  }
  0x7b   :  { %vm181_vm11 = vcmp.eq.s32.totalorder %v5270_v7, %v5316_v29  ;;  %vm160_vm12 = vcmp.eq.s32.totalorder %v5340_v38, %v5252_v1  ;;  %vm162_vm13 = vcmp.eq.s32.totalorder %v5340_v38, %v5258_v3  ;;  %vm164_vm14 = vcmp.eq.s32.totalorder %v5340_v38, %v5261_v4  ;;  %4385 = vmatpush3.bf16.msra.mxu0 %v4546_v26 }
  0x7c   :  { %289 = vxpose.xlu0.c.b16.cont [2/8] %v257_v21, 128  ;;  %v4062_v43 = vsel %vm160_vm12, 1.0, %v7613_v13  ;;  %v4064_v44 = vsel %vm162_vm13, 1.0, %v7613_v13  ;;  %vm166_vm15 = vcmp.eq.s32.totalorder %v5340_v38, %v5264_v5  ;;  %v4066_v46 = vsel %vm164_vm14, 1.0, %v7613_v13  ;;  %4386 = vmatprep.subr.bf16.mxu0 %v4547_v35 }
  0x7d   :  { %v256_v45 = vpack.c.bf16 %v4064_v44, %v4062_v43  ;;  %v4068_v47 = vsel %vm166_vm15, 1.0, %v7613_v13  ;;  %vm168_vm0 = vcmp.eq.s32.totalorder %v5340_v38, %v5273_v8  ;;  %v263_v48 = vpack.c.bf16 %v4079_v41, %v4077_v40  ;;  %v4569_v44 = vld [vmem:[%s7601_s4 + $0x60] ss:$12 sps:$4 sm:$0xff]  }
  0x7e   :  { %v4081_v49 = vsel %vm179_vm10, 1.0, %v7613_v13  ;;  %vm170_vm1 = vcmp.eq.s32.totalorder %v5340_v38, %v5276_v9  ;;  %v4083_v50 = vsel %vm181_vm11, 1.0, %v7613_v13  ;;  %vm183_vm2 = vcmp.eq.s32.totalorder %v5270_v7, %v5328_v33 }
  0x7f   :  { %304 = vxpose.xlu1.c.b16.start [1/8] (narrow) %v256_v45, 64  ;;  %v258_v51 = vpack.c.bf16 %v4068_v47, %v4066_v46  ;;  %vm185_vm3 = vcmp.eq.s32.totalorder %v5270_v7, %v5331_v34  ;;  %v4070_v53 = vsel %vm168_vm0, 1.0, %v7613_v13  ;;  %v4072_v54 = vsel %vm170_vm1, 1.0, %v7613_v13  ;;  %4387 = vmatpush3.bf16.msra.mxu0 %v4547_v35  ;;  %v4571_v45 = vld [vmem:[%s7601_s4 + $0x7c] ss:$12 sps:$4 sm:$0xff]  }
  0x80   :  { %290 = vxpose.xlu0.c.b16.cont [3/8] %v259_v27, 128  ;;  %vm172_vm4 = vcmp.eq.s32.totalorder %v5340_v38, %v5279_v10  ;;  %vm174_vm5 = vcmp.eq.s32.totalorder %v5340_v38, %v5298_v19  ;;  %4388 = vmatprep.subr.bf16.mxu0 %v4548_v42  ;;  %v265_v55 = vpack.c.bf16 %v4083_v50, %v4081_v49  ;;  %v4085_v56 = vsel %vm183_vm2, 1.0, %v7613_v13  ;;  %v4561_v27 = vld [vmem:[%s7601_s4 + $0x30] ss:$12 sps:$4 sm:$0xff]   ;;  %v4573_v46 = vld [vmem:[%s7601_s4 + $0x78] ss:$12 sps:$4 sm:$0xff]  }
  0x81   :  { %v4087_v57 = vsel %vm185_vm3, 1.0, %v7613_v13  ;;  %vm187_vm6 = vcmp.eq.s32.totalorder %v5270_v7, %v5334_v36  ;;  %v260_v58 = vpack.c.bf16 %v4072_v54, %v4070_v53  ;;  %vm189_vm7 = vcmp.eq.s32.totalorder %v5270_v7, %v5337_v37  ;;  %691 = vmatpush1.bf16.msra.mxu1 %v4561_v27  ;;  %v4558_v49 = vld [vmem:[%s7601_s4 + $0x20] ss:$12 sps:$4 sm:$0xff]   ;;  %v4566_v53 = vld [vmem:[%s7601_s4 + $0x50] ss:$12 sps:$4 sm:$0xff]  }
  0x82   :  { %v4074_v60 = vsel %vm172_vm4, 1.0, %v7613_v13  ;;  %v4076_v61 = vsel %vm174_vm5, 1.0, %v7613_v13  ;;  %vm176_vm8 = vcmp.eq.s32.totalorder %v5340_v38, %v5301_v22  ;;  %vm178_vm9 = vcmp.eq.s32.totalorder %v5340_v38, %v5310_v25  ;;  %692 = vmatprep.subr.bf16.mxu1 %v4563_v30 }
  0x83   :  { %305 = vxpose.xlu1.c.b16.cont [2/8] (narrow) %v258_v51, 64  ;;  %4389 = vmatpush3.bf16.msra.mxu0 %v4548_v42  ;;  %v267_v6 = vpack.c.bf16 %v4087_v57, %v4085_v56  ;;  %v4089_v7 = vsel %vm187_vm6, 1.0, %v7613_v13  ;;  %v4091_v12 = vsel %vm189_vm7, 1.0, %v7613_v13  ;;  %v262_v14 = vpack.c.bf16 %v4076_v61, %v4074_v60  ;;  %v4562_v51 = vld [vmem:[%s7601_s4 + $0x38] ss:$12 sps:$4 sm:$0xff]  }
  0x84   :  { %291 = vxpose.xlu0.c.b16.cont [4/8] %v261_v39, 128  ;;  %4390 = vmatprep.subr.bf16.mxu0 %v4549_v52  ;;  %vm180_vm10 = vcmp.eq.s32.totalorder %v5340_v38, %v5313_v28  ;;  %vm182_vm11 = vcmp.eq.s32.totalorder %v5340_v38, %v5316_v29  ;;  %v4078_v15 = vsel %vm176_vm8, 1.0, %v7613_v13  ;;  %v4080_v16 = vsel %vm178_vm9, 1.0, %v7613_v13  ;;  %v4567_v39 = vld [vmem:[%s7601_s4 + $0x64] ss:$12 sps:$4 sm:$0xff]   ;;  %v4574_v57 = vld [vmem:[%s7601_s4 + $0x80] ss:$12 sps:$4 sm:$0xff]  }
  0x85   :  { %v269_v21 = vpack.c.bf16 %v4091_v12, %v4089_v7  ;;  %v4082_v23 = vsel %vm180_vm10, 1.0, %v7613_v13  ;;  %v4084_v24 = vsel %vm182_vm11, 1.0, %v7613_v13  ;;  %v264_v26 = vpack.c.bf16 %v4080_v16, %v4078_v15  ;;  %693 = vmatpush1.bf16.msra.mxu1 %v4565_v31  ;;  %v4575_v7 = vld [vmem:[%s7601_s4 + $0x94] ss:$12 sps:$4 sm:$0xff]   ;;  %v4578_v12 = vld [vmem:[%s7601_s4 + $0x98] ss:$12 sps:$4 sm:$0xff]  }
  0x86   :  { %vm184_vm12 = vcmp.eq.s32.totalorder %v5340_v38, %v5328_v33  ;;  %vm186_vm13 = vcmp.eq.s32.totalorder %v5340_v38, %v5331_v34  ;;  %v266_v35 = vpack.c.bf16 %v4084_v24, %v4082_v23  ;;  %vm188_vm14 = vcmp.eq.s32.totalorder %v5340_v38, %v5334_v36  ;;  %694 = vmatprep.subr.bf16.mxu1 %v4567_v39  ;;  %v4581_v15 = vld [vmem:[%s7601_s4 + $0xa8] ss:$12 sps:$4 sm:$0xff]   ;;  %v4582_v16 = vld [vmem:[%s7601_s4 + $0xb0] ss:$12 sps:$4 sm:$0xff]  }
  0x87   :  { %306 = vxpose.xlu1.c.b16.cont [3/8] (narrow) %v260_v58, 64  ;;  %4391 = vmatpush3.bf16.msra.mxu0 %v4549_v52  ;;  %vm190_vm15 = vcmp.eq.s32.totalorder %v5340_v38, %v5337_v37  ;;  %v4086_v40 = vsel %vm184_vm12, 1.0, %v7613_v13  ;;  %v4088_v41 = vsel %vm186_vm13, 1.0, %v7613_v13  ;;  %v4090_v42 = vsel %vm188_vm14, 1.0, %v7613_v13 }
  0x88   :  { %292 = vxpose.xlu0.c.b16.cont [5/8] %v263_v48, 128  ;;  %4392 = vmatprep.subr.bf16.mxu0 %v4550_v59  ;;  %v4092_v43 = vsel %vm190_vm15, 1.0, %v7613_v13  ;;  %v268_v38 = vpack.c.bf16 %v4088_v41, %v4086_v40  ;;  %v7617_v17 = vmov 0   ;;  %vm1387_vm9 = vcmask 523264  }
  0x89   :  { %v270_v47 = vpack.c.bf16 %v4092_v43, %v4090_v42  ;;  %695 = vmatpush1.bf16.msra.mxu1 %v4569_v44  ;;  %718 = vmatprep.mubr.bf16.mxu1 %v7617_v17 }
  0x8a   :  { %696 = vmatprep.subr.bf16.mxu1 %v4571_v45 }
  0x8b   :  { %307 = vxpose.xlu1.c.b16.cont [4/8] (narrow) %v262_v14, 64  ;;  %4393 = vmatpush3.bf16.msra.mxu0 %v4550_v59  ;;  %v4579_v14 = vld [vmem:[%s7601_s4 + $0xac] ss:$12 sps:$4 sm:$0xff]  }
  0x8c   :  { %293 = vxpose.xlu0.c.b16.cont [6/8] %v265_v55, 128  ;;  %4418 = vmatprep.subr.bf16.mxu0 %v4554_v18  ;;  %v4570_v55 = vld [vmem:[%s7601_s4 + $0x68] ss:$12 sps:$4 sm:$0xff]  }
  0x8d   :  { %697 = vmatpush1.bf16.msra.mxu1 %v4573_v46 }
  0x8e   :  { %698 = vmatprep.subr.bf16.mxu1 %v4575_v7 }
  0x8f   :  { %308 = vxpose.xlu1.c.b16.cont [5/8] (narrow) %v264_v26, 64 }
  0x90   :  { %294 = vxpose.xlu0.c.b16.cont [7/8] %v267_v6, 128 }
  0x91   :  { %699 = vmatpush1.bf16.msra.mxu1 %v4577_v11 }
  0x92   :  { %700 = vmatprep.subr.bf16.mxu1 %v4579_v14 }
  0x93   :  { %309 = vxpose.xlu1.c.b16.cont [6/8] (narrow) %v266_v35, 64 }
  0x94   :  { %295 = vxpose.xlu0.c.b16.end [8/8] %v269_v21, 128 }
  0x95   :  { %701 = vmatpush1.bf16.msra.mxu1 %v4581_v15 }
  0x96   :  { %992 = vmatprep.subr.bf16.mxu1 %v7617_v17 }
  0x97   :  { %310 = vxpose.xlu1.c.b16.cont [7/8] (narrow) %v268_v38, 64 }
  0x9b   :  { %311 = vxpose.xlu1.c.b16.end [8/8] (narrow) %v270_v47, 64 }
  0xde   :  { %v296_v48 = vpop.trf.xlu0 }
  0xdf   :  { %4394 = vmatprep.mubr.bf16.mxu0 %v296_v48 }
  0xe2   :  { %v297_v50 = vpop.trf.xlu0 }
  0xe3   :  { %4395 = vmatmul.mubr.bf16.vlgmr.msra.gmra.mrb[0].mxu0 %v297_v50 }
  0xe4   :  { %4419 = vmatpush3.bf16.msra.mxu0 %v4554_v18 }
  0xe5   :  { %4420 = vmatprep.subr.bf16.mxu0 %v4558_v49  ;;  %v312_v60 = vpop.trf.xlu1 }
  0xe6   :  { %v298_v52 = vpop.trf.xlu0 }
  0xe7   :  { %4398 = vmatprep.mubr.bf16.mxu0 %v298_v52 }
  0xe8   :  { %4421 = vmatpush3.bf16.msra.mxu0 %v4558_v49 }
  0xe9   :  { %4422 = vmatprep.subr.bf16.mxu0 %v4562_v51  ;;  %v313_v62 = vpop.trf.xlu1 }
  0xea   :  { %v299_v54 = vpop.trf.xlu0 }
  0xeb   :  { %4399 = vmatmul.mubr.bf16.gmra.mrb[4].mxu0 %v299_v54 }
  0xec   :  { %4423 = vmatpush3.bf16.msra.mxu0 %v4562_v51 }
  0xed   :  { %4424 = vmatprep.subr.bf16.mxu0 %v4566_v53  ;;  %v314_v63 = vpop.trf.xlu1 }
  0xee   :  { %v300_v56 = vpop.trf.xlu0 }
  0xef   :  { %4402 = vmatprep.mubr.bf16.mxu0 %v300_v56 }
  0xf0   :  { %4425 = vmatpush3.bf16.msra.mxu0 %v4566_v53 }
  0xf1   :  { %4426 = vmatprep.subr.bf16.mxu0 %v4570_v55  ;;  %v315_v6 = vpop.trf.xlu1 }
  0xf2   :  { %v301_v58 = vpop.trf.xlu0 }
  0xf3   :  { %4403 = vmatmul.mubr.bf16.gmra.mrb[8].mxu0 %v301_v58 }
  0xf4   :  { %4427 = vmatpush3.bf16.msra.mxu0 %v4570_v55 }
  0xf5   :  { %4428 = vmatprep.subr.bf16.mxu0 %v4574_v57 }
  0xf6   :  { %v302_v59 = vpop.trf.xlu0 }
  0xf7   :  { %4406 = vmatprep.mubr.bf16.mxu0 %v302_v59 }
  0xf8   :  { %4429 = vmatpush3.bf16.msra.mxu0 %v4574_v57 }
  0xf9   :  { %4430 = vmatprep.subr.bf16.mxu0 %v4578_v12 }
  0xfa   :  { %v303_v61 = vpop.trf.xlu0 }
  0xfb   :  { %4407 = vmatmul.mubr.bf16.gmra.mrb[12].mxu0 %v303_v61 }
  0xfc   :  { %4410 = vmatprep.mubr.bf16.mxu0 %v312_v60  ;;  %4431 = vmatpush3.bf16.msra.mxu0 %v4578_v12 }
  0xfd   :  { %4432 = vmatprep.subr.bf16.mxu0 %v4582_v16 }
 0x100   :  { %4433 = vmatpush3.bf16.msra.mxu0 %v4582_v16 }
 0x101   :  { %1868 = vmatprep.subr.bf16.mxu0 %v7617_v17 }
 0x103   :  { %4411 = vmatmul.mubr.bf16.gmra.mrb[16].mxu0 %v313_v62 }
 0x104   :  { %4414 = vmatprep.mubr.bf16.mxu0 %v314_v63 }
 0x10b   :  { %4415 = vmatmul.mubr.bf16.gmra.mrb[20].mxu0 %v315_v6 }
 0x1b6   :  { %v4396_v18 = vpop.f32.mrb[0].mxu0 }
 0x1b7   :  { %v402_v21 = vpop.f32.mrb[1].mxu0  ;;  %v5506_v31 = vadd.f32 %v4396_v18, %v5494_v20 }
 0x1b8   :  { %v4397_v23 = vpop.f32.mrb[2].mxu0  ;;  %v5500_v27 = vadd.f32 %v402_v21, %v5494_v20 }
 0x1b9   :  { %v5497_v24 = vadd.f32 %v4397_v23, %v5494_v20  ;;  %v405_v26 = vpop.f32.mrb[3].mxu0  ;;  %7659 = vst [vmem:[#allocation22_spill] sm:$0xff] %v5506_v31 }
 0x1ba   :  { %v5503_v30 = vadd.f32 %v405_v26, %v5494_v20 }
 0x1bb   :  { %7657 = vst [vmem:[#allocation20_spill] sm:$0xff] %v5497_v24  ;;  %v498_v39 = vpack.c.bf16 %v5497_v24, %v5506_v31 }
 0x1bc   :  { %7658 = vst [vmem:[#allocation21_spill] sm:$0xff] %v5503_v30  ;;  %v497_v35 = vpack.c.bf16 %v5503_v30, %v5500_v27 }
 0x1be   :  { %v4400_v40 = vpop.f32.mrb[4].mxu0  ;;  %719 = vmatmul.mubr.bf16.vlgmr.msra.gmra.mrb[0].mxu1 %v497_v35  ;;  %4434 = vmatprep.mubr.bf16.mxu0 %v497_v35 }
 0x1bf   :  { %v5513_v41 = vadd.f32 %v4400_v40, %v5494_v20  ;;  %v418_v42 = vpop.f32.mrb[5].mxu0  ;;  %4435 = vmatmul.mubr.bf16.vlgmr.msra.gmra.mrb[24].mxu0 %v498_v39  ;;  %728 = vmatprep.mubr.bf16.mxu1 %v7617_v17 }
 0x1c0   :  { %v5517_v43 = vadd.f32 %v418_v42, %v5494_v20  ;;  %v4401_v44 = vpop.f32.mrb[6].mxu0 }
 0x1c1   :  { %7660 = vst [vmem:[#allocation23_spill] sm:$0xff] %v5513_v41  ;;  %v5520_v38 = vadd.f32 %v4401_v44, %v5494_v20  ;;  %v421_v45 = vpop.f32.mrb[7].mxu0 }
 0x1c2   :  { %7661 = vst [vmem:[#allocation24_spill] sm:$0xff] %v5517_v43  ;;  %v5523_v46 = vadd.f32 %v421_v45, %v5494_v20 }
 0x1c3   :  { %7662 = vst [vmem:[#allocation25_spill] sm:$0xff] %v5520_v38  ;;  %v500_v47 = vpack.c.bf16 %v5520_v38, %v5513_v41 }
 0x1c4   :  { %7663 = vst [vmem:[#allocation26_spill] sm:$0xff] %v5523_v46  ;;  %v499_v48 = vpack.c.bf16 %v5523_v46, %v5517_v43 }
 0x1c6   :  { %729 = vmatmul.mubr.bf16.gmra.mrb[4].mxu1 %v498_v39  ;;  %4438 = vmatprep.mubr.bf16.mxu0 %v499_v48  ;;  %v4404_v49 = vpop.f32.mrb[8].mxu0 }
 0x1c7   :  { %4439 = vmatmul.mubr.bf16.gmra.mrb[28].mxu0 %v500_v47  ;;  %v5530_v50 = vadd.f32 %v4404_v49, %v5494_v20  ;;  %v434_v51 = vpop.f32.mrb[9].mxu0  ;;  %738 = vmatprep.mubr.bf16.mxu1 %v7617_v17 }
 0x1c8   :  { %v5534_v52 = vadd.f32 %v434_v51, %v5494_v20  ;;  %v4405_v53 = vpop.f32.mrb[10].mxu0 }
 0x1c9   :  { %7664 = vst [vmem:[#allocation27_spill] sm:$0xff] %v5530_v50  ;;  %v5537_v54 = vadd.f32 %v4405_v53, %v5494_v20  ;;  %v437_v55 = vpop.f32.mrb[11].mxu0 }
 0x1ca   :  { %7665 = vst [vmem:[#allocation28_spill] sm:$0xff] %v5534_v52  ;;  %v5540_v56 = vadd.f32 %v437_v55, %v5494_v20 }
 0x1cb   :  { %7666 = vst [vmem:[#allocation29_spill] sm:$0xff] %v5537_v54  ;;  %v502_v57 = vpack.c.bf16 %v5537_v54, %v5530_v50 }
 0x1cc   :  { %7667 = vst [vmem:[#allocation30_spill] sm:$0xff] %v5540_v56  ;;  %v501_v58 = vpack.c.bf16 %v5540_v56, %v5534_v52 }
 0x1ce   :  { %739 = vmatmul.mubr.bf16.gmra.mrb[8].mxu1 %v499_v48  ;;  %4442 = vmatprep.mubr.bf16.mxu0 %v501_v58  ;;  %v4408_v59 = vpop.f32.mrb[12].mxu0 }
 0x1cf   :  { %4443 = vmatmul.mubr.bf16.gmra.mrb[32].mxu0 %v502_v57  ;;  %748 = vmatprep.mubr.bf16.mxu1 %v7617_v17  ;;  %v5548_v60 = vadd.f32 %v4408_v59, %v5494_v20  ;;  %v450_v61 = vpop.f32.mrb[13].mxu0 }
 0x1d0   :  { %v5551_v62 = vadd.f32 %v450_v61, %v5494_v20  ;;  %v4409_v63 = vpop.f32.mrb[14].mxu0 }
 0x1d1   :  { %7668 = vst [vmem:[#allocation31_spill] sm:$0xff] %v5548_v60  ;;  %v5554_v6 = vadd.f32 %v4409_v63, %v5494_v20  ;;  %v453_v7 = vpop.f32.mrb[15].mxu0 }
 0x1d2   :  { %7669 = vst [vmem:[#allocation32_spill] sm:$0xff] %v5551_v62  ;;  %v5557_v11 = vadd.f32 %v453_v7, %v5494_v20 }
 0x1d3   :  { %7670 = vst [vmem:[#allocation33_spill] sm:$0xff] %v5554_v6  ;;  %v504_v12 = vpack.c.bf16 %v5554_v6, %v5548_v60 }
 0x1d4   :  { %7671 = vst [vmem:[#allocation34_spill] sm:$0xff] %v5557_v11  ;;  %v503_v14 = vpack.c.bf16 %v5557_v11, %v5551_v62 }
 0x1d6   :  { %749 = vmatmul.mubr.bf16.gmra.mrb[12].mxu1 %v500_v47  ;;  %4446 = vmatprep.mubr.bf16.mxu0 %v503_v14  ;;  %v4412_v15 = vpop.f32.mrb[16].mxu0 }
 0x1d7   :  { %758 = vmatprep.mubr.bf16.mxu1 %v7617_v17  ;;  %4447 = vmatmul.mubr.bf16.gmra.mrb[36].mxu0 %v504_v12  ;;  %v5565_v16 = vadd.f32 %v4412_v15, %v5494_v20  ;;  %v466_v18 = vpop.f32.mrb[17].mxu0 }
 0x1d8   :  { %v5568_v21 = vadd.f32 %v466_v18, %v5494_v20  ;;  %v4413_v23 = vpop.f32.mrb[18].mxu0 }
 0x1d9   :  { %7672 = vst [vmem:[#allocation35_spill] sm:$0xff] %v5565_v16  ;;  %v5571_v26 = vadd.f32 %v4413_v23, %v5494_v20  ;;  %v469_v35 = vpop.f32.mrb[19].mxu0 }
 0x1da   :  { %7673 = vst [vmem:[#allocation36_spill] sm:$0xff] %v5568_v21  ;;  %v5574_v39 = vadd.f32 %v469_v35, %v5494_v20 }
 0x1db   :  { %7674 = vst [vmem:[#allocation37_spill] sm:$0xff] %v5571_v26  ;;  %v506_v40 = vpack.c.bf16 %v5571_v26, %v5565_v16 }
 0x1dc   :  { %7675 = vst [vmem:[#allocation38_spill] sm:$0xff] %v5574_v39  ;;  %v505_v42 = vpack.c.bf16 %v5574_v39, %v5568_v21 }
 0x1de   :  { %759 = vmatmul.mubr.bf16.gmra.mrb[16].mxu1 %v501_v58  ;;  %4450 = vmatprep.mubr.bf16.mxu0 %v505_v42  ;;  %v4416_v44 = vpop.f32.mrb[20].mxu0 }
 0x1df   :  { %768 = vmatprep.mubr.bf16.mxu1 %v7617_v17  ;;  %4451 = vmatmul.mubr.bf16.gmra.mrb[40].mxu0 %v506_v40  ;;  %v5582_v45 = vadd.f32 %v4416_v44, %v5494_v20  ;;  %v482_v47 = vpop.f32.mrb[21].mxu0 }
 0x1e0   :  { %v5585_v48 = vadd.f32 %v482_v47, %v5494_v20  ;;  %v4417_v49 = vpop.f32.mrb[22].mxu0 }
 0x1e1   :  { %7676 = vst [vmem:[#allocation39_spill] sm:$0xff] %v5582_v45  ;;  %v5588_v51 = vadd.f32 %v4417_v49, %v5494_v20  ;;  %v485_v53 = vpop.f32.mrb[23].mxu0 }
 0x1e2   :  { %7677 = vst [vmem:[#allocation40_spill] sm:$0xff] %v5585_v48  ;;  %v5591_v55 = vadd.f32 %v485_v53, %v5494_v20  ;;  %v541_v20 = vld [vmem:[%s7602_s5] sm:$0x7] }
 0x1e3   :  { %7678 = vst [vmem:[#allocation41_spill] sm:$0xff] %v5588_v51  ;;  %v508_v58 = vpack.c.bf16 %v5588_v51, %v5582_v45  ;;  %v5609_v61 = vrot.slane %v541_v20, %v5255_v2  ;;  %v5612_v63 = vrot.slane %v541_v20, %v5323_v32 }
 0x1e4   :  { %7679 = vst [vmem:[#allocation42_spill] sm:$0xff] %v5591_v55  ;;  %v507_v59 = vpack.c.bf16 %v5591_v55, %v5585_v48 }
 0x1e6   :  { %769 = vmatmul.mubr.bf16.gmra.mrb[20].mxu1 %v502_v57  ;;  %4454 = vmatprep.mubr.bf16.mxu0 %v507_v59  ;;  %v7615_v57 = vsub.s32 2, %v5252_v1 }
 0x1e7   :  { %778 = vmatprep.mubr.bf16.mxu1 %v7617_v17  ;;  %4455 = vmatmul.mubr.bf16.gmra.mrb[44].mxu0 %v508_v58 }
 0x1e8   :  { %v5616_v7 = vrot.slane %v541_v20, %v7615_v57 }
 0x1ee   :  { %779 = vmatmul.mubr.bf16.gmra.mrb[24].mxu1 %v503_v14 }
 0x1ef   :  { %788 = vmatprep.mubr.bf16.mxu1 %v7617_v17 }
 0x1f6   :  { %789 = vmatmul.mubr.bf16.gmra.mrb[28].mxu1 %v504_v12 }
 0x1f7   :  { %798 = vmatprep.mubr.bf16.mxu1 %v7617_v17 }
 0x1fe   :  { %799 = vmatmul.mubr.bf16.gmra.mrb[32].mxu1 %v505_v42 }
 0x1ff   :  { %808 = vmatprep.mubr.bf16.mxu1 %v7617_v17 }
 0x206   :  { %809 = vmatmul.mubr.bf16.gmra.mrb[36].mxu1 %v506_v40 }
 0x207   :  { %818 = vmatprep.mubr.bf16.mxu1 %v7617_v17 }
 0x20e   :  { %819 = vmatmul.mubr.bf16.gmra.mrb[40].mxu1 %v507_v59 }
 0x20f   :  { %828 = vmatprep.mubr.bf16.mxu1 %v7617_v17 }
 0x216   :  { %829 = vmatmul.mubr.bf16.gmra.mrb[44].mxu1 %v508_v58 }
 0x217   :  { %1024 = vmatprep.mubr.bf16.mxu1 %v7617_v17 }
 0x291   :  { %v720_v12 = vpop.f32.mrb[0].mxu1 }
 0x292   :  { %v722_v14 = vpop.f32.mrb[1].mxu1  ;;  %v4436_v15 = vpop.f32.mrb[24].mxu0  ;;  %v5619_v35 = vadd.f32 %v720_v12, %v5609_v61 }
 0x293   :  { %v724_v18 = vpop.f32.mrb[2].mxu1  ;;  %v873_v23 = vpop.f32.mrb[25].mxu0  ;;  %v723_v47 = vadd.f32 %v722_v14, %v5612_v63  ;;  %v882_v49 = vadd.f32 %v4436_v15, %v5616_v7  ;;  %v7680_v15 = vmov 0  }
 0x294   :  { %v5622_v40 = vadd.f32 %v724_v18, %v5609_v61  ;;  %v726_v42 = vpop.f32.mrb[3].mxu1  ;;  %v4437_v44 = vpop.f32.mrb[26].mxu0  ;;  %v874_v12 = vadd.f32 %v873_v23, %v5616_v7 }
 0x295   :  { %v727_v53 = vadd.f32 %v726_v42, %v5612_v63  ;;  %v885_v58 = vadd.f32 %v4437_v44, %v5616_v7  ;;  %v876_v59 = vpop.f32.mrb[27].mxu0 }
 0x296   :  { %v877_v13 = vadd.f32 %v876_v59, %v5616_v7 }
 0x297   :  { %v980_v18 = vpack.c.bf16 %v727_v53, %v723_v47  ;;  %v1821_v57 = vpack.c.bf16 %v885_v58, %v882_v49 }
 0x298   :  { %v1820_v0 = vpack.c.bf16 %v877_v13, %v874_v12 }
 0x299   :  { %v730_v17 = vpop.f32.mrb[4].mxu1  ;;  %993 = vmatpush1.bf16.xpose.msra.mxu1 %v980_v18 }
 0x29a   :  { %v732_v14 = vpop.f32.mrb[5].mxu1  ;;  %v4440_v51 = vpop.f32.mrb[28].mxu0  ;;  %1869 = vmatpush1.bf16.msra.mxu0 %v1820_v0  ;;  %994 = vmatprep.subr.bf16.mxu1 %v7680_v15  ;;  %v5636_v23 = vadd.f32 %v730_v17, %v5609_v61 }
 0x29b   :  { %v898_v42 = vadd.f32 %v4440_v51, %v5616_v7  ;;  %v734_v44 = vpop.f32.mrb[6].mxu1  ;;  %v889_v45 = vpop.f32.mrb[29].mxu0  ;;  %1870 = vmatprep.subr.bf16.mxu0 %v7680_v15  ;;  %v733_v0 = vadd.f32 %v732_v14, %v5612_v63 }
 0x29c   :  { %v5639_v47 = vadd.f32 %v734_v44, %v5609_v61  ;;  %v890_v13 = vadd.f32 %v889_v45, %v5616_v7  ;;  %v736_v49 = vpop.f32.mrb[7].mxu1  ;;  %v4441_v53 = vpop.f32.mrb[30].mxu0 }
 0x29d   :  { %v737_v58 = vadd.f32 %v736_v49, %v5612_v63  ;;  %v901_v51 = vadd.f32 %v4441_v53, %v5616_v7  ;;  %v892_v59 = vpop.f32.mrb[31].mxu0 }
 0x29e   :  { %v893_v17 = vadd.f32 %v892_v59, %v5616_v7  ;;  %1871 = vmatpush1.bf16.msra.mxu0 %v1821_v57 }
 0x29f   :  { %v981_v18 = vpack.c.bf16 %v737_v58, %v733_v0  ;;  %v1823_v44 = vpack.c.bf16 %v901_v51, %v898_v42  ;;  %1872 = vmatprep.subr.bf16.mxu0 %v7680_v15 }
 0x2a0   :  { %v1822_v45 = vpack.c.bf16 %v893_v17, %v890_v13 }
 0x2a1   :  { %v740_v20 = vpop.f32.mrb[8].mxu1  ;;  %995 = vmatpush1.bf16.xpose.msra.mxu1 %v981_v18 }
 0x2a2   :  { %v742_v55 = vpop.f32.mrb[9].mxu1  ;;  %1873 = vmatpush1.bf16.msra.mxu0 %v1822_v45  ;;  %v4444_v14 = vpop.f32.mrb[32].mxu0  ;;  %996 = vmatprep.subr.bf16.mxu1 %v7680_v15  ;;  %v5653_v57 = vadd.f32 %v740_v20, %v5609_v61 }
 0x2a3   :  { %v744_v49 = vpop.f32.mrb[10].mxu1  ;;  %1874 = vmatprep.subr.bf16.mxu0 %v7680_v15  ;;  %v914_v53 = vadd.f32 %v4444_v14, %v5616_v7  ;;  %v905_v12 = vpop.f32.mrb[33].mxu0  ;;  %v743_v51 = vadd.f32 %v742_v55, %v5612_v63 }
 0x2a4   :  { %v5656_v42 = vadd.f32 %v744_v49, %v5609_v61  ;;  %v746_v13 = vpop.f32.mrb[11].mxu1  ;;  %v906_v0 = vadd.f32 %v905_v12, %v5616_v7  ;;  %v4445_v58 = vpop.f32.mrb[34].mxu0 }
 0x2a5   :  { %v747_v59 = vadd.f32 %v746_v13, %v5612_v63  ;;  %v917_v17 = vadd.f32 %v4445_v58, %v5616_v7  ;;  %v908_v18 = vpop.f32.mrb[35].mxu0 }
 0x2a6   :  { %1875 = vmatpush1.bf16.msra.mxu0 %v1823_v44  ;;  %v909_v20 = vadd.f32 %v908_v18, %v5616_v7 }
 0x2a7   :  { %v982_v14 = vpack.c.bf16 %v747_v59, %v743_v51  ;;  %v1825_v49 = vpack.c.bf16 %v917_v17, %v914_v53  ;;  %1876 = vmatprep.subr.bf16.mxu0 %v7680_v15 }
 0x2a8   :  { %v1824_v48 = vpack.c.bf16 %v909_v20, %v906_v0 }
 0x2a9   :  { %v750_v12 = vpop.f32.mrb[12].mxu1  ;;  %997 = vmatpush1.bf16.xpose.msra.mxu1 %v982_v14 }
 0x2aa   :  { %v752_v26 = vpop.f32.mrb[13].mxu1  ;;  %1877 = vmatpush1.bf16.msra.mxu0 %v1824_v48  ;;  %998 = vmatprep.subr.bf16.mxu1 %v7680_v15  ;;  %v4448_v55 = vpop.f32.mrb[36].mxu0  ;;  %v5670_v18 = vadd.f32 %v750_v12, %v5609_v61 }
 0x2ab   :  { %v754_v13 = vpop.f32.mrb[14].mxu1  ;;  %1878 = vmatprep.subr.bf16.mxu0 %v7680_v15  ;;  %v930_v58 = vadd.f32 %v4448_v55, %v5616_v7  ;;  %v921_v44 = vpop.f32.mrb[37].mxu0  ;;  %v753_v48 = vadd.f32 %v752_v26, %v5612_v63 }
 0x2ac   :  { %v5673_v53 = vadd.f32 %v754_v13, %v5609_v61  ;;  %v756_v0 = vpop.f32.mrb[15].mxu1  ;;  %v922_v51 = vadd.f32 %v921_v44, %v5616_v7  ;;  %v4449_v59 = vpop.f32.mrb[38].mxu0 }
 0x2ad   :  { %v757_v17 = vadd.f32 %v756_v0, %v5612_v63  ;;  %v933_v20 = vadd.f32 %v4449_v59, %v5616_v7  ;;  %v924_v14 = vpop.f32.mrb[39].mxu0 }
 0x2ae   :  { %1879 = vmatpush1.bf16.msra.mxu0 %v1825_v49  ;;  %v925_v12 = vadd.f32 %v924_v14, %v5616_v7 }
 0x2af   :  { %v983_v45 = vpack.c.bf16 %v757_v17, %v753_v48  ;;  %v1827_v13 = vpack.c.bf16 %v933_v20, %v930_v58  ;;  %1880 = vmatprep.subr.bf16.mxu0 %v7680_v15 }
 0x2b0   :  { %v1826_v16 = vpack.c.bf16 %v925_v12, %v922_v51 }
 0x2b1   :  { %v760_v44 = vpop.f32.mrb[16].mxu1  ;;  %999 = vmatpush1.bf16.xpose.msra.mxu1 %v983_v45 }
 0x2b2   :  { %v762_v39 = vpop.f32.mrb[17].mxu1  ;;  %1000 = vmatprep.subr.bf16.mxu1 %v7680_v15  ;;  %1881 = vmatpush1.bf16.msra.mxu0 %v1826_v16  ;;  %v4452_v26 = vpop.f32.mrb[40].mxu0  ;;  %v5687_v14 = vadd.f32 %v760_v44, %v5609_v61 }
 0x2b3   :  { %v764_v0 = vpop.f32.mrb[18].mxu1  ;;  %1882 = vmatprep.subr.bf16.mxu0 %v7680_v15  ;;  %v946_v59 = vadd.f32 %v4452_v26, %v5616_v7  ;;  %v937_v49 = vpop.f32.mrb[41].mxu0  ;;  %v763_v17 = vadd.f32 %v762_v39, %v5612_v63 }
 0x2b4   :  { %v5690_v58 = vadd.f32 %v764_v0, %v5609_v61  ;;  %v766_v51 = vpop.f32.mrb[19].mxu1  ;;  %v938_v45 = vadd.f32 %v937_v49, %v5616_v7  ;;  %v4453_v48 = vpop.f32.mrb[42].mxu0 }
 0x2b5   :  { %v767_v16 = vadd.f32 %v766_v51, %v5612_v63  ;;  %v949_v20 = vadd.f32 %v4453_v48, %v5616_v7  ;;  %v940_v12 = vpop.f32.mrb[43].mxu0 }
 0x2b6   :  { %1883 = vmatpush1.bf16.msra.mxu0 %v1827_v13  ;;  %v941_v44 = vadd.f32 %v940_v12, %v5616_v7 }
 0x2b7   :  { %v984_v55 = vpack.c.bf16 %v767_v16, %v763_v17  ;;  %v1829_v0 = vpack.c.bf16 %v949_v20, %v946_v59  ;;  %1884 = vmatprep.subr.bf16.mxu0 %v7680_v15 }
 0x2b8   :  { %v1828_v21 = vpack.c.bf16 %v941_v44, %v938_v45 }
 0x2b9   :  { %v770_v49 = vpop.f32.mrb[20].mxu1  ;;  %1001 = vmatpush1.bf16.xpose.msra.mxu1 %v984_v55 }
 0x2ba   :  { %v772_v6 = vpop.f32.mrb[21].mxu1  ;;  %1002 = vmatprep.subr.bf16.mxu1 %v7680_v15  ;;  %1885 = vmatpush1.bf16.msra.mxu0 %v1828_v21  ;;  %v4456_v39 = vpop.f32.mrb[44].mxu0  ;;  %v5704_v12 = vadd.f32 %v770_v49, %v5609_v61 }
 0x2bb   :  { %v774_v51 = vpop.f32.mrb[22].mxu1  ;;  %1886 = vmatprep.subr.bf16.mxu0 %v7680_v15  ;;  %v962_v48 = vadd.f32 %v4456_v39, %v5616_v7  ;;  %v953_v13 = vpop.f32.mrb[45].mxu0  ;;  %v773_v16 = vadd.f32 %v772_v6, %v5612_v63 }
 0x2bc   :  { %v5707_v59 = vadd.f32 %v774_v51, %v5609_v61  ;;  %v776_v45 = vpop.f32.mrb[23].mxu1  ;;  %v954_v55 = vadd.f32 %v953_v13, %v5616_v7  ;;  %v4457_v17 = vpop.f32.mrb[46].mxu0 }
 0x2bd   :  { %v777_v21 = vadd.f32 %v776_v45, %v5612_v63  ;;  %v965_v20 = vadd.f32 %v4457_v17, %v5616_v7  ;;  %v956_v44 = vpop.f32.mrb[47].mxu0 }
 0x2be   :  { %1887 = vmatpush1.bf16.msra.mxu0 %v1829_v0  ;;  %v957_v49 = vadd.f32 %v956_v44, %v5616_v7 }
 0x2bf   :  { %v985_v26 = vpack.c.bf16 %v777_v21, %v773_v16  ;;  %v1831_v51 = vpack.c.bf16 %v965_v20, %v962_v48  ;;  %1888 = vmatprep.subr.bf16.mxu0 %v7680_v15 }
 0x2c0   :  { %v1830_v60 = vpack.c.bf16 %v957_v49, %v954_v55 }
 0x2c1   :  { %v780_v13 = vpop.f32.mrb[24].mxu1  ;;  %1003 = vmatpush1.bf16.xpose.msra.mxu1 %v985_v26 }
 0x2c2   :  { %v782_v11 = vpop.f32.mrb[25].mxu1  ;;  %1004 = vmatprep.subr.bf16.mxu1 %v7680_v15  ;;  %1889 = vmatpush1.bf16.msra.mxu0 %v1830_v60  ;;  %v5720_v45 = vadd.f32 %v780_v13, %v5609_v61 }
 0x2c3   :  { %v784_v6 = vpop.f32.mrb[26].mxu1  ;;  %1890 = vmatprep.subr.bf16.mxu0 %v7680_v15  ;;  %v783_v48 = vadd.f32 %v782_v11, %v5612_v63 }
 0x2c4   :  { %v5723_v0 = vadd.f32 %v784_v6, %v5609_v61  ;;  %v786_v7 = vpop.f32.mrb[27].mxu1 }
 0x2c5   :  { %v787_v55 = vadd.f32 %v786_v7, %v5612_v63 }
 0x2c6   :  { %1891 = vmatpush1.bf16.msra.mxu0 %v1831_v51 }
 0x2c7   :  { %v986_v17 = vpack.c.bf16 %v787_v55, %v783_v48 }
 0x2c9   :  { %v790_v60 = vpop.f32.mrb[28].mxu1  ;;  %1005 = vmatpush1.bf16.xpose.msra.mxu1 %v986_v17 }
 0x2ca   :  { %v792_v16 = vpop.f32.mrb[29].mxu1  ;;  %1006 = vmatprep.subr.bf16.mxu1 %v7680_v15  ;;  %v5731_v20 = vadd.f32 %v790_v60, %v5609_v61 }
 0x2cb   :  { %v794_v21 = vpop.f32.mrb[30].mxu1  ;;  %v793_v49 = vadd.f32 %v792_v16, %v5612_v63 }
 0x2cc   :  { %v5734_v44 = vadd.f32 %v794_v21, %v5609_v61  ;;  %v796_v11 = vpop.f32.mrb[31].mxu1 }
 0x2cd   :  { %v797_v13 = vadd.f32 %v796_v11, %v5612_v63 }
 0x2cf   :  { %v987_v6 = vpack.c.bf16 %v797_v13, %v793_v49 }
 0x2d1   :  { %v800_v7 = vpop.f32.mrb[32].mxu1  ;;  %1007 = vmatpush1.bf16.xpose.msra.mxu1 %v987_v6 }
 0x2d2   :  { %v802_v48 = vpop.f32.mrb[33].mxu1  ;;  %1008 = vmatprep.subr.bf16.mxu1 %v7680_v15  ;;  %v801_v17 = vadd.f32 %v800_v7, %v5609_v61 }
 0x2d3   :  { %v804_v55 = vpop.f32.mrb[34].mxu1  ;;  %v803_v26 = vadd.f32 %v802_v48, %v5612_v63 }
 0x2d4   :  { %v805_v60 = vadd.f32 %v804_v55, %v5609_v61  ;;  %v806_v21 = vpop.f32.mrb[35].mxu1 }
 0x2d5   :  { %v807_v16 = vadd.f32 %v806_v21, %v5612_v63 }
 0x2d6   :  { %v976_v11 = vpack.c.bf16 %v805_v60, %v801_v17 }
 0x2d7   :  { %v988_v39 = vpack.c.bf16 %v807_v16, %v803_v26 }
 0x2d9   :  { %v810_v62 = vpop.f32.mrb[36].mxu1  ;;  %1009 = vmatpush1.bf16.xpose.msra.mxu1 %v988_v39 }
 0x2da   :  { %v812_v49 = vpop.f32.mrb[37].mxu1  ;;  %1010 = vmatprep.subr.bf16.mxu1 %v7680_v15  ;;  %v811_v6 = vadd.f32 %v810_v62, %v5609_v61 }
 0x2db   :  { %v814_v13 = vpop.f32.mrb[38].mxu1  ;;  %v813_v55 = vadd.f32 %v812_v49, %v5612_v63 }
 0x2dc   :  { %v815_v51 = vadd.f32 %v814_v13, %v5609_v61  ;;  %v816_v7 = vpop.f32.mrb[39].mxu1 }
 0x2dd   :  { %v817_v54 = vadd.f32 %v816_v7, %v5612_v63 }
 0x2de   :  { %v977_v48 = vpack.c.bf16 %v815_v51, %v811_v6 }
 0x2df   :  { %v989_v50 = vpack.c.bf16 %v817_v54, %v813_v55 }
 0x2e1   :  { %v820_v21 = vpop.f32.mrb[40].mxu1  ;;  %1011 = vmatpush1.bf16.xpose.msra.mxu1 %v989_v50 }
 0x2e2   :  { %v822_v26 = vpop.f32.mrb[41].mxu1  ;;  %1012 = vmatprep.subr.bf16.mxu1 %v7680_v15  ;;  %v821_v17 = vadd.f32 %v820_v21, %v5609_v61 }
 0x2e3   :  { %v824_v39 = vpop.f32.mrb[42].mxu1  ;;  %v823_v16 = vadd.f32 %v822_v26, %v5612_v63 }
 0x2e4   :  { %v825_v60 = vadd.f32 %v824_v39, %v5609_v61  ;;  %v826_v62 = vpop.f32.mrb[43].mxu1 }
 0x2e5   :  { %v827_v13 = vadd.f32 %v826_v62, %v5612_v63 }
 0x2e6   :  { %v978_v49 = vpack.c.bf16 %v825_v60, %v821_v17  ;;  %v7681_v17 = vpack.c.bf16 %v5622_v40, %v5619_v35  ;;  %v7686_v35 = vpack.c.bf16 %v5707_v59, %v5704_v12  ;;  %v7687_v40 = vpack.c.bf16 %v5723_v0, %v5720_v45 }
 0x2e7   :  { %v990_v56 = vpack.c.bf16 %v827_v13, %v823_v16  ;;  %v1205_v0 = vshra.s32 %v5258_v3, 3 }
 0x2e9   :  { %v830_v7 = vpop.f32.mrb[44].mxu1  ;;  %1013 = vmatpush1.bf16.xpose.msra.mxu1 %v990_v56  ;;  %v7682_v56 = vpack.c.bf16 %v5639_v47, %v5636_v23  ;;  %v7688_v23 = vpack.c.bf16 %v5734_v44, %v5731_v20  ;;  %v1278_v47 = vld [vmem:[%s7598_s1] sm:$0x3] }
 0x2ea   :  { %v832_v54 = vpop.f32.mrb[45].mxu1  ;;  %1014 = vmatprep.subr.bf16.mxu1 %v7680_v15  ;;  %v831_v51 = vadd.f32 %v830_v7, %v5609_v61  ;;  %vm1279_vm0 = vcmp.gt.f32.partialorder %v1278_v47, 0.5 }
 0x2eb   :  { %v834_v50 = vpop.f32.mrb[46].mxu1  ;;  %v833_v21 = vadd.f32 %v832_v54, %v5612_v63 }
 0x2ec   :  { %v835_v6 = vadd.f32 %v834_v50, %v5609_v61  ;;  %v836_v55 = vpop.f32.mrb[47].mxu1  ;;  %v7683_v61 = vpack.c.bf16 %v5656_v42, %v5653_v57  ;;  %v7689_v57 = vlaneseq  ;;  %v1206_v50 = vshra.s32 %v5261_v4, 3 }
 0x2ed   :  { %v837_v39 = vadd.f32 %v836_v55, %v5612_v63  ;;  %v7685_v63 = vpack.c.bf16 %v5690_v58, %v5687_v14  ;;  %v1204_v14 = vshra.s32 %v5252_v1, 3 }
 0x2ee   :  { %v979_v26 = vpack.c.bf16 %v835_v6, %v831_v51  ;;  %v5800_v42 = vand.u32 127, %v7689_v57 }
 0x2ef   :  { %v991_v52 = vpack.c.bf16 %v837_v39, %v833_v21  ;;  %v1207_v39 = vshra.s32 %v5264_v5, 3 }
 0x2f0   :  { %7690 = vst [vmem:[#allocation43_spill] sm:$0xff] %v5800_v42  ;;  %v5812_v59 = vshra.s32 %v5800_v42, 3 }
 0x2f1   :  { %1015 = vmatpush1.bf16.xpose.msra.mxu1 %v991_v52  ;;  %v7684_v52 = vpack.c.bf16 %v5673_v53, %v5670_v18  ;;  %v5803_v18 = vadd.s32 128, %v5800_v42  ;;  %v1280_v53 = vsel %vm1279_vm0, 1, %v7680_v15 }
 0x2f2   :  { %v1288_v12 = vrot.slane %v1280_v53, %v5323_v32  ;;  %v1284_v45 = vrot.slane %v1280_v53, %v5255_v2  ;;  %vm5826_vm3 = vcmp.eq.s32.totalorder %v1204_v14, %v5812_v59  ;;  %vm5844_vm7 = vcmp.eq.s32.totalorder %v1205_v0, %v5812_v59 }
 0x2f3   :  { %7691 = vst [vmem:[#allocation44_spill] sm:$0xff] %v5803_v18  ;;  %v5808_v58 = vshra.s32 %v5803_v18, 3  ;;  %vm5881_vm13 = vcmp.eq.s32.totalorder %v1206_v50, %v5812_v59  ;;  %vm5896_vm0 = vcmp.eq.s32.totalorder %v1207_v39, %v5812_v59 }
 0x2f4   :  { %vm5821_vm2 = vcmp.eq.s32.totalorder %v1288_v12, 1  ;;  %vm5830_vm4 = vcmp.eq.s32.totalorder %v1284_v45, 1 }
 0x2f5   :  { %vm5817_vm1 = vcmp.eq.s32.totalorder %v1204_v14, %v5808_v58  ;;  %vm5835_vm5 = vcmp.eq.s32.totalorder %v1205_v0, %v5808_v58  ;;  %vm1291_vm8 = vmand %vm5826_vm3, %vm5830_vm4  ;;  %vm5872_vm12 = vcmp.eq.s32.totalorder %v1206_v50, %v5808_v58  ;;  %vm5887_vm14 = vcmp.eq.s32.totalorder %v1207_v39, %v5808_v58 }
 0x2f6   :  { %vm1292_vm6 = vmand %vm5817_vm1, %vm5821_vm2  ;;  %v1208_v0 = vshra.s32 %v5273_v8, 3  ;;  %v1211_v14 = vshra.s32 %v5298_v19, 3  ;;  %v1212_v39 = vshra.s32 %v5301_v22, 3 }
 0x2f7   :  { %vm1294_vm10 = vmand %vm5835_vm5, %vm5821_vm2 }
 0x2f8   :  { %1025 = vmatmul.mubr.bf16.vlgmr.msra.gmra.mrb[48].mxu1 %v7681_v17  ;;  %vm1293_vm11 = vmand %vm5844_vm7, %vm5830_vm4  ;;  %vm5933_vm7 = vcmp.eq.s32.totalorder %v1208_v0, %v5812_v59 }
 0x2f9   :  { %1034 = vmatprep.mubr.bf16.mxu1 %v7680_v15  ;;  %vm1296_vm15 = vmand %vm5872_vm12, %vm5821_vm2 }
 0x2fa   :  { %vm1295_vm1 = vmand %vm5881_vm13, %vm5830_vm4 }
 0x2fb   :  { %vm1298_vm3 = vmand %vm5887_vm14, %vm5821_vm2 }
 0x2fc   :  { %vm1297_vm5 = vmand %vm5896_vm0, %vm5830_vm4 }
 0x2fd   :  { %vm1299_vm12 = vmand %vm5933_vm7, %vm5830_vm4 }
 0x300   :  { %1035 = vmatmul.mubr.bf16.gmra.mrb[52].mxu1 %v7682_v56 }
 0x301   :  { %1044 = vmatprep.mubr.bf16.mxu1 %v7680_v15 }
 0x308   :  { %1045 = vmatmul.mubr.bf16.gmra.mrb[56].mxu1 %v7683_v61 }
 0x309   :  { %1054 = vmatprep.mubr.bf16.mxu1 %v7680_v15 }
 0x310   :  { %1055 = vmatmul.mubr.bf16.gmra.mrb[60].mxu1 %v7684_v52 }
 0x311   :  { %1064 = vmatprep.mubr.bf16.mxu1 %v7680_v15 }
 0x318   :  { %1065 = vmatmul.mubr.bf16.gmra.mrb[64].mxu1 %v7685_v63 }
 0x319   :  { %1074 = vmatprep.mubr.bf16.mxu1 %v7680_v15 }
 0x320   :  { %1075 = vmatmul.mubr.bf16.gmra.mrb[68].mxu1 %v7686_v35 }
 0x321   :  { %1084 = vmatprep.mubr.bf16.mxu1 %v7680_v15 }
 0x328   :  { %1085 = vmatmul.mubr.bf16.gmra.mrb[72].mxu1 %v7687_v40 }
 0x329   :  { %1094 = vmatprep.mubr.bf16.mxu1 %v7680_v15 }
 0x330   :  { %1095 = vmatmul.mubr.bf16.gmra.mrb[76].mxu1 %v7688_v23 }
 0x331   :  { %1104 = vmatprep.mubr.bf16.mxu1 %v7680_v15 }
 0x338   :  { %1105 = vmatmul.mubr.bf16.gmra.mrb[80].mxu1 %v976_v11 }
 0x339   :  { %1114 = vmatprep.mubr.bf16.mxu1 %v7680_v15 }
 0x340   :  { %1115 = vmatmul.mubr.bf16.gmra.mrb[84].mxu1 %v977_v48 }
 0x341   :  { %1124 = vmatprep.mubr.bf16.mxu1 %v7680_v15 }
 0x348   :  { %1125 = vmatmul.mubr.bf16.gmra.mrb[88].mxu1 %v978_v49 }
 0x349   :  { %1134 = vmatprep.mubr.bf16.mxu1 %v7680_v15 }
 0x350   :  { %1135 = vmatmul.mubr.bf16.gmra.mrb[92].mxu1 %v979_v26 }
 0x351   :  { %2703 = vmatprep.mubr.bf16.mxu1 %v7680_v15 }
 0x3cb   :  { %v1026_v60 = vpop.f32.mrb[48].mxu1 }
 0x3cc   :  { %v1145_v16 = vmul.f32 0.088388346, %v1026_v60  ;;  %v1028_v13 = vpop.f32.mrb[49].mxu1 }
 0x3cd   :  { %v1146_v7 = vmul.f32 0.088388346, %v1028_v13  ;;  %v1030_v54 = vpop.f32.mrb[50].mxu1 }
 0x3ce   :  { %v1147_v51 = vmul.f32 0.088388346, %v1030_v54  ;;  %v1032_v6 = vpop.f32.mrb[51].mxu1  ;;  %v5864_v26 = vsel %vm1291_vm8, %v1145_v16, -1e+09  ;;  %v1209_v16 = vshra.s32 %v5276_v9, 3 }
 0x3cf   :  { %v5857_v55 = vsel %vm1292_vm6, %v1146_v7, -1e+09  ;;  %v1148_v21 = vmul.f32 0.088388346, %v1032_v6  ;;  %vm5924_vm6 = vcmp.eq.s32.totalorder %v1208_v0, %v5808_v58 }
 0x3d0   :  { %v1388_v17 = vsel %vm1387_vm9, %v5857_v55, -inf  ;;  %v5876_v63 = vsel %vm1293_vm11, %v1147_v51, -1e+09  ;;  %vm5939_vm8 = vcmp.eq.s32.totalorder %v1209_v16, %v5808_v58  ;;  %vm5948_vm11 = vcmp.eq.s32.totalorder %v1209_v16, %v5812_v59 }
 0x3d1   :  { %v5868_v56 = vsel %vm1294_vm10, %v1148_v21, -1e+09  ;;  %v1389_v61 = vmax.f32 %v5864_v26, %v1388_v17  ;;  %vm1300_vm10 = vmand %vm5924_vm6, %vm5821_vm2 }
 0x3d2   :  { %v1392_v35 = vsel %vm1387_vm9, %v5868_v56, -inf  ;;  %vm1302_vm13 = vmand %vm5939_vm8, %vm5821_vm2 }
 0x3d3   :  { %1390 = vmax.xlane.f32.xlu0 %v1389_v61  ;;  %v1036_v40 = vpop.f32.mrb[52].mxu1  ;;  %v1393_v23 = vmax.f32 %v5876_v63, %v1392_v35  ;;  %vm1301_vm14 = vmand %vm5948_vm11, %vm5830_vm4  ;;  %vm6037_vm11 = vcmp.eq.s32.totalorder %v1212_v39, %v5812_v59 }
 0x3d4   :  { %v1149_v57 = vmul.f32 0.088388346, %v1036_v40  ;;  %v1038_v53 = vpop.f32.mrb[53].mxu1  ;;  %v1210_v40 = vshra.s32 %v5279_v10, 3 }
 0x3d5   :  { %v1150_v12 = vmul.f32 0.088388346, %v1038_v53  ;;  %1394 = vmax.xlane.f32.xlu1 %v1393_v23  ;;  %v1040_v45 = vpop.f32.mrb[54].mxu1 }
 0x3d6   :  { %v1151_v20 = vmul.f32 0.088388346, %v1040_v45  ;;  %v1042_v11 = vpop.f32.mrb[55].mxu1  ;;  %v5916_v13 = vsel %vm1295_vm1, %v1149_v57, -1e+09  ;;  %vm5985_vm0 = vcmp.eq.s32.totalorder %v1210_v40, %v5812_v59  ;;  %vm5991_vm1 = vcmp.eq.s32.totalorder %v1211_v14, %v5808_v58 }
 0x3d7   :  { %v5909_v60 = vsel %vm1296_vm15, %v1150_v12, -1e+09  ;;  %v1152_v62 = vmul.f32 0.088388346, %v1042_v11  ;;  %vm5976_vm15 = vcmp.eq.s32.totalorder %v1210_v40, %v5808_v58  ;;  %vm1303_vm6 = vmand %vm5985_vm0, %vm5830_vm4 }
 0x3d8   :  { %v1396_v8 = vsel %vm1387_vm9, %v5909_v60, -inf  ;;  %v5928_v50 = vsel %vm1297_vm5, %v1151_v20, -1e+09  ;;  %vm6000_vm5 = vcmp.eq.s32.totalorder %v1211_v14, %v5812_v59  ;;  %vm1306_vm7 = vmand %vm5991_vm1, %vm5821_vm2 }
 0x3d9   :  { %v5920_v49 = vsel %vm1298_vm3, %v1152_v62, -1e+09  ;;  %v1397_v7 = vmax.f32 %v5916_v13, %v1396_v8  ;;  %vm1304_vm3 = vmand %vm5976_vm15, %vm5821_vm2 }
 0x3da   :  { %v1400_v51 = vsel %vm1387_vm9, %v5920_v49, -inf  ;;  %vm1305_vm8 = vmand %vm6000_vm5, %vm5830_vm4 }
 0x3db   :  { %1398 = vmax.xlane.f32.xlu0 %v1397_v7  ;;  %v1046_v6 = vpop.f32.mrb[56].mxu1  ;;  %v1401_v21 = vmax.f32 %v5928_v50, %v1400_v51  ;;  %vm1307_vm15 = vmand %vm6037_vm11, %vm5830_vm4 }
 0x3dc   :  { %v1153_v17 = vmul.f32 0.088388346, %v1046_v6  ;;  %v1048_v61 = vpop.f32.mrb[57].mxu1 }
 0x3dd   :  { %v1154_v35 = vmul.f32 0.088388346, %v1048_v61  ;;  %1402 = vmax.xlane.f32.xlu1 %v1401_v21  ;;  %v1050_v5 = vpop.f32.mrb[58].mxu1 }
 0x3de   :  { %v1155_v23 = vmul.f32 0.088388346, %v1050_v5  ;;  %v1052_v47 = vpop.f32.mrb[59].mxu1  ;;  %v5968_v12 = vsel %vm1299_vm12, %v1153_v17, -1e+09  ;;  %v1213_v5 = vshra.s32 %v5310_v25, 3 }
 0x3df   :  { %v5961_v57 = vsel %vm1300_vm10, %v1154_v35, -1e+09  ;;  %v1156_v53 = vmul.f32 0.088388346, %v1052_v47  ;;  %vm6028_vm10 = vcmp.eq.s32.totalorder %v1212_v39, %v5808_v58 }
 0x3e0   :  { %v1404_v10 = vsel %vm1387_vm9, %v5961_v57, -inf  ;;  %v5980_v11 = vsel %vm1301_vm14, %v1155_v23, -1e+09  ;;  %vm6043_vm12 = vcmp.eq.s32.totalorder %v1213_v5, %v5808_v58  ;;  %vm6052_vm14 = vcmp.eq.s32.totalorder %v1213_v5, %v5812_v59 }
 0x3e1   :  { %v5972_v45 = vsel %vm1302_vm13, %v1156_v53, -1e+09  ;;  %v1405_v0 = vmax.f32 %v5968_v12, %v1404_v10  ;;  %vm1308_vm13 = vmand %vm6028_vm10, %vm5821_vm2 }
 0x3e2   :  { %v1408_v62 = vsel %vm1387_vm9, %v5972_v45, -inf  ;;  %vm1310_vm0 = vmand %vm6043_vm12, %vm5821_vm2 }
 0x3e3   :  { %1406 = vmax.xlane.f32.xlu0 %v1405_v0  ;;  %v1056_v16 = vpop.f32.mrb[60].mxu1  ;;  %v1409_v8 = vmax.f32 %v5980_v11, %v1408_v62  ;;  %vm1309_vm1 = vmand %vm6052_vm14, %vm5830_vm4 }
 0x3e4   :  { %v1157_v54 = vmul.f32 0.088388346, %v1056_v16  ;;  %v1058_v51 = vpop.f32.mrb[61].mxu1 }
 0x3e5   :  { %v1158_v6 = vmul.f32 0.088388346, %v1058_v51  ;;  %1410 = vmax.xlane.f32.xlu1 %v1409_v8  ;;  %v1060_v21 = vpop.f32.mrb[62].mxu1  ;;  %v1214_v51 = vshra.s32 %v5313_v28, 3 }
 0x3e6   :  { %v1159_v17 = vmul.f32 0.088388346, %v1060_v21  ;;  %v1062_v61 = vpop.f32.mrb[63].mxu1  ;;  %v6020_v40 = vsel %vm1303_vm6, %v1157_v54, -1e+09 }
 0x3e7   :  { %v6013_v52 = vsel %vm1304_vm3, %v1158_v6, -1e+09  ;;  %v1160_v35 = vmul.f32 0.088388346, %v1062_v61  ;;  %vm6080_vm3 = vcmp.eq.s32.totalorder %v1214_v51, %v5808_v58  ;;  %vm6089_vm5 = vcmp.eq.s32.totalorder %v1214_v51, %v5812_v59 }
 0x3e8   :  { %v1412_v22 = vsel %vm1387_vm9, %v6013_v52, -inf  ;;  %v6032_v14 = vsel %vm1305_vm8, %v1159_v17, -1e+09  ;;  %v1215_v17 = vshra.s32 %v5316_v29, 3  ;;  %vm1311_vm10 = vmand %vm6089_vm5, %vm5830_vm4 }
 0x3e9   :  { %v6024_v23 = vsel %vm1306_vm7, %v1160_v35, -1e+09  ;;  %v1413_v47 = vmax.f32 %v6020_v40, %v1412_v22  ;;  %vm1312_vm7 = vmand %vm6080_vm3, %vm5821_vm2 }
 0x3ea   :  { %v1416_v10 = vsel %vm1387_vm9, %v6024_v23, -inf  ;;  %vm6095_vm6 = vcmp.eq.s32.totalorder %v1215_v17, %v5808_v58  ;;  %vm6104_vm8 = vcmp.eq.s32.totalorder %v1215_v17, %v5812_v59 }
 0x3eb   :  { %1414 = vmax.xlane.f32.xlu0 %v1413_v47  ;;  %v1066_v0 = vpop.f32.mrb[64].mxu1  ;;  %v1417_v20 = vmax.f32 %v6032_v14, %v1416_v10  ;;  %vm1314_vm11 = vmand %vm6095_vm6, %vm5821_vm2 }
 0x3ec   :  { %v1161_v19 = vmul.f32 0.088388346, %v1066_v0  ;;  %v1068_v16 = vpop.f32.mrb[65].mxu1  ;;  %vm1313_vm12 = vmand %vm6104_vm8, %vm5830_vm4 }
 0x3ed   :  { %v1162_v7 = vmul.f32 0.088388346, %v1068_v16  ;;  %1418 = vmax.xlane.f32.xlu1 %v1417_v20  ;;  %v1070_v54 = vpop.f32.mrb[66].mxu1 }
 0x3ee   :  { %v1163_v9 = vmul.f32 0.088388346, %v1070_v54  ;;  %v1072_v6 = vpop.f32.mrb[67].mxu1  ;;  %v6072_v61 = vsel %vm1307_vm15, %v1161_v19, -1e+09 }
 0x3ef   :  { %v6065_v21 = vsel %vm1308_vm13, %v1162_v7, -1e+09  ;;  %v1164_v39 = vmul.f32 0.088388346, %v1072_v6  ;;  %v1216_v7 = vshra.s32 %v5328_v33, 3 }
 0x3f0   :  { %v1420_v28 = vsel %vm1387_vm9, %v6065_v21, -inf  ;;  %v6084_v47 = vsel %vm1309_vm1, %v1163_v9, -1e+09 }
 0x3f1   :  { %v6076_v35 = vsel %vm1310_vm0, %v1164_v39, -1e+09  ;;  %v1421_v5 = vmax.f32 %v6072_v61, %v1420_v28  ;;  %v1217_v39 = vshra.s32 %v5331_v34, 3  ;;  %vm6132_vm13 = vcmp.eq.s32.totalorder %v1216_v7, %v5808_v58 }
 0x3f2   :  { %v1424_v53 = vsel %vm1387_vm9, %v6076_v35, -inf  ;;  %vm6141_vm14 = vcmp.eq.s32.totalorder %v1216_v7, %v5812_v59  ;;  %vm1316_vm0 = vmand %vm6132_vm13, %vm5821_vm2  ;;  %v1218_v7 = vshra.s32 %v5334_v36, 3 }
 0x3f3   :  { %1422 = vmax.xlane.f32.xlu0 %v1421_v5  ;;  %v1076_v10 = vpop.f32.mrb[68].mxu1  ;;  %v1425_v25 = vmax.f32 %v6084_v47, %v1424_v53  ;;  %vm6147_vm15 = vcmp.eq.s32.totalorder %v1217_v39, %v5808_v58  ;;  %vm6156_vm1 = vcmp.eq.s32.totalorder %v1217_v39, %v5812_v59  ;;  %vm1315_vm3 = vmand %vm6141_vm14, %vm5830_vm4 }
 0x3f4   :  { %v1165_v20 = vmul.f32 0.088388346, %v1076_v10  ;;  %v1078_v62 = vpop.f32.mrb[69].mxu1  ;;  %vm1318_vm5 = vmand %vm6147_vm15, %vm5821_vm2  ;;  %vm6194_vm8 = vcmp.eq.s32.totalorder %v1218_v7, %v5812_v59 }
 0x3f5   :  { %v1166_v16 = vmul.f32 0.088388346, %v1078_v62  ;;  %1426 = vmax.xlane.f32.xlu1 %v1425_v25  ;;  %v1080_v8 = vpop.f32.mrb[70].mxu1  ;;  %vm1317_vm6 = vmand %vm6156_vm1, %vm5830_vm4 }
 0x3f6   :  { %v1167_v54 = vmul.f32 0.088388346, %v1080_v8  ;;  %v1082_v51 = vpop.f32.mrb[71].mxu1  ;;  %v6124_v17 = vsel %vm1311_vm10, %v1165_v20, -1e+09  ;;  %vm1319_vm13 = vmand %vm6194_vm8, %vm5830_vm4 }
 0x3f7   :  { %v6117_v9 = vsel %vm1312_vm7, %v1166_v16, -1e+09  ;;  %v1168_v6 = vmul.f32 0.088388346, %v1082_v51  ;;  %vm6184_vm7 = vcmp.eq.s32.totalorder %v1218_v7, %v5808_v58 }
 0x3f8   :  { %v1428_v33 = vsel %vm1387_vm9, %v6117_v9, -inf  ;;  %v6136_v53 = vsel %vm1313_vm12, %v1167_v54, -1e+09 }
 0x3f9   :  { %v6128_v28 = vsel %vm1314_vm11, %v1168_v6, -1e+09  ;;  %v1429_v5 = vmax.f32 %v6124_v17, %v1428_v33  ;;  %v1219_v33 = vshra.s32 %v5337_v37, 3  ;;  %vm1320_vm11 = vmand %vm6184_vm7, %vm5821_vm2 }
 0x3fa   :  { %v1432_v29 = vsel %vm1387_vm9, %v6128_v28, -inf }
 0x3fb   :  { %1430 = vmax.xlane.f32.xlu0 %v1429_v5  ;;  %v1086_v10 = vpop.f32.mrb[72].mxu1  ;;  %v1433_v25 = vmax.f32 %v6136_v53, %v1432_v29  ;;  %vm6200_vm10 = vcmp.eq.s32.totalorder %v1219_v33, %v5808_v58  ;;  %vm6210_vm12 = vcmp.eq.s32.totalorder %v1219_v33, %v5812_v59 }
 0x3fc   :  { %v1169_v20 = vmul.f32 0.088388346, %v1086_v10  ;;  %v1088_v62 = vpop.f32.mrb[73].mxu1  ;;  %v1193_v10 = vadd.s32 128, %v5252_v1  ;;  %vm1322_vm14 = vmand %vm6200_vm10, %vm5821_vm2 }
 0x3fd   :  { %v1170_v16 = vmul.f32 0.088388346, %v1088_v62  ;;  %1434 = vmax.xlane.f32.xlu1 %v1433_v25  ;;  %v1090_v8 = vpop.f32.mrb[74].mxu1  ;;  %vm1321_vm15 = vmand %vm6210_vm12, %vm5830_vm4 }
 0x3fe   :  { %v1171_v54 = vmul.f32 0.088388346, %v1090_v8  ;;  %v1092_v51 = vpop.f32.mrb[75].mxu1  ;;  %v6176_v5 = vsel %vm1315_vm3, %v1169_v20, -1e+09 }
 0x3ff   :  { %v6169_v6 = vsel %vm1316_vm0, %v1170_v16, -1e+09  ;;  %v1172_v39 = vmul.f32 0.088388346, %v1092_v51  ;;  %v1194_v16 = vadd.s32 136, %v5252_v1 }
 0x400   :  { %v1436_v36 = vsel %vm1387_vm9, %v6169_v6, -inf  ;;  %v6189_v25 = vsel %vm1317_vm6, %v1171_v54, -1e+09 }
 0x401   :  { %v6180_v22 = vsel %vm1318_vm5, %v1172_v39, -1e+09  ;;  %v1437_v29 = vmax.f32 %v6176_v5, %v1436_v36  ;;  %v1220_v36 = vshra.s32 %v1193_v10, 3 }
 0x402   :  { %v1440_v37 = vsel %vm1387_vm9, %v6180_v22, -inf }
 0x403   :  { %1438 = vmax.xlane.f32.xlu0 %v1437_v29  ;;  %v1096_v20 = vpop.f32.mrb[76].mxu1  ;;  %v1441_v62 = vmax.f32 %v6189_v25, %v1440_v37  ;;  %vm6236_vm0 = vcmp.eq.s32.totalorder %v1220_v36, %v5808_v58  ;;  %vm6246_vm1 = vcmp.eq.s32.totalorder %v1220_v36, %v5812_v59 }
 0x404   :  { %v1173_v8 = vmul.f32 0.088388346, %v1096_v20  ;;  %v1098_v54 = vpop.f32.mrb[77].mxu1  ;;  %v1221_v20 = vshra.s32 %v1194_v16, 3  ;;  %vm1324_vm5 = vmand %vm6236_vm0, %vm5821_vm2 }
 0x405   :  { %v1174_v51 = vmul.f32 0.088388346, %v1098_v54  ;;  %1442 = vmax.xlane.f32.xlu1 %v1441_v62  ;;  %v1100_v39 = vpop.f32.mrb[78].mxu1  ;;  %vm1323_vm7 = vmand %vm6246_vm1, %vm5830_vm4 }
 0x406   :  { %v1175_v29 = vmul.f32 0.088388346, %v1100_v39  ;;  %v1102_v37 = vpop.f32.mrb[79].mxu1  ;;  %v6228_v62 = vsel %vm1319_vm13, %v1173_v8, -1e+09  ;;  %vm6252_vm3 = vcmp.eq.s32.totalorder %v1221_v20, %v5808_v58  ;;  %vm6262_vm6 = vcmp.eq.s32.totalorder %v1221_v20, %v5812_v59 }
 0x407   :  { %v6222_v33 = vsel %vm1320_vm11, %v1174_v51, -1e+09  ;;  %v1176_v34 = vmul.f32 0.088388346, %v1102_v37  ;;  %v1195_v51 = vadd.s32 144, %v5252_v1  ;;  %vm1326_vm8 = vmand %vm6252_vm3, %vm5821_vm2 }
 0x408   :  { %v1444_v10 = vsel %vm1387_vm9, %v6222_v33, -inf  ;;  %v6241_v39 = vsel %vm1321_vm15, %v1175_v29, -1e+09  ;;  %v1196_v29 = vadd.s32 152, %v5252_v1  ;;  %vm1325_vm10 = vmand %vm6262_vm6, %vm5830_vm4 }
 0x409   :  { %v6232_v0 = vsel %vm1322_vm14, %v1176_v34, -1e+09  ;;  %v1445_v54 = vmax.f32 %v6228_v62, %v1444_v10 }
 0x40a   :  { %v1448_v16 = vsel %vm1387_vm9, %v6232_v0, -inf }
 0x40b   :  { %1446 = vmax.xlane.f32.xlu0 %v1445_v54  ;;  %v1106_v7 = vpop.f32.mrb[80].mxu1  ;;  %v1449_v37 = vmax.f32 %v6241_v39, %v1448_v16 }
 0x40c   :  { %v1177_v10 = vmul.f32 0.088388346, %v1106_v7  ;;  %v1108_v4 = vpop.f32.mrb[81].mxu1  ;;  %v1222_v7 = vshra.s32 %v1195_v51, 3 }
 0x40d   :  { %v1178_v54 = vmul.f32 0.088388346, %v1108_v4  ;;  %1450 = vmax.xlane.f32.xlu1 %v1449_v37  ;;  %v1110_v16 = vpop.f32.mrb[82].mxu1  ;;  %v1223_v4 = vshra.s32 %v1196_v29, 3 }
 0x40e   :  { %v1179_v42 = vmul.f32 0.088388346, %v1110_v16  ;;  %v1112_v18 = vpop.f32.mrb[83].mxu1  ;;  %v6280_v37 = vsel %vm1323_vm7, %v1177_v10, -1e+09  ;;  %vm6288_vm11 = vcmp.eq.s32.totalorder %v1222_v7, %v5808_v58  ;;  %vm6298_vm12 = vcmp.eq.s32.totalorder %v1222_v7, %v5812_v59 }
 0x40f   :  { %v6274_v20 = vsel %vm1324_vm5, %v1178_v54, -1e+09  ;;  %v1180_v19 = vmul.f32 0.088388346, %v1112_v18  ;;  %v1197_v18 = vadd.s32 160, %v5252_v1  ;;  %vm6304_vm13 = vcmp.eq.s32.totalorder %v1223_v4, %v5808_v58  ;;  %vm1328_vm14 = vmand %vm6288_vm11, %vm5821_vm2 }
 0x410   :  { %v1452_v51 = vsel %vm1387_vm9, %v6274_v20, -inf  ;;  %v6293_v54 = vsel %vm1325_vm10, %v1179_v42, -1e+09  ;;  %v1198_v42 = vadd.s32 168, %v5252_v1  ;;  %vm6314_vm15 = vcmp.eq.s32.totalorder %v1223_v4, %v5812_v59  ;;  %vm1327_vm0 = vmand %vm6298_vm12, %vm5830_vm4 }
 0x411   :  { %v6284_v8 = vsel %vm1326_vm8, %v1180_v19, -1e+09  ;;  %v1453_v16 = vmax.f32 %v6280_v37, %v1452_v51  ;;  %vm1330_vm1 = vmand %vm6304_vm13, %vm5821_vm2 }
 0x412   :  { %v1456_v29 = vsel %vm1387_vm9, %v6284_v8, -inf  ;;  %vm1329_vm3 = vmand %vm6314_vm15, %vm5830_vm4 }
 0x413   :  { %1454 = vmax.xlane.f32.xlu0 %v1453_v16  ;;  %v1116_v36 = vpop.f32.mrb[84].mxu1  ;;  %v1457_v19 = vmax.f32 %v6293_v54, %v1456_v29 }
 0x414   :  { %v1181_v3 = vmul.f32 0.088388346, %v1116_v36  ;;  %v1118_v32 = vpop.f32.mrb[85].mxu1  ;;  %v1224_v36 = vshra.s32 %v1197_v18, 3 }
 0x415   :  { %v1182_v16 = vmul.f32 0.088388346, %v1118_v32  ;;  %1458 = vmax.xlane.f32.xlu1 %v1457_v19  ;;  %v1120_v29 = vpop.f32.mrb[86].mxu1  ;;  %v1225_v32 = vshra.s32 %v1198_v42, 3 }
 0x416   :  { %v1183_v15 = vmul.f32 0.088388346, %v1120_v29  ;;  %v1122_v38 = vpop.f32.mrb[87].mxu1  ;;  %v6332_v19 = vsel %vm1327_vm0, %v1181_v3, -1e+09  ;;  %vm6340_vm5 = vcmp.eq.s32.totalorder %v1224_v36, %v5808_v58  ;;  %vm6350_vm6 = vcmp.eq.s32.totalorder %v1224_v36, %v5812_v59 }
 0x417   :  { %v6326_v4 = vsel %vm1328_vm14, %v1182_v16, -1e+09  ;;  %v1184_v34 = vmul.f32 0.088388346, %v1122_v38  ;;  %v1199_v38 = vadd.s32 176, %v5252_v1  ;;  %vm6356_vm7 = vcmp.eq.s32.totalorder %v1225_v32, %v5808_v58  ;;  %vm1332_vm8 = vmand %vm6340_vm5, %vm5821_vm2 }
 0x418   :  { %v1460_v18 = vsel %vm1387_vm9, %v6326_v4, -inf  ;;  %v6345_v16 = vsel %vm1329_vm3, %v1183_v15, -1e+09  ;;  %v1200_v15 = vadd.s32 184, %v5252_v1  ;;  %vm6366_vm10 = vcmp.eq.s32.totalorder %v1225_v32, %v5812_v59  ;;  %vm1331_vm11 = vmand %vm6350_vm6, %vm5830_vm4 }
 0x419   :  { %v6336_v10 = vsel %vm1330_vm1, %v1184_v34, -1e+09  ;;  %v1461_v29 = vmax.f32 %v6332_v19, %v1460_v18  ;;  %vm1334_vm12 = vmand %vm6356_vm7, %vm5821_vm2 }
 0x41a   :  { %v1464_v3 = vsel %vm1387_vm9, %v6336_v10, -inf  ;;  %vm1333_vm13 = vmand %vm6366_vm10, %vm5830_vm4 }
 0x41b   :  { %1462 = vmax.xlane.f32.xlu0 %v1461_v29  ;;  %v1126_v7 = vpop.f32.mrb[88].mxu1  ;;  %v1465_v34 = vmax.f32 %v6345_v16, %v1464_v3 }
 0x41c   :  { %v1185_v41 = vmul.f32 0.088388346, %v1126_v7  ;;  %v1128_v46 = vpop.f32.mrb[89].mxu1  ;;  %v1226_v7 = vshra.s32 %v1199_v38, 3 }
 0x41d   :  { %v1186_v29 = vmul.f32 0.088388346, %v1128_v46  ;;  %1466 = vmax.xlane.f32.xlu1 %v1465_v34  ;;  %v1130_v3 = vpop.f32.mrb[90].mxu1  ;;  %v1227_v46 = vshra.s32 %v1200_v15, 3 }
 0x41e   :  { %v1187_v1 = vmul.f32 0.088388346, %v1130_v3  ;;  %v1132_v43 = vpop.f32.mrb[91].mxu1  ;;  %v6384_v34 = vsel %vm1331_vm11, %v1185_v41, -1e+09  ;;  %vm6392_vm14 = vcmp.eq.s32.totalorder %v1226_v7, %v5808_v58  ;;  %vm6401_vm15 = vcmp.eq.s32.totalorder %v1226_v7, %v5812_v59 }
 0x41f   :  { %v6378_v32 = vsel %vm1332_vm8, %v1186_v29, -1e+09  ;;  %v1188_v51 = vmul.f32 0.088388346, %v1132_v43  ;;  %vm6407_vm0 = vcmp.eq.s32.totalorder %v1227_v46, %v5808_v58  ;;  %vm1336_vm1 = vmand %vm6392_vm14, %vm5821_vm2  ;;  %vm6416_vm3 = vcmp.eq.s32.totalorder %v1227_v46, %v5812_v59 }
 0x420   :  { %v1468_v38 = vsel %vm1387_vm9, %v6378_v32, -inf  ;;  %v6396_v43 = vsel %vm1333_vm13, %v1187_v1, -1e+09  ;;  %vm1335_vm5 = vmand %vm6401_vm15, %vm5830_vm4 }
 0x421   :  { %v6388_v42 = vsel %vm1334_vm12, %v1188_v51, -1e+09  ;;  %v1469_v3 = vmax.f32 %v6384_v34, %v1468_v38  ;;  %vm1338_vm6 = vmand %vm6407_vm0, %vm5821_vm2  ;;  %vm3973_vm0 = vcmask 64512  }
 0x422   :  { %v1472_v36 = vsel %vm1387_vm9, %v6388_v42, -inf  ;;  %vm1337_vm7 = vmand %vm6416_vm3, %vm5830_vm4 }
 0x423   :  { %1470 = vmax.xlane.f32.xlu0 %v1469_v3  ;;  %v1136_v15 = vpop.f32.mrb[92].mxu1  ;;  %v1473_v29 = vmax.f32 %v6396_v43, %v1472_v36 }
 0x424   :  { %v1189_v38 = vmul.f32 0.088388346, %v1136_v15  ;;  %v1138_v1 = vpop.f32.mrb[93].mxu1 }
 0x425   :  { %v1190_v3 = vmul.f32 0.088388346, %v1138_v1  ;;  %1474 = vmax.xlane.f32.xlu1 %v1473_v29  ;;  %v1140_v36 = vpop.f32.mrb[94].mxu1 }
 0x426   :  { %v1191_v58 = vmul.f32 0.088388346, %v1140_v36  ;;  %v1142_v15 = vpop.f32.mrb[95].mxu1  ;;  %v6434_v46 = vsel %vm1335_vm5, %v1189_v38, -1e+09 }
 0x427   :  { %v6428_v18 = vsel %vm1336_vm1, %v1190_v3, -1e+09  ;;  %v1192_v59 = vmul.f32 0.088388346, %v1142_v15 }
 0x428   :  { %v1476_v41 = vsel %vm1387_vm9, %v6428_v18, -inf  ;;  %v6441_v1 = vsel %vm1337_vm7, %v1191_v58, -1e+09 }
 0x429   :  { %v6438_v29 = vsel %vm1338_vm6, %v1192_v59, -1e+09  ;;  %v1477_v44 = vmax.f32 %v6434_v46, %v1476_v41 }
 0x42a   :  { %v1480_v51 = vsel %vm1387_vm9, %v6438_v29, -inf }
 0x42b   :  { %1478 = vmax.xlane.f32.xlu0 %v1477_v44  ;;  %v1481_v48 = vmax.f32 %v6441_v1, %v1480_v51 }
 0x42d   :  { %1482 = vmax.xlane.f32.xlu1 %v1481_v48 }
 0x460   :  { %v1391_v7 = vpop.xlane.xlu0 %1390 }
 0x461   :  { %v1484_v38 = vsub.f32 %v5864_v26, %v1391_v7  ;;  %v1485_v3 = vsub.f32 %v5857_v55, %v1391_v7 }
 0x462   :  { %v1395_v36 = vpop.xlane.xlu1 %1394 }
 0x463   :  { %v1532_v15 = vmul.f32 1.442695, %v1484_v38  ;;  %v1534_v59 = vmul.f32 1.442695, %v1485_v3  ;;  %v1486_v24 = vsub.f32 %v5876_v63, %v1395_v36  ;;  %v1487_v58 = vsub.f32 %v5868_v56, %v1395_v36 }
 0x465   :  { %4663 = vpow2.f32 %v1532_v15  ;;  %v1536_v41 = vmul.f32 1.442695, %v1486_v24  ;;  %v1538_v31 = vmul.f32 1.442695, %v1487_v58 }
 0x466   :  { %4665 = vpow2.f32 %v1534_v59 }
 0x467   :  { %4667 = vpow2.f32 %v1536_v41 }
 0x468   :  { %4669 = vpow2.f32 %v1538_v31  ;;  %v1399_v44 = vpop.xlane.xlu0 %1398 }
 0x469   :  { %v1488_v51 = vsub.f32 %v5916_v13, %v1399_v44  ;;  %v1489_v26 = vsub.f32 %v5909_v60, %v1399_v44 }
 0x46a   :  { %v1403_v48 = vpop.xlane.xlu1 %1402 }
 0x46b   :  { %v1540_v55 = vmul.f32 1.442695, %v1488_v51  ;;  %v1542_v7 = vmul.f32 1.442695, %v1489_v26  ;;  %v1490_v38 = vsub.f32 %v5928_v50, %v1403_v48  ;;  %v1491_v63 = vsub.f32 %v5920_v49, %v1403_v48 }
 0x46d   :  { %4671 = vpow2.f32 %v1540_v55  ;;  %v1544_v56 = vmul.f32 1.442695, %v1490_v38  ;;  %v1546_v3 = vmul.f32 1.442695, %v1491_v63 }
 0x46e   :  { %4673 = vpow2.f32 %v1542_v7 }
 0x46f   :  { %v6454_v24 = vpop.eup %4663  ;;  %4675 = vpow2.f32 %v1544_v56 }
 0x470   :  { %v6456_v31 = vpop.eup %4665  ;;  %4677 = vpow2.f32 %v1546_v3  ;;  %v1407_v13 = vpop.xlane.xlu0 %1406 }
 0x471   :  { %v6458_v36 = vpop.eup %4667  ;;  %v1492_v60 = vsub.f32 %v5968_v12, %v1407_v13  ;;  %v1493_v15 = vsub.f32 %v5961_v57, %v1407_v13  ;;  %v1628_v49 = vsel %vm1387_vm9, %v6456_v31, 0.0 }
 0x472   :  { %v6464_v50 = vpop.eup %4669  ;;  %v1411_v59 = vpop.xlane.xlu1 %1410  ;;  %v1629_v58 = vadd.f32 %v6454_v24, %v1628_v49 }
 0x473   :  { %v1548_v41 = vmul.f32 1.442695, %v1492_v60  ;;  %v1550_v44 = vmul.f32 1.442695, %v1493_v15  ;;  %v1494_v51 = vsub.f32 %v5980_v11, %v1411_v59  ;;  %v1495_v26 = vsub.f32 %v5972_v45, %v1411_v59 }
 0x474   :  { %1630 = vadd.xlane.f32.xlu0 %v1629_v58  ;;  %v1632_v12 = vsel %vm1387_vm9, %v6464_v50, 0.0 }
 0x475   :  { %4679 = vpow2.f32 %v1548_v41  ;;  %v1552_v57 = vmul.f32 1.442695, %v1494_v51  ;;  %v1554_v48 = vmul.f32 1.442695, %v1495_v26  ;;  %v1633_v55 = vadd.f32 %v6458_v36, %v1632_v12 }
 0x476   :  { %4681 = vpow2.f32 %v1550_v44 }
 0x477   :  { %v6472_v7 = vpop.eup %4671  ;;  %4683 = vpow2.f32 %v1552_v57  ;;  %1634 = vadd.xlane.f32.xlu1 %v1633_v55 }
 0x478   :  { %v6474_v38 = vpop.eup %4673  ;;  %4685 = vpow2.f32 %v1554_v48  ;;  %v1415_v11 = vpop.xlane.xlu0 %1414 }
 0x479   :  { %v6476_v63 = vpop.eup %4675  ;;  %v1496_v45 = vsub.f32 %v6020_v40, %v1415_v11  ;;  %v1497_v56 = vsub.f32 %v6013_v52, %v1415_v11  ;;  %v1636_v3 = vsel %vm1387_vm9, %v6474_v38, 0.0 }
 0x47a   :  { %v6482_v13 = vpop.eup %4677  ;;  %v1419_v60 = vpop.xlane.xlu1 %1418  ;;  %v1637_v15 = vadd.f32 %v6472_v7, %v1636_v3 }
 0x47b   :  { %v1556_v49 = vmul.f32 1.442695, %v1496_v45  ;;  %v1558_v59 = vmul.f32 1.442695, %v1497_v56  ;;  %v1498_v58 = vsub.f32 %v6032_v14, %v1419_v60  ;;  %v1499_v41 = vsub.f32 %v6024_v23, %v1419_v60 }
 0x47c   :  { %1638 = vadd.xlane.f32.xlu0 %v1637_v15  ;;  %v1640_v40 = vsel %vm1387_vm9, %v6482_v13, 0.0 }
 0x47d   :  { %4687 = vpow2.f32 %v1556_v49  ;;  %v1560_v52 = vmul.f32 1.442695, %v1498_v58  ;;  %v1562_v44 = vmul.f32 1.442695, %v1499_v41  ;;  %v1641_v51 = vadd.f32 %v6476_v63, %v1640_v40 }
 0x47e   :  { %4689 = vpow2.f32 %v1558_v59 }
 0x47f   :  { %v6490_v26 = vpop.eup %4679  ;;  %4691 = vpow2.f32 %v1560_v52  ;;  %1642 = vadd.xlane.f32.xlu1 %v1641_v51 }
 0x480   :  { %v6492_v12 = vpop.eup %4681  ;;  %4693 = vpow2.f32 %v1562_v44  ;;  %v1423_v14 = vpop.xlane.xlu0 %1422 }
 0x481   :  { %v6494_v57 = vpop.eup %4683  ;;  %v1500_v23 = vsub.f32 %v6072_v61, %v1423_v14  ;;  %v1501_v48 = vsub.f32 %v6065_v21, %v1423_v14  ;;  %v1644_v55 = vsel %vm1387_vm9, %v6492_v12, 0.0 }
 0x482   :  { %v6500_v11 = vpop.eup %4685  ;;  %v1427_v45 = vpop.xlane.xlu1 %1426  ;;  %v1645_v56 = vadd.f32 %v6490_v26, %v1644_v55 }
 0x483   :  { %v1564_v3 = vmul.f32 1.442695, %v1500_v23  ;;  %v1566_v60 = vmul.f32 1.442695, %v1501_v48  ;;  %v1502_v15 = vsub.f32 %v6084_v47, %v1427_v45  ;;  %v1503_v49 = vsub.f32 %v6076_v35, %v1427_v45 }
 0x484   :  { %1646 = vadd.xlane.f32.xlu0 %v1645_v56  ;;  %v1648_v61 = vsel %vm1387_vm9, %v6500_v11, 0.0 }
 0x485   :  { %4695 = vpow2.f32 %v1564_v3  ;;  %v1568_v21 = vmul.f32 1.442695, %v1502_v15  ;;  %v1570_v59 = vmul.f32 1.442695, %v1503_v49  ;;  %v1649_v58 = vadd.f32 %v6494_v57, %v1648_v61 }
 0x486   :  { %4697 = vpow2.f32 %v1566_v60 }
 0x487   :  { %v6508_v41 = vpop.eup %4687  ;;  %4699 = vpow2.f32 %v1568_v21  ;;  %1650 = vadd.xlane.f32.xlu1 %v1649_v58 }
 0x488   :  { %v6510_v40 = vpop.eup %4689  ;;  %4701 = vpow2.f32 %v1570_v59  ;;  %v1431_v47 = vpop.xlane.xlu0 %1430 }
 0x489   :  { %v6512_v52 = vpop.eup %4691  ;;  %v1504_v35 = vsub.f32 %v6124_v17, %v1431_v47  ;;  %v1505_v44 = vsub.f32 %v6117_v9, %v1431_v47  ;;  %v1652_v51 = vsel %vm1387_vm9, %v6510_v40, 0.0 }
 0x48a   :  { %v6518_v14 = vpop.eup %4693  ;;  %v1435_v23 = vpop.xlane.xlu1 %1434  ;;  %v1653_v48 = vadd.f32 %v6508_v41, %v1652_v51 }
 0x48b   :  { %v1572_v55 = vmul.f32 1.442695, %v1504_v35  ;;  %v1574_v45 = vmul.f32 1.442695, %v1505_v44  ;;  %v1506_v56 = vsub.f32 %v6136_v53, %v1435_v23  ;;  %v1507_v3 = vsub.f32 %v6128_v28, %v1435_v23 }
 0x48c   :  { %1654 = vadd.xlane.f32.xlu0 %v1653_v48  ;;  %v1656_v17 = vsel %vm1387_vm9, %v6518_v14, 0.0 }
 0x48d   :  { %4703 = vpow2.f32 %v1572_v55  ;;  %v1576_v9 = vmul.f32 1.442695, %v1506_v56  ;;  %v1578_v60 = vmul.f32 1.442695, %v1507_v3  ;;  %v1657_v15 = vadd.f32 %v6512_v52, %v1656_v17 }
 0x48e   :  { %4705 = vpow2.f32 %v1574_v45 }
 0x48f   :  { %v6526_v49 = vpop.eup %4695  ;;  %4707 = vpow2.f32 %v1576_v9  ;;  %1658 = vadd.xlane.f32.xlu1 %v1657_v15 }
 0x490   :  { %v6528_v61 = vpop.eup %4697  ;;  %4709 = vpow2.f32 %v1578_v60  ;;  %v1439_v53 = vpop.xlane.xlu0 %1438 }
 0x491   :  { %v6530_v21 = vpop.eup %4699  ;;  %v1508_v28 = vsub.f32 %v6176_v5, %v1439_v53  ;;  %v1509_v59 = vsub.f32 %v6169_v6, %v1439_v53  ;;  %v1660_v58 = vsel %vm1387_vm9, %v6528_v61, 0.0 }
 0x492   :  { %v6536_v47 = vpop.eup %4701  ;;  %v1443_v35 = vpop.xlane.xlu1 %1442  ;;  %v1661_v44 = vadd.f32 %v6526_v49, %v1660_v58 }
 0x493   :  { %v1580_v51 = vmul.f32 1.442695, %v1508_v28  ;;  %v1582_v23 = vmul.f32 1.442695, %v1509_v59  ;;  %v1510_v48 = vsub.f32 %v6189_v25, %v1443_v35  ;;  %v1511_v55 = vsub.f32 %v6180_v22, %v1443_v35 }
 0x494   :  { %1662 = vadd.xlane.f32.xlu0 %v1661_v44  ;;  %v1664_v5 = vsel %vm1387_vm9, %v6536_v47, 0.0 }
 0x495   :  { %4711 = vpow2.f32 %v1580_v51  ;;  %v1584_v6 = vmul.f32 1.442695, %v1510_v48  ;;  %v1586_v45 = vmul.f32 1.442695, %v1511_v55  ;;  %v1665_v56 = vadd.f32 %v6530_v21, %v1664_v5 }
 0x496   :  { %4713 = vpow2.f32 %v1582_v23 }
 0x497   :  { %v6544_v3 = vpop.eup %4703  ;;  %4715 = vpow2.f32 %v1584_v6  ;;  %1666 = vadd.xlane.f32.xlu1 %v1665_v56 }
 0x498   :  { %v6546_v17 = vpop.eup %4705  ;;  %4717 = vpow2.f32 %v1586_v45  ;;  %v1447_v25 = vpop.xlane.xlu0 %1446 }
 0x499   :  { %v6548_v9 = vpop.eup %4707  ;;  %v1512_v22 = vsub.f32 %v6228_v62, %v1447_v25  ;;  %v1513_v60 = vsub.f32 %v6222_v33, %v1447_v25  ;;  %v1668_v15 = vsel %vm1387_vm9, %v6546_v17, 0.0 }
 0x49a   :  { %v6554_v53 = vpop.eup %4709  ;;  %v1451_v28 = vpop.xlane.xlu1 %1450  ;;  %v1669_v59 = vadd.f32 %v6544_v3, %v1668_v15 }
 0x49b   :  { %v1588_v58 = vmul.f32 1.442695, %v1512_v22  ;;  %v1590_v35 = vmul.f32 1.442695, %v1513_v60  ;;  %v1514_v44 = vsub.f32 %v6241_v39, %v1451_v28  ;;  %v1515_v51 = vsub.f32 %v6232_v0, %v1451_v28 }
 0x49c   :  { %1670 = vadd.xlane.f32.xlu0 %v1669_v59  ;;  %v1672_v62 = vsel %vm1387_vm9, %v6554_v53, 0.0 }
 0x49d   :  { %4719 = vpow2.f32 %v1588_v58  ;;  %v1592_v33 = vmul.f32 1.442695, %v1514_v44  ;;  %v1594_v23 = vmul.f32 1.442695, %v1515_v51  ;;  %v1673_v48 = vadd.f32 %v6548_v9, %v1672_v62 }
 0x49e   :  { %4721 = vpow2.f32 %v1590_v35 }
 0x49f   :  { %v6562_v55 = vpop.eup %4711  ;;  %4723 = vpow2.f32 %v1592_v33  ;;  %1674 = vadd.xlane.f32.xlu1 %v1673_v48 }
 0x4a0   :  { %v6564_v5 = vpop.eup %4713  ;;  %4725 = vpow2.f32 %v1594_v23  ;;  %v1455_v39 = vpop.xlane.xlu0 %1454 }
 0x4a1   :  { %v6566_v6 = vpop.eup %4715  ;;  %v1516_v0 = vsub.f32 %v6280_v37, %v1455_v39  ;;  %v1517_v45 = vsub.f32 %v6274_v20, %v1455_v39  ;;  %v1676_v56 = vsel %vm1387_vm9, %v6564_v5, 0.0 }
 0x4a2   :  { %v6572_v25 = vpop.eup %4717  ;;  %v1459_v22 = vpop.xlane.xlu1 %1458  ;;  %v1677_v60 = vadd.f32 %v6562_v55, %v1676_v56 }
 0x4a3   :  { %v1596_v15 = vmul.f32 1.442695, %v1516_v0  ;;  %v1598_v28 = vmul.f32 1.442695, %v1517_v45  ;;  %v1518_v59 = vsub.f32 %v6293_v54, %v1459_v22  ;;  %v1519_v58 = vsub.f32 %v6284_v8, %v1459_v22 }
 0x4a4   :  { %1678 = vadd.xlane.f32.xlu0 %v1677_v60  ;;  %v1680_v37 = vsel %vm1387_vm9, %v6572_v25, 0.0 }
 0x4a5   :  { %4727 = vpow2.f32 %v1596_v15  ;;  %v1600_v20 = vmul.f32 1.442695, %v1518_v59  ;;  %v1602_v35 = vmul.f32 1.442695, %v1519_v58  ;;  %v1681_v44 = vadd.f32 %v6566_v6, %v1680_v37 }
 0x4a6   :  { %4729 = vpow2.f32 %v1598_v28 }
 0x4a7   :  { %v6580_v51 = vpop.eup %4719  ;;  %4731 = vpow2.f32 %v1600_v20  ;;  %1682 = vadd.xlane.f32.xlu1 %v1681_v44 }
 0x4a8   :  { %v6582_v62 = vpop.eup %4721  ;;  %4733 = vpow2.f32 %v1602_v35  ;;  %v1463_v54 = vpop.xlane.xlu0 %1462 }
 0x4a9   :  { %v6584_v33 = vpop.eup %4723  ;;  %v1520_v8 = vsub.f32 %v6332_v19, %v1463_v54  ;;  %v1521_v23 = vsub.f32 %v6326_v4, %v1463_v54  ;;  %v1684_v48 = vsel %vm1387_vm9, %v6582_v62, 0.0 }
 0x4aa   :  { %v6590_v39 = vpop.eup %4725  ;;  %v1467_v0 = vpop.xlane.xlu1 %1466  ;;  %v1685_v45 = vadd.f32 %v6580_v51, %v1684_v48 }
 0x4ab   :  { %v1604_v56 = vmul.f32 1.442695, %v1520_v8  ;;  %v1606_v22 = vmul.f32 1.442695, %v1521_v23  ;;  %v1522_v60 = vsub.f32 %v6345_v16, %v1467_v0  ;;  %v1523_v15 = vsub.f32 %v6336_v10, %v1467_v0 }
 0x4ac   :  { %1686 = vadd.xlane.f32.xlu0 %v1685_v45  ;;  %v1688_v19 = vsel %vm1387_vm9, %v6590_v39, 0.0 }
 0x4ad   :  { %4735 = vpow2.f32 %v1604_v56  ;;  %v1608_v4 = vmul.f32 1.442695, %v1522_v60  ;;  %v1610_v28 = vmul.f32 1.442695, %v1523_v15  ;;  %v1689_v59 = vadd.f32 %v6584_v33, %v1688_v19 }
 0x4ae   :  { %4737 = vpow2.f32 %v1606_v22 }
 0x4af   :  { %v6598_v58 = vpop.eup %4727  ;;  %4739 = vpow2.f32 %v1608_v4  ;;  %1690 = vadd.xlane.f32.xlu1 %v1689_v59 }
 0x4b0   :  { %v6600_v37 = vpop.eup %4729  ;;  %4741 = vpow2.f32 %v1610_v28  ;;  %v1471_v16 = vpop.xlane.xlu0 %1470 }
 0x4b1   :  { %v6602_v20 = vpop.eup %4731  ;;  %v1524_v10 = vsub.f32 %v6384_v34, %v1471_v16  ;;  %v1525_v35 = vsub.f32 %v6378_v32, %v1471_v16  ;;  %v1692_v44 = vsel %vm1387_vm9, %v6600_v37, 0.0 }
 0x4b2   :  { %v6608_v54 = vpop.eup %4733  ;;  %v1475_v8 = vpop.xlane.xlu1 %1474  ;;  %v1693_v23 = vadd.f32 %v6598_v58, %v1692_v44 }
 0x4b3   :  { %v1612_v48 = vmul.f32 1.442695, %v1524_v10  ;;  %v1614_v0 = vmul.f32 1.442695, %v1525_v35  ;;  %v1526_v45 = vsub.f32 %v6396_v43, %v1475_v8  ;;  %v1527_v56 = vsub.f32 %v6388_v42, %v1475_v8 }
 0x4b4   :  { %1694 = vadd.xlane.f32.xlu0 %v1693_v23  ;;  %v1696_v34 = vsel %vm1387_vm9, %v6608_v54, 0.0 }
 0x4b5   :  { %4743 = vpow2.f32 %v1612_v48  ;;  %v1616_v32 = vmul.f32 1.442695, %v1526_v45  ;;  %v1618_v22 = vmul.f32 1.442695, %v1527_v56  ;;  %v1697_v60 = vadd.f32 %v6602_v20, %v1696_v34 }
 0x4b6   :  { %4745 = vpow2.f32 %v1614_v0 }
 0x4b7   :  { %v6616_v15 = vpop.eup %4735  ;;  %4747 = vpow2.f32 %v1616_v32  ;;  %1698 = vadd.xlane.f32.xlu1 %v1697_v60 }
 0x4b8   :  { %v6618_v19 = vpop.eup %4737  ;;  %4749 = vpow2.f32 %v1618_v22  ;;  %v1479_v43 = vpop.xlane.xlu0 %1478 }
 0x4b9   :  { %v6620_v4 = vpop.eup %4739  ;;  %v1528_v42 = vsub.f32 %v6434_v46, %v1479_v43  ;;  %v1529_v28 = vsub.f32 %v6428_v18, %v1479_v43  ;;  %v1700_v59 = vsel %vm1387_vm9, %v6618_v19, 0.0 }
 0x4ba   :  { %v6626_v16 = vpop.eup %4741  ;;  %v1483_v10 = vpop.xlane.xlu1 %1482  ;;  %v1701_v35 = vadd.f32 %v6616_v15, %v1700_v59 }
 0x4bb   :  { %v1620_v44 = vmul.f32 1.442695, %v1528_v42  ;;  %v1622_v8 = vmul.f32 1.442695, %v1529_v28  ;;  %v1530_v23 = vsub.f32 %v6441_v1, %v1483_v10  ;;  %v1531_v48 = vsub.f32 %v6438_v29, %v1483_v10 }
 0x4bc   :  { %1702 = vadd.xlane.f32.xlu0 %v1701_v35  ;;  %v1704_v46 = vsel %vm1387_vm9, %v6626_v16, 0.0 }
 0x4bd   :  { %4751 = vpow2.f32 %v1620_v44  ;;  %v1624_v18 = vmul.f32 1.442695, %v1530_v23  ;;  %v1626_v0 = vmul.f32 1.442695, %v1531_v48  ;;  %v1705_v45 = vadd.f32 %v6620_v4, %v1704_v46  ;;  %v4583_v48 = vld [vmem:[#allocation4] sm:$0xff]  }
 0x4be   :  { %4753 = vpow2.f32 %v1622_v8  ;;  %4458 = vmatprep.subr.bf16.mxu0 %v4583_v48 }
 0x4bf   :  { %v6634_v56 = vpop.eup %4743  ;;  %4755 = vpow2.f32 %v1624_v18  ;;  %1706 = vadd.xlane.f32.xlu1 %v1705_v45 }
 0x4c0   :  { %v6636_v34 = vpop.eup %4745  ;;  %4757 = vpow2.f32 %v1626_v0 }
 0x4c1   :  { %v6638_v1 = vpop.eup %4747  ;;  %v1708_v29 = vsel %vm1387_vm9, %v6636_v34, 0.0 }
 0x4c2   :  { %v6642_v32 = vpop.eup %4749  ;;  %v1709_v22 = vadd.f32 %v6634_v56, %v1708_v29 }
 0x4c3   :  { %v1712_v60 = vsel %vm1387_vm9, %v6642_v32, 0.0 }
 0x4c4   :  { %1710 = vadd.xlane.f32.xlu0 %v1709_v22  ;;  %v1713_v43 = vadd.f32 %v6638_v1, %v1712_v60 }
 0x4c6   :  { %1714 = vadd.xlane.f32.xlu1 %v1713_v43 }
 0x4c7   :  { %v6648_v42 = vpop.eup %4751 }
 0x4c8   :  { %v6650_v28 = vpop.eup %4753 }
 0x4c9   :  { %v6652_v59 = vpop.eup %4755  ;;  %v1716_v10 = vsel %vm1387_vm9, %v6650_v28, 0.0 }
 0x4ca   :  { %v6656_v35 = vpop.eup %4757  ;;  %v1717_v44 = vadd.f32 %v6648_v42, %v1716_v10 }
 0x4cb   :  { %v1720_v8 = vsel %vm1387_vm9, %v6656_v35, 0.0 }
 0x4cc   :  { %1718 = vadd.xlane.f32.xlu0 %v1717_v44  ;;  %v1721_v23 = vadd.f32 %v6652_v59, %v1720_v8 }
 0x4ce   :  { %1722 = vadd.xlane.f32.xlu1 %v1721_v23 }
 0x501   :  { %v1631_v46 = vpop.xlane.xlu0 %1630 }
 0x502   :  { %4759 = vrcp.f32 %v1631_v46  ;;  %v4584_v46 = vld [vmem:[#allocation4 + $0x8] sm:$0xff]  }
 0x504   :  { %v1635_v18 = vpop.xlane.xlu1 %1634 }
 0x505   :  { %4761 = vrcp.f32 %v1635_v18 }
 0x509   :  { %v1639_v0 = vpop.xlane.xlu0 %1638 }
 0x50a   :  { %4763 = vrcp.f32 %v1639_v0 }
 0x50c   :  { %v1643_v45 = vpop.xlane.xlu1 %1642  ;;  %v4760_v29 = vpop.eup %4759 }
 0x50d   :  { %4765 = vrcp.f32 %v1643_v45  ;;  %v1748_v60 = vmul.f32 %v4760_v29, %v6454_v24  ;;  %v1749_v10 = vmul.f32 %v4760_v29, %v6456_v31  ;;  %v4585_v24 = vld [vmem:[#allocation4 + $0x10] sm:$0xff]  }
 0x50f   :  { %v4762_v22 = vpop.eup %4761 }
 0x510   :  { %v1750_v43 = vmul.f32 %v4762_v22, %v6458_v36  ;;  %v1751_v44 = vmul.f32 %v4762_v22, %v6464_v50 }
 0x511   :  { %v1647_v8 = vpop.xlane.xlu0 %1646 }
 0x512   :  { %v1797_v23 = vpack.c.bf16 %v1751_v44, %v1749_v10  ;;  %v1796_v30 = vpack.c.bf16 %v1750_v43, %v1748_v60  ;;  %4767 = vrcp.f32 %v1647_v8  ;;  %v4586_v10 = vld [vmem:[#allocation4 + $0x18] sm:$0xff]  }
 0x514   :  { %4125 = vmatprep.mubr.msk.bf16.mxu0 %vm1387_vm9, %v1797_v23  ;;  %v1651_v18 = vpop.xlane.xlu1 %1650  ;;  %v4764_v0 = vpop.eup %4763 }
 0x515   :  { %4769 = vrcp.f32 %v1651_v18  ;;  %1901 = vmatmul.mubr.bf16.vlgmr.msra.gmra.mrb[48].mxu0 %v1796_v30  ;;  %v1753_v36 = vmul.f32 %v4764_v0, %v6474_v38  ;;  %v1752_v50 = vmul.f32 %v4764_v0, %v6472_v7  ;;  %v4588_v0 = vld [vmem:[#allocation4 + $0x28] sm:$0xff]  }
 0x516   :  { %4459 = vmatpush3.bf16.msra.mxu0 %v4583_v48 }
 0x517   :  { %v4766_v45 = vpop.eup %4765  ;;  %4460 = vmatprep.subr.bf16.mxu0 %v4584_v46 }
 0x518   :  { %v1755_v31 = vmul.f32 %v4766_v45, %v6482_v13  ;;  %v1754_v29 = vmul.f32 %v4766_v45, %v6476_v63  ;;  %v4587_v13 = vld [vmem:[#allocation4 + $0x20] sm:$0xff]  }
 0x519   :  { %v1655_v22 = vpop.xlane.xlu0 %1654 }
 0x51a   :  { %v1799_v60 = vpack.c.bf16 %v1755_v31, %v1753_v36  ;;  %v1798_v43 = vpack.c.bf16 %v1754_v29, %v1752_v50  ;;  %4461 = vmatpush3.bf16.msra.mxu0 %v4584_v46  ;;  %4771 = vrcp.f32 %v1655_v22 }
 0x51b   :  { %4462 = vmatprep.subr.bf16.mxu0 %v4585_v24 }
 0x51c   :  { %4126 = vmatprep.mubr.msk.bf16.mxu0 %vm1387_vm9, %v1799_v60  ;;  %v1659_v30 = vpop.xlane.xlu1 %1658  ;;  %v4768_v48 = vpop.eup %4767 }
 0x51d   :  { %4773 = vrcp.f32 %v1659_v30  ;;  %1909 = vmatmul.mubr.bf16.gmra.mrb[52].mxu0 %v1798_v43  ;;  %v1757_v7 = vmul.f32 %v4768_v48, %v6492_v12  ;;  %v1756_v44 = vmul.f32 %v4768_v48, %v6490_v26 }
 0x51e   :  { %4463 = vmatpush3.bf16.msra.mxu0 %v4585_v24 }
 0x51f   :  { %v4770_v38 = vpop.eup %4769  ;;  %4464 = vmatprep.subr.bf16.mxu0 %v4586_v10 }
 0x520   :  { %v1759_v63 = vmul.f32 %v4770_v38, %v6500_v11  ;;  %v1758_v8 = vmul.f32 %v4770_v38, %v6494_v57 }
 0x521   :  { %v1663_v23 = vpop.xlane.xlu0 %1662 }
 0x522   :  { %v1801_v46 = vpack.c.bf16 %v1759_v63, %v1757_v7  ;;  %v1800_v18 = vpack.c.bf16 %v1758_v8, %v1756_v44  ;;  %4465 = vmatpush3.bf16.msra.mxu0 %v4586_v10  ;;  %4775 = vrcp.f32 %v1663_v23 }
 0x523   :  { %4466 = vmatprep.subr.bf16.mxu0 %v4587_v13 }
 0x524   :  { %4127 = vmatprep.mubr.msk.bf16.mxu0 %vm1387_vm9, %v1801_v46  ;;  %v1667_v45 = vpop.xlane.xlu1 %1666  ;;  %v4772_v24 = vpop.eup %4771 }
 0x525   :  { %4777 = vrcp.f32 %v1667_v45  ;;  %1917 = vmatmul.mubr.bf16.gmra.mrb[56].mxu0 %v1800_v18  ;;  %v1761_v26 = vmul.f32 %v4772_v24, %v6510_v40  ;;  %v1760_v11 = vmul.f32 %v4772_v24, %v6508_v41 }
 0x526   :  { %4467 = vmatpush3.bf16.msra.mxu0 %v4587_v13 }
 0x527   :  { %v4774_v12 = vpop.eup %4773  ;;  %4468 = vmatprep.subr.bf16.mxu0 %v4588_v0 }
 0x528   :  { %v1763_v57 = vmul.f32 %v4774_v12, %v6518_v14  ;;  %v1762_v36 = vmul.f32 %v4774_v12, %v6512_v52 }
 0x529   :  { %v1671_v31 = vpop.xlane.xlu0 %1670 }
 0x52a   :  { %v1803_v50 = vpack.c.bf16 %v1763_v57, %v1761_v26  ;;  %v1802_v29 = vpack.c.bf16 %v1762_v36, %v1760_v11  ;;  %4469 = vmatpush3.bf16.msra.mxu0 %v4588_v0  ;;  %4779 = vrcp.f32 %v1671_v31 }
 0x52c   :  { %4128 = vmatprep.mubr.msk.bf16.mxu0 %vm1387_vm9, %v1803_v50  ;;  %v1675_v22 = vpop.xlane.xlu1 %1674  ;;  %v4776_v60 = vpop.eup %4775 }
 0x52d   :  { %4781 = vrcp.f32 %v1675_v22  ;;  %1925 = vmatmul.mubr.bf16.gmra.mrb[60].mxu0 %v1802_v29  ;;  %v1765_v40 = vmul.f32 %v4776_v60, %v6528_v61  ;;  %v1764_v41 = vmul.f32 %v4776_v60, %v6526_v49 }
 0x52f   :  { %v4778_v43 = vpop.eup %4777 }
 0x530   :  { %v1767_v14 = vmul.f32 %v4778_v43, %v6536_v47  ;;  %v1766_v52 = vmul.f32 %v4778_v43, %v6530_v21 }
 0x531   :  { %v1679_v10 = vpop.xlane.xlu0 %1678 }
 0x532   :  { %v1805_v30 = vpack.c.bf16 %v1767_v14, %v1765_v40  ;;  %v1804_v48 = vpack.c.bf16 %v1766_v52, %v1764_v41  ;;  %4783 = vrcp.f32 %v1679_v10 }
 0x534   :  { %4129 = vmatprep.mubr.msk.bf16.mxu0 %vm1387_vm9, %v1805_v30  ;;  %v1683_v38 = vpop.xlane.xlu1 %1682  ;;  %v4780_v13 = vpop.eup %4779 }
 0x535   :  { %4785 = vrcp.f32 %v1683_v38  ;;  %1933 = vmatmul.mubr.bf16.gmra.mrb[64].mxu0 %v1804_v48  ;;  %v1769_v63 = vmul.f32 %v4780_v13, %v6546_v17  ;;  %v1768_v47 = vmul.f32 %v4780_v13, %v6544_v3 }
 0x537   :  { %v4782_v7 = vpop.eup %4781 }
 0x538   :  { %v1771_v61 = vmul.f32 %v4782_v7, %v6554_v53  ;;  %v1770_v49 = vmul.f32 %v4782_v7, %v6548_v9 }
 0x539   :  { %v1687_v21 = vpop.xlane.xlu0 %1686 }
 0x53a   :  { %v1807_v44 = vpack.c.bf16 %v1771_v61, %v1769_v63  ;;  %v1806_v8 = vpack.c.bf16 %v1770_v49, %v1768_v47  ;;  %4787 = vrcp.f32 %v1687_v21 }
 0x53c   :  { %4130 = vmatprep.mubr.msk.bf16.mxu0 %vm1387_vm9, %v1807_v44  ;;  %v1691_v23 = vpop.xlane.xlu1 %1690  ;;  %v4784_v46 = vpop.eup %4783 }
 0x53d   :  { %4789 = vrcp.f32 %v1691_v23  ;;  %1941 = vmatmul.mubr.bf16.gmra.mrb[68].mxu0 %v1806_v8  ;;  %v1773_v0 = vmul.f32 %v4784_v46, %v6564_v5  ;;  %v1772_v53 = vmul.f32 %v4784_v46, %v6562_v55 }
 0x53f   :  { %v4786_v18 = vpop.eup %4785 }
 0x540   :  { %v1775_v17 = vmul.f32 %v4786_v18, %v6572_v25  ;;  %v1774_v3 = vmul.f32 %v4786_v18, %v6566_v6 }
 0x541   :  { %v1695_v9 = vpop.xlane.xlu0 %1694 }
 0x542   :  { %v1809_v45 = vpack.c.bf16 %v1775_v17, %v1773_v0  ;;  %v1808_v24 = vpack.c.bf16 %v1774_v3, %v1772_v53  ;;  %4791 = vrcp.f32 %v1695_v9 }
 0x544   :  { %4131 = vmatprep.mubr.msk.bf16.mxu0 %vm1387_vm9, %v1809_v45  ;;  %v1699_v12 = vpop.xlane.xlu1 %1698  ;;  %v4788_v26 = vpop.eup %4787 }
 0x545   :  { %4793 = vrcp.f32 %v1699_v12  ;;  %1949 = vmatmul.mubr.bf16.gmra.mrb[72].mxu0 %v1808_v24  ;;  %v1777_v11 = vmul.f32 %v4788_v26, %v6582_v62  ;;  %v1776_v25 = vmul.f32 %v4788_v26, %v6580_v51 }
 0x547   :  { %v4790_v57 = vpop.eup %4789 }
 0x548   :  { %v1779_v5 = vmul.f32 %v4790_v57, %v6590_v39  ;;  %v1778_v55 = vmul.f32 %v4790_v57, %v6584_v33 }
 0x549   :  { %v1703_v6 = vpop.xlane.xlu0 %1702 }
 0x54a   :  { %v1811_v36 = vpack.c.bf16 %v1779_v5, %v1777_v11  ;;  %v1810_v31 = vpack.c.bf16 %v1778_v55, %v1776_v25  ;;  %4795 = vrcp.f32 %v1703_v6 }
 0x54c   :  { %4132 = vmatprep.mubr.msk.bf16.mxu0 %vm1387_vm9, %v1811_v36  ;;  %v1707_v50 = vpop.xlane.xlu1 %1706  ;;  %v4792_v29 = vpop.eup %4791 }
 0x54d   :  { %4797 = vrcp.f32 %v1707_v50  ;;  %1957 = vmatmul.mubr.bf16.gmra.mrb[76].mxu0 %v1810_v31  ;;  %v1781_v60 = vmul.f32 %v4792_v29, %v6600_v37  ;;  %v1780_v39 = vmul.f32 %v4792_v29, %v6598_v58 }
 0x54f   :  { %v4794_v22 = vpop.eup %4793 }
 0x550   :  { %v1783_v62 = vmul.f32 %v4794_v22, %v6608_v54  ;;  %v1782_v51 = vmul.f32 %v4794_v22, %v6602_v20 }
 0x551   :  { %v1711_v33 = vpop.xlane.xlu0 %1710 }
 0x552   :  { %4799 = vrcp.f32 %v1711_v33  ;;  %v1813_v43 = vpack.c.bf16 %v1783_v62, %v1781_v60  ;;  %v1812_v40 = vpack.c.bf16 %v1782_v51, %v1780_v39 }
 0x553   :  { %v1715_v14 = vpop.xlane.xlu1 %1714 }
 0x554   :  { %4133 = vmatprep.mubr.msk.bf16.mxu0 %vm1387_vm9, %v1813_v43  ;;  %4801 = vrcp.f32 %v1715_v14  ;;  %v4796_v41 = vpop.eup %4795 }
 0x555   :  { %1965 = vmatmul.mubr.bf16.gmra.mrb[80].mxu0 %v1812_v40  ;;  %v1785_v10 = vmul.f32 %v4796_v41, %v6618_v19  ;;  %v1784_v54 = vmul.f32 %v4796_v41, %v6616_v15 }
 0x557   :  { %v4798_v52 = vpop.eup %4797 }
 0x558   :  { %v1787_v37 = vmul.f32 %v4798_v52, %v6626_v16  ;;  %v1786_v58 = vmul.f32 %v4798_v52, %v6620_v4 }
 0x559   :  { %v1719_v20 = vpop.xlane.xlu0 %1718 }
 0x55a   :  { %4803 = vrcp.f32 %v1719_v20  ;;  %v1815_v30 = vpack.c.bf16 %v1787_v37, %v1785_v10  ;;  %v1814_v48 = vpack.c.bf16 %v1786_v58, %v1784_v54 }
 0x55b   :  { %v1723_v38 = vpop.xlane.xlu1 %1722 }
 0x55c   :  { %v4800_v13 = vpop.eup %4799  ;;  %4134 = vmatprep.mubr.msk.bf16.mxu0 %vm1387_vm9, %v1815_v30  ;;  %4805 = vrcp.f32 %v1723_v38 }
 0x55d   :  { %1973 = vmatmul.mubr.bf16.gmra.mrb[84].mxu0 %v1814_v48  ;;  %v1789_v63 = vmul.f32 %v4800_v13, %v6636_v34  ;;  %v1788_v16 = vmul.f32 %v4800_v13, %v6634_v56  ;;  %v4589_v56 = vld [vmem:[#allocation4 + $0x30] sm:$0xff]  }
 0x55e   :  { %v4802_v7 = vpop.eup %4801  ;;  %4470 = vmatprep.subr.bf16.mxu0 %v4589_v56 }
 0x55f   :  { %v1791_v19 = vmul.f32 %v4802_v7, %v6642_v32  ;;  %v1790_v15 = vmul.f32 %v4802_v7, %v6638_v1  ;;  %4471 = vmatpush3.bf16.msra.mxu0 %v4589_v56  ;;  %v4590_v1 = vld [vmem:[#allocation4 + $0x38] sm:$0xff]   ;;  %v6725_v56 = vld [vmem:[%s7610_s13] sm:$0xff] }
 0x560   :  { %4472 = vmatprep.subr.bf16.mxu0 %v4590_v1 }
 0x561   :  { %v1817_v4 = vpack.c.bf16 %v1791_v19, %v1789_v63  ;;  %v1816_v61 = vpack.c.bf16 %v1790_v15, %v1788_v16 }
 0x563   :  { %4135 = vmatprep.mubr.msk.bf16.mxu0 %vm1387_vm9, %v1817_v4  ;;  %4473 = vmatpush3.bf16.msra.mxu0 %v4590_v1  ;;  %v6729_v1 = vrot.slane %v6725_v56, %v5255_v2 }
 0x564   :  { %v4804_v47 = vpop.eup %4803 }
 0x565   :  { %1981 = vmatmul.mubr.bf16.gmra.mrb[88].mxu0 %v1816_v61  ;;  %v1793_v21 = vmul.f32 %v4804_v47, %v6650_v28  ;;  %v1792_v8 = vmul.f32 %v4804_v47, %v6648_v42 }
 0x566   :  { %v4806_v49 = vpop.eup %4805 }
 0x567   :  { %v1795_v44 = vmul.f32 %v4806_v49, %v6656_v35  ;;  %v1794_v34 = vmul.f32 %v4806_v49, %v6652_v59 }
 0x569   :  { %v1819_v32 = vpack.c.bf16 %v1795_v44, %v1793_v21  ;;  %v1818_v23 = vpack.c.bf16 %v1794_v34, %v1792_v8 }
 0x56b   :  { %4136 = vmatprep.mubr.msk.bf16.mxu0 %vm1387_vm9, %v1819_v32 }
 0x56d   :  { %1989 = vmatmul.mubr.bf16.gmra.mrb[92].mxu0 %v1818_v23 }
 0x5e8   :  { %v1902_v46 = vpop.f32.mrb[48].mxu0 }
 0x5e9   :  { %v1904_v18 = vpop.f32.mrb[49].mxu0 }
 0x5ea   :  { %v1905_v28 = vpop.f32.mrb[50].mxu0 }
 0x5eb   :  { %v1997_v0 = vpack.c.bf16 %v1905_v28, %v1902_v46  ;;  %v1907_v35 = vpop.f32.mrb[51].mxu0 }
 0x5ed   :  { %4474 = vmatprep.mubr.bf16.mxu0 %v1997_v0 }
 0x5f0   :  { %v1910_v42 = vpop.f32.mrb[52].mxu0 }
 0x5f1   :  { %v1912_v17 = vpop.f32.mrb[53].mxu0 }
 0x5f2   :  { %v1913_v59 = vpop.f32.mrb[54].mxu0 }
 0x5f3   :  { %v1998_v53 = vpack.c.bf16 %v1913_v59, %v1910_v42  ;;  %v1915_v3 = vpop.f32.mrb[55].mxu0 }
 0x5f4   :  { %v7792_v3 = vld [vmem:[#allocation21_spill] sm:$0xff] }
 0x5f5   :  { %4475 = vmatmul.mubr.bf16.vlgmr.msra.gmra.mrb[96].mxu0 %v1998_v53 }
 0x5f8   :  { %v1918_v9 = vpop.f32.mrb[56].mxu0 }
 0x5f9   :  { %v1920_v45 = vpop.f32.mrb[57].mxu0 }
 0x5fa   :  { %v1921_v24 = vpop.f32.mrb[58].mxu0  ;;  %v7793_v45 = vld [vmem:[#allocation22_spill] sm:$0xff] }
 0x5fb   :  { %v1999_v12 = vpack.c.bf16 %v1921_v24, %v1918_v9  ;;  %v1923_v26 = vpop.f32.mrb[59].mxu0 }
 0x5fd   :  { %4478 = vmatprep.mubr.bf16.mxu0 %v1999_v12  ;;  %v7794_v12 = vld [vmem:[#allocation20_spill] sm:$0xff] }
 0x600   :  { %v1926_v57 = vpop.f32.mrb[60].mxu0 }
 0x601   :  { %v1928_v11 = vpop.f32.mrb[61].mxu0 }
 0x602   :  { %v1929_v5 = vpop.f32.mrb[62].mxu0 }
 0x603   :  { %v2000_v25 = vpack.c.bf16 %v1929_v5, %v1926_v57  ;;  %v1931_v55 = vpop.f32.mrb[63].mxu0 }
 0x605   :  { %4479 = vmatmul.mubr.bf16.gmra.mrb[100].mxu0 %v2000_v25 }
 0x608   :  { %v1934_v6 = vpop.f32.mrb[64].mxu0 }
 0x609   :  { %v1936_v36 = vpop.f32.mrb[65].mxu0 }
 0x60a   :  { %v1937_v31 = vpop.f32.mrb[66].mxu0  ;;  %v7795_v36 = vld [vmem:[#allocation24_spill] sm:$0xff] }
 0x60b   :  { %v2001_v50 = vpack.c.bf16 %v1937_v31, %v1934_v6  ;;  %v1939_v29 = vpop.f32.mrb[67].mxu0 }
 0x60c   :  { %v7796_v29 = vld [vmem:[#allocation26_spill] sm:$0xff] }
 0x60d   :  { %4482 = vmatprep.mubr.bf16.mxu0 %v2001_v50 }
 0x610   :  { %v1942_v22 = vpop.f32.mrb[68].mxu0 }
 0x611   :  { %v1944_v60 = vpop.f32.mrb[69].mxu0 }
 0x612   :  { %v1945_v62 = vpop.f32.mrb[70].mxu0  ;;  %v7797_v60 = vld [vmem:[#allocation23_spill] sm:$0xff] }
 0x613   :  { %v2002_v39 = vpack.c.bf16 %v1945_v62, %v1942_v22  ;;  %v1947_v51 = vpop.f32.mrb[71].mxu0 }
 0x615   :  { %4483 = vmatmul.mubr.bf16.gmra.mrb[104].mxu0 %v2002_v39  ;;  %v7798_v39 = vld [vmem:[#allocation25_spill] sm:$0xff] }
 0x618   :  { %v1950_v33 = vpop.f32.mrb[72].mxu0 }
 0x619   :  { %v1952_v43 = vpop.f32.mrb[73].mxu0 }
 0x61a   :  { %v1953_v40 = vpop.f32.mrb[74].mxu0 }
 0x61b   :  { %v2003_v14 = vpack.c.bf16 %v1953_v40, %v1950_v33  ;;  %v1955_v41 = vpop.f32.mrb[75].mxu0 }
 0x61d   :  { %4486 = vmatprep.mubr.bf16.mxu0 %v2003_v14 }
 0x620   :  { %v1958_v52 = vpop.f32.mrb[76].mxu0 }
 0x621   :  { %v1960_v10 = vpop.f32.mrb[77].mxu0 }
 0x622   :  { %v1961_v37 = vpop.f32.mrb[78].mxu0 }
 0x623   :  { %v2004_v54 = vpack.c.bf16 %v1961_v37, %v1958_v52  ;;  %v1963_v58 = vpop.f32.mrb[79].mxu0  ;;  %v7799_v37 = vld [vmem:[#allocation28_spill] sm:$0xff] }
 0x625   :  { %4487 = vmatmul.mubr.bf16.gmra.mrb[108].mxu0 %v2004_v54 }
 0x628   :  { %v1966_v20 = vpop.f32.mrb[80].mxu0 }
 0x629   :  { %v1968_v30 = vpop.f32.mrb[81].mxu0 }
 0x62a   :  { %v1969_v48 = vpop.f32.mrb[82].mxu0 }
 0x62b   :  { %v2005_v38 = vpack.c.bf16 %v1969_v48, %v1966_v20  ;;  %v1971_v13 = vpop.f32.mrb[83].mxu0  ;;  %v7800_v20 = vld [vmem:[#allocation30_spill] sm:$0xff]  ;;  %v7801_v48 = vld [vmem:[#allocation27_spill] sm:$0xff] }
 0x62c   :  { %v7802_v13 = vld [vmem:[#allocation29_spill] sm:$0xff] }
 0x62d   :  { %4490 = vmatprep.mubr.bf16.mxu0 %v2005_v38 }
 0x630   :  { %v1974_v7 = vpop.f32.mrb[84].mxu0 }
 0x631   :  { %v1976_v63 = vpop.f32.mrb[85].mxu0 }
 0x632   :  { %v1977_v19 = vpop.f32.mrb[86].mxu0 }
 0x633   :  { %v2006_v16 = vpack.c.bf16 %v1977_v19, %v1974_v7  ;;  %v1979_v15 = vpop.f32.mrb[87].mxu0 }
 0x635   :  { %4491 = vmatmul.mubr.bf16.gmra.mrb[112].mxu0 %v2006_v16 }
 0x638   :  { %v1982_v4 = vpop.f32.mrb[88].mxu0 }
 0x639   :  { %v1984_v61 = vpop.f32.mrb[89].mxu0 }
 0x63a   :  { %v1985_v47 = vpop.f32.mrb[90].mxu0 }
 0x63b   :  { %v2007_v49 = vpack.c.bf16 %v1985_v47, %v1982_v4  ;;  %v1987_v21 = vpop.f32.mrb[91].mxu0 }
 0x63d   :  { %4494 = vmatprep.mubr.bf16.mxu0 %v2007_v49  ;;  %v7803_v49 = vld [vmem:[#allocation32_spill] sm:$0xff] }
 0x640   :  { %v1990_v44 = vpop.f32.mrb[92].mxu0 }
 0x641   :  { %v1992_v8 = vpop.f32.mrb[93].mxu0 }
 0x642   :  { %v1993_v34 = vpop.f32.mrb[94].mxu0  ;;  %v7804_v8 = vld [vmem:[#allocation34_spill] sm:$0xff] }
 0x643   :  { %v2008_v32 = vpack.c.bf16 %v1993_v34, %v1990_v44  ;;  %v1995_v23 = vpop.f32.mrb[95].mxu0 }
 0x645   :  { %4495 = vmatmul.mubr.bf16.gmra.mrb[116].mxu0 %v2008_v32  ;;  %v7805_v32 = vld [vmem:[#allocation31_spill] sm:$0xff] }
 0x6c8   :  { %v4476_v46 = vpop.f32.mrb[96].mxu0 }
 0x6c9   :  { %v2111_v18 = vpop.f32.mrb[97].mxu0  ;;  %v2120_v42 = vadd.f32 %v4476_v46, %v6729_v1  ;;  %v7806_v46 = vld [vmem:[#allocation33_spill] sm:$0xff] }
 0x6ca   :  { %v2112_v28 = vadd.f32 %v2111_v18, %v6729_v1  ;;  %v4477_v0 = vpop.f32.mrb[98].mxu0 }
 0x6cb   :  { %v2114_v35 = vpop.f32.mrb[99].mxu0  ;;  %v2123_v53 = vadd.f32 %v4477_v0, %v6729_v1  ;;  %v6744_v24 = vadd.f32 %v2120_v42, %v7793_v45  ;;  %v7807_v45 = vld [vmem:[#allocation36_spill] sm:$0xff] }
 0x6cc   :  { %v2115_v17 = vadd.f32 %v2114_v35, %v6729_v1  ;;  %v6735_v59 = vadd.f32 %v2112_v28, %v5500_v27 }
 0x6cd   :  { %v6748_v26 = vadd.f32 %v2123_v53, %v7794_v12 }
 0x6ce   :  { %2230 = vadd.xlane.f32.xlu0 %v6735_v59  ;;  %v6740_v9 = vadd.f32 %v2115_v17, %v7792_v3 }
 0x6d0   :  { %2232 = vadd.xlane.f32.xlu1 %v6740_v9 }
 0x6d2   :  { %2234 = vadd.xlane.f32.xlu0 %v6744_v24 }
 0x6d4   :  { %2236 = vadd.xlane.f32.xlu1 %v6748_v26 }
 0x6d8   :  { %v4480_v27 = vpop.f32.mrb[100].mxu0 }
 0x6d9   :  { %v2127_v57 = vpop.f32.mrb[101].mxu0  ;;  %v2136_v55 = vadd.f32 %v4480_v27, %v6729_v1 }
 0x6da   :  { %v2128_v11 = vadd.f32 %v2127_v57, %v6729_v1  ;;  %v4481_v5 = vpop.f32.mrb[102].mxu0  ;;  %v7808_v57 = vld [vmem:[#allocation38_spill] sm:$0xff] }
 0x6db   :  { %v2130_v25 = vpop.f32.mrb[103].mxu0  ;;  %v2139_v50 = vadd.f32 %v4481_v5, %v6729_v1  ;;  %v6764_v62 = vadd.f32 %v2136_v55, %v7797_v60  ;;  %v7809_v5 = vld [vmem:[#allocation35_spill] sm:$0xff]  ;;  %v7810_v55 = vld [vmem:[#allocation37_spill] sm:$0xff] }
 0x6dc   :  { %v2131_v6 = vadd.f32 %v2130_v25, %v6729_v1  ;;  %v6755_v31 = vadd.f32 %v2128_v11, %v7795_v36 }
 0x6dd   :  { %v6768_v51 = vadd.f32 %v2139_v50, %v7798_v39  ;;  %v4591_v39 = vld [vmem:[#allocation6] ss:$8 sps:$4 sm:$0xff]  }
 0x6de   :  { %2238 = vadd.xlane.f32.xlu0 %v6755_v31  ;;  %v6760_v22 = vadd.f32 %v2131_v6, %v7796_v29 }
 0x6e0   :  { %2240 = vadd.xlane.f32.xlu1 %v6760_v22 }
 0x6e2   :  { %2242 = vadd.xlane.f32.xlu0 %v6764_v62 }
 0x6e4   :  { %2244 = vadd.xlane.f32.xlu1 %v6768_v51 }
 0x6e8   :  { %v4484_v33 = vpop.f32.mrb[104].mxu0 }
 0x6e9   :  { %v2143_v43 = vpop.f32.mrb[105].mxu0  ;;  %v2152_v52 = vadd.f32 %v4484_v33, %v6729_v1  ;;  %v4593_v33 = vld [vmem:[#allocation6 + $0x4] ss:$8 sps:$4 sm:$0xff]  }
 0x6ea   :  { %v2144_v40 = vadd.f32 %v2143_v43, %v6729_v1  ;;  %v4485_v14 = vpop.f32.mrb[106].mxu0  ;;  %v4596_v43 = vld [vmem:[#allocation6 + $0x14] ss:$8 sps:$4 sm:$0xff]   ;;  %2671 = vmatprep.subr.bf16.mxu1 %v4593_v33 }
 0x6eb   :  { %v2146_v41 = vpop.f32.mrb[107].mxu0  ;;  %v2155_v58 = vadd.f32 %v4485_v14, %v6729_v1  ;;  %v6784_v38 = vadd.f32 %v2152_v52, %v7801_v48  ;;  %2672 = vmatpush1.bf16.msra.mxu1 %v4591_v39 }
 0x6ec   :  { %v2147_v10 = vadd.f32 %v2146_v41, %v6729_v1  ;;  %v6775_v54 = vadd.f32 %v2144_v40, %v7799_v37  ;;  %v4594_v40 = vld [vmem:[#allocation6 + $0x10] ss:$8 sps:$4 sm:$0xff]   ;;  %2673 = vmatprep.subr.bf16.mxu1 %v4596_v43 }
 0x6ed   :  { %v6788_v7 = vadd.f32 %v2155_v58, %v7802_v13  ;;  %v4600_v43 = vld [vmem:[#allocation6 + $0x30] ss:$8 sps:$4 sm:$0xff]  }
 0x6ee   :  { %2246 = vadd.xlane.f32.xlu0 %v6775_v54  ;;  %v6780_v30 = vadd.f32 %v2147_v10, %v7800_v20 }
 0x6ef   :  { %2674 = vmatpush1.bf16.msra.mxu1 %v4594_v40  ;;  %v4605_v40 = vld [vmem:[#allocation6 + $0x44] ss:$8 sps:$4 sm:$0xff]  }
 0x6f0   :  { %2248 = vadd.xlane.f32.xlu1 %v6780_v30 }
 0x6f2   :  { %2250 = vadd.xlane.f32.xlu0 %v6784_v38 }
 0x6f4   :  { %2252 = vadd.xlane.f32.xlu1 %v6788_v7 }
 0x6f8   :  { %v4488_v63 = vpop.f32.mrb[108].mxu0 }
 0x6f9   :  { %v2159_v19 = vpop.f32.mrb[109].mxu0  ;;  %v2168_v61 = vadd.f32 %v4488_v63, %v6729_v1 }
 0x6fa   :  { %v2160_v16 = vadd.f32 %v2159_v19, %v6729_v1  ;;  %v4489_v15 = vpop.f32.mrb[110].mxu0 }
 0x6fb   :  { %v2162_v4 = vpop.f32.mrb[111].mxu0  ;;  %v2171_v44 = vadd.f32 %v4489_v15, %v6729_v1  ;;  %v6804_v23 = vadd.f32 %v2168_v61, %v7805_v32  ;;  %v7811_v61 = vld [vmem:[#allocation40_spill] sm:$0xff] }
 0x6fc   :  { %v2163_v47 = vadd.f32 %v2162_v4, %v6729_v1  ;;  %v6795_v21 = vadd.f32 %v2160_v16, %v7803_v49 }
 0x6fd   :  { %v6808_v18 = vadd.f32 %v2171_v44, %v7806_v46 }
 0x6fe   :  { %2254 = vadd.xlane.f32.xlu0 %v6795_v21  ;;  %v6800_v34 = vadd.f32 %v2163_v47, %v7804_v8 }
 0x700   :  { %2256 = vadd.xlane.f32.xlu1 %v6800_v34 }
 0x702   :  { %2258 = vadd.xlane.f32.xlu0 %v6804_v23 }
 0x704   :  { %2260 = vadd.xlane.f32.xlu1 %v6808_v18 }
 0x708   :  { %v4492_v28 = vpop.f32.mrb[112].mxu0 }
 0x709   :  { %v2175_v0 = vpop.f32.mrb[113].mxu0  ;;  %v2184_v53 = vadd.f32 %v4492_v28, %v6729_v1 }
 0x70a   :  { %v2176_v35 = vadd.f32 %v2175_v0, %v6729_v1  ;;  %v4493_v42 = vpop.f32.mrb[114].mxu0  ;;  %v7813_v0 = vld [vmem:[#allocation39_spill] sm:$0xff] }
 0x70b   :  { %v2178_v17 = vpop.f32.mrb[115].mxu0  ;;  %v2187_v27 = vadd.f32 %v4493_v42, %v6729_v1  ;;  %v6824_v25 = vadd.f32 %v2184_v53, %v7809_v5 }
 0x70c   :  { %v2179_v3 = vadd.f32 %v2178_v17, %v6729_v1  ;;  %v6815_v12 = vadd.f32 %v2176_v35, %v7807_v45 }
 0x70d   :  { %v6828_v6 = vadd.f32 %v2187_v27, %v7810_v55  ;;  %v4599_v27 = vld [vmem:[#allocation6 + $0x24] ss:$8 sps:$4 sm:$0xff]  }
 0x70e   :  { %2262 = vadd.xlane.f32.xlu0 %v6815_v12  ;;  %v6820_v11 = vadd.f32 %v2179_v3, %v7808_v57  ;;  %v7814_v3 = vld [vmem:[#allocation41_spill] sm:$0xff]  ;;  %2675 = vmatprep.subr.bf16.mxu1 %v4599_v27 }
 0x710   :  { %2264 = vadd.xlane.f32.xlu1 %v6820_v11 }
 0x712   :  { %2266 = vadd.xlane.f32.xlu0 %v6824_v25 }
 0x714   :  { %2268 = vadd.xlane.f32.xlu1 %v6828_v6 }
 0x718   :  { %v4496_v36 = vpop.f32.mrb[116].mxu0 }
 0x719   :  { %v2191_v50 = vpop.f32.mrb[117].mxu0  ;;  %v2200_v8 = vadd.f32 %v4496_v36, %v6729_v1  ;;  %v4597_v36 = vld [vmem:[#allocation6 + $0x20] ss:$8 sps:$4 sm:$0xff]  }
 0x71a   :  { %v4497_v29 = vpop.f32.mrb[118].mxu0  ;;  %v2192_v20 = vadd.f32 %v2191_v50, %v6729_v1  ;;  %2676 = vmatpush1.bf16.msra.mxu1 %v4597_v36 }
 0x71b   :  { %v2194_v60 = vpop.f32.mrb[119].mxu0  ;;  %v2203_v32 = vadd.f32 %v4497_v29, %v6729_v1  ;;  %v6864_v35 = vadd.f32 %v2200_v8, %v7813_v0 }
 0x71c   :  { %v2195_v16 = vadd.f32 %v2194_v60, %v6729_v1  ;;  %v6847_v47 = vadd.f32 %v2192_v20, %v7811_v61  ;;  %v4609_v61 = vld [vmem:[#allocation6 + $0x60] ss:$8 sps:$4 sm:$0xff]  }
 0x71d   :  { %v6871_v45 = vadd.f32 %v2203_v32, %v7814_v3  ;;  %v4614_v32 = vld [vmem:[#allocation6 + $0x74] ss:$8 sps:$4 sm:$0xff]  }
 0x75b   :  { %v2231_v14 = vpop.xlane.xlu0 %2230 }
 0x75c   :  { %v2279_v41 = vmul.f32 0.0078125, %v2231_v14  ;;  %v4603_v14 = vld [vmem:[#allocation6 + $0x40] ss:$8 sps:$4 sm:$0xff]  }
 0x75d   :  { %v2233_v52 = vpop.xlane.xlu1 %2232 }
 0x75e   :  { %v2280_v10 = vmul.f32 0.0078125, %v2233_v52  ;;  %v6832_v37 = vsub.f32 %v6735_v59, %v2279_v41  ;;  %v4608_v52 = vld [vmem:[#allocation6 + $0x54] ss:$8 sps:$4 sm:$0xff]  }
 0x75f   :  { %v2235_v58 = vpop.xlane.xlu0 %2234 }
 0x760   :  { %v2281_v48 = vmul.f32 0.0078125, %v2235_v58  ;;  %v2327_v13 = vmul.f32 %v6832_v37, %v6832_v37  ;;  %v6838_v63 = vsub.f32 %v6740_v9, %v2280_v10  ;;  %v7812_v9 = vld [vmem:[#allocation42_spill] sm:$0xff] }
 0x761   :  { %v2237_v19 = vpop.xlane.xlu1 %2236  ;;  %v6854_v44 = vadd.f32 %v2195_v16, %v7812_v9  ;;  %v4606_v10 = vld [vmem:[#allocation6 + $0x50] ss:$8 sps:$4 sm:$0xff]  }
 0x762   :  { %v2282_v15 = vmul.f32 0.0078125, %v2237_v19  ;;  %2351 = vadd.xlane.f32.xlu0 %v2327_v13  ;;  %v2328_v4 = vmul.f32 %v6838_v63, %v6838_v63  ;;  %v6844_v59 = vsub.f32 %v6744_v24, %v2281_v48  ;;  %v4611_v19 = vld [vmem:[#allocation6 + $0x64] ss:$8 sps:$4 sm:$0xff]  }
 0x764   :  { %2353 = vadd.xlane.f32.xlu1 %v2328_v4  ;;  %v6850_v49 = vsub.f32 %v6748_v26, %v2282_v15  ;;  %v2329_v24 = vmul.f32 %v6844_v59, %v6844_v59 }
 0x766   :  { %2270 = vadd.xlane.f32.xlu0 %v6847_v47  ;;  %v2330_v46 = vmul.f32 %v6850_v49, %v6850_v49 }
 0x768   :  { %2272 = vadd.xlane.f32.xlu1 %v6854_v44 }
 0x76a   :  { %2355 = vadd.xlane.f32.xlu0 %v2329_v24 }
 0x76b   :  { %v2239_v26 = vpop.xlane.xlu0 %2238 }
 0x76c   :  { %v2283_v28 = vmul.f32 0.0078125, %v2239_v26  ;;  %2357 = vadd.xlane.f32.xlu1 %v2330_v46  ;;  %v4612_v26 = vld [vmem:[#allocation6 + $0x70] ss:$8 sps:$4 sm:$0xff]  }
 0x76d   :  { %v2241_v42 = vpop.xlane.xlu1 %2240 }
 0x76e   :  { %v6867_v17 = vsub.f32 %v6755_v31, %v2283_v28  ;;  %v2284_v53 = vmul.f32 0.0078125, %v2241_v42  ;;  %2274 = vadd.xlane.f32.xlu0 %v6864_v35  ;;  %v7815_v28 = vmov 0  }
 0x76f   :  { %v2243_v1 = vpop.xlane.xlu0 %2242 }
 0x770   :  { %v6874_v57 = vsub.f32 %v6760_v22, %v2284_v53  ;;  %v2285_v5 = vmul.f32 0.0078125, %v2243_v1  ;;  %2276 = vadd.xlane.f32.xlu1 %v6871_v45  ;;  %v2331_v55 = vmul.f32 %v6867_v17, %v6867_v17  ;;  %v4602_v22 = vld [vmem:[#allocation6 + $0x34] ss:$8 sps:$4 sm:$0xff]  }
 0x771   :  { %v2245_v31 = vpop.xlane.xlu1 %2244  ;;  %2677 = vmatprep.subr.bf16.mxu1 %v4602_v22 }
 0x772   :  { %v6880_v50 = vsub.f32 %v6764_v62, %v2285_v5  ;;  %v2286_v29 = vmul.f32 0.0078125, %v2245_v31  ;;  %2359 = vadd.xlane.f32.xlu0 %v2331_v55  ;;  %v2332_v60 = vmul.f32 %v6874_v57, %v6874_v57  ;;  %2678 = vmatpush1.bf16.msra.mxu1 %v4600_v43 }
 0x773   :  { %2679 = vmatprep.subr.bf16.mxu1 %v4605_v40 }
 0x774   :  { %v6885_v39 = vsub.f32 %v6768_v51, %v2286_v29  ;;  %2361 = vadd.xlane.f32.xlu1 %v2332_v60  ;;  %v2333_v33 = vmul.f32 %v6880_v50, %v6880_v50 }
 0x776   :  { %2363 = vadd.xlane.f32.xlu0 %v2333_v33  ;;  %v2334_v62 = vmul.f32 %v6885_v39, %v6885_v39  ;;  %2680 = vmatpush1.bf16.msra.mxu1 %v4603_v14 }
 0x777   :  { %2681 = vmatprep.subr.bf16.mxu1 %v4608_v52 }
 0x778   :  { %2365 = vadd.xlane.f32.xlu1 %v2334_v62 }
 0x77a   :  { %2682 = vmatpush1.bf16.msra.mxu1 %v4606_v10 }
 0x77b   :  { %v2247_v41 = vpop.xlane.xlu0 %2246  ;;  %2683 = vmatprep.subr.bf16.mxu1 %v4611_v19 }
 0x77c   :  { %v2287_v51 = vmul.f32 0.0078125, %v2247_v41 }
 0x77d   :  { %v2249_v58 = vpop.xlane.xlu1 %2248 }
 0x77e   :  { %v6892_v20 = vsub.f32 %v6775_v54, %v2287_v51  ;;  %v2288_v48 = vmul.f32 0.0078125, %v2249_v58  ;;  %2684 = vmatpush1.bf16.msra.mxu1 %v4609_v61 }
 0x77f   :  { %v2251_v13 = vpop.xlane.xlu0 %2250  ;;  %2685 = vmatprep.subr.bf16.mxu1 %v4614_v32 }
 0x780   :  { %v6895_v16 = vsub.f32 %v6780_v30, %v2288_v48  ;;  %v2289_v15 = vmul.f32 0.0078125, %v2251_v13  ;;  %v2335_v4 = vmul.f32 %v6892_v20, %v6892_v20 }
 0x781   :  { %v2253_v9 = vpop.xlane.xlu1 %2252 }
 0x782   :  { %v6900_v8 = vsub.f32 %v6784_v38, %v2289_v15  ;;  %v2290_v24 = vmul.f32 0.0078125, %v2253_v9  ;;  %2367 = vadd.xlane.f32.xlu0 %v2335_v4  ;;  %v2336_v54 = vmul.f32 %v6895_v16, %v6895_v16  ;;  %2686 = vmatpush1.bf16.msra.mxu1 %v4612_v26 }
 0x783   :  { %3544 = vmatprep.subr.bf16.mxu1 %v7815_v28 }
 0x784   :  { %v6905_v30 = vsub.f32 %v6788_v7, %v2290_v24  ;;  %2369 = vadd.xlane.f32.xlu1 %v2336_v54  ;;  %v2337_v46 = vmul.f32 %v6900_v8, %v6900_v8 }
 0x786   :  { %2371 = vadd.xlane.f32.xlu0 %v2337_v46  ;;  %v2338_v38 = vmul.f32 %v6905_v30, %v6905_v30 }
 0x788   :  { %2373 = vadd.xlane.f32.xlu1 %v2338_v38 }
 0x78b   :  { %v2255_v0 = vpop.xlane.xlu0 %2254 }
 0x78c   :  { %v2291_v42 = vmul.f32 0.0078125, %v2255_v0 }
 0x78d   :  { %v2257_v53 = vpop.xlane.xlu1 %2256 }
 0x78e   :  { %v6913_v7 = vsub.f32 %v6795_v21, %v2291_v42  ;;  %v2292_v3 = vmul.f32 0.0078125, %v2257_v53 }
 0x78f   :  { %v2259_v1 = vpop.xlane.xlu0 %2258 }
 0x790   :  { %v6916_v27 = vsub.f32 %v6800_v34, %v2292_v3  ;;  %v2293_v5 = vmul.f32 0.0078125, %v2259_v1  ;;  %v2339_v55 = vmul.f32 %v6913_v7, %v6913_v7 }
 0x791   :  { %v2261_v36 = vpop.xlane.xlu1 %2260 }
 0x792   :  { %v6921_v31 = vsub.f32 %v6804_v23, %v2293_v5  ;;  %v2294_v29 = vmul.f32 0.0078125, %v2261_v36  ;;  %2375 = vadd.xlane.f32.xlu0 %v2339_v55  ;;  %v2340_v60 = vmul.f32 %v6916_v27, %v6916_v27 }
 0x794   :  { %v6926_v21 = vsub.f32 %v6808_v18, %v2294_v29  ;;  %2377 = vadd.xlane.f32.xlu1 %v2340_v60  ;;  %v2341_v34 = vmul.f32 %v6921_v31, %v6921_v31  ;;  %v7816_v29 = vld [vmem:[#allocation19_spill] sm:$0xff] }
 0x796   :  { %2379 = vadd.xlane.f32.xlu0 %v2341_v34  ;;  %v2342_v22 = vmul.f32 %v6926_v21, %v6926_v21 }
 0x798   :  { %2381 = vadd.xlane.f32.xlu1 %v2342_v22 }
 0x79b   :  { %v2263_v33 = vpop.xlane.xlu0 %2262 }
 0x79c   :  { %v2295_v23 = vmul.f32 0.0078125, %v2263_v33 }
 0x79d   :  { %v2265_v43 = vpop.xlane.xlu1 %2264 }
 0x79e   :  { %v6933_v62 = vsub.f32 %v6815_v12, %v2295_v23  ;;  %v2296_v40 = vmul.f32 0.0078125, %v2265_v43 }
 0x79f   :  { %v2267_v14 = vpop.xlane.xlu0 %2266 }
 0x7a0   :  { %v6936_v18 = vsub.f32 %v6820_v11, %v2296_v40  ;;  %v2297_v41 = vmul.f32 0.0078125, %v2267_v14  ;;  %v2343_v52 = vmul.f32 %v6933_v62, %v6933_v62 }
 0x7a1   :  { %v2269_v51 = vpop.xlane.xlu1 %2268 }
 0x7a2   :  { %v6941_v10 = vsub.f32 %v6824_v25, %v2297_v41  ;;  %v2298_v58 = vmul.f32 0.0078125, %v2269_v51  ;;  %2383 = vadd.xlane.f32.xlu0 %v2343_v52  ;;  %v2344_v48 = vmul.f32 %v6936_v18, %v6936_v18  ;;  %v7817_v51 = vld [vmem:[#allocation16_spill] sm:$0xff] }
 0x7a4   :  { %v6946_v12 = vsub.f32 %v6828_v6, %v2298_v58  ;;  %2385 = vadd.xlane.f32.xlu1 %v2344_v48  ;;  %v2345_v11 = vmul.f32 %v6941_v10, %v6941_v10  ;;  %v7818_v58 = vsub.s32 2, %v7817_v51 }
 0x7a6   :  { %2387 = vadd.xlane.f32.xlu0 %v2345_v11  ;;  %v2346_v13 = vmul.f32 %v6946_v12, %v6946_v12  ;;  %v6978_v48 = vrot.slane %v6725_v56, %v7818_v58 }
 0x7a8   :  { %2389 = vadd.xlane.f32.xlu1 %v2346_v13 }
 0x7ef   :  { %v2352_v19 = vpop.xlane.xlu0 %2351 }
 0x7f0   :  { %v2399_v25 = vmul.f32 0.0078125, %v2352_v19 }
 0x7f1   :  { %v2354_v15 = vpop.xlane.xlu1 %2353 }
 0x7f2   :  { %v2423_v4 = vadd.f32 1e-05, %v2399_v25  ;;  %v2400_v61 = vmul.f32 0.0078125, %v2354_v15 }
 0x7f3   :  { %v2271_v9 = vpop.xlane.xlu0 %2270 }
 0x7f4   :  { %4807 = vrsqrt.f32 %v2423_v4  ;;  %v2424_v24 = vadd.f32 1e-05, %v2400_v61  ;;  %v2299_v54 = vmul.f32 0.0078125, %v2271_v9 }
 0x7f5   :  { %v2273_v6 = vpop.xlane.xlu1 %2272 }
 0x7f6   :  { %4809 = vrsqrt.f32 %v2424_v24  ;;  %v6953_v32 = vsub.f32 %v6847_v47, %v2299_v54  ;;  %v2300_v46 = vmul.f32 0.0078125, %v2273_v6 }
 0x7f7   :  { %v2356_v26 = vpop.xlane.xlu0 %2355 }
 0x7f8   :  { %v6956_v38 = vsub.f32 %v6854_v44, %v2300_v46  ;;  %v2401_v0 = vmul.f32 0.0078125, %v2356_v26  ;;  %v2347_v42 = vmul.f32 %v6953_v32, %v6953_v32  ;;  %v6964_v44 = vrot.slane %v6725_v56, %v7816_v29 }
 0x7f9   :  { %v2358_v53 = vpop.xlane.xlu1 %2357 }
 0x7fa   :  { %v2425_v3 = vadd.f32 1e-05, %v2401_v0  ;;  %v2402_v1 = vmul.f32 0.0078125, %v2358_v53  ;;  %2391 = vadd.xlane.f32.xlu0 %v2347_v42  ;;  %v2348_v5 = vmul.f32 %v6956_v38, %v6956_v38 }
 0x7fb   :  { %v2275_v55 = vpop.xlane.xlu0 %2274 }
 0x7fc   :  { %4811 = vrsqrt.f32 %v2425_v3  ;;  %v2426_v47 = vadd.f32 1e-05, %v2402_v1  ;;  %v2301_v36 = vmul.f32 0.0078125, %v2275_v55  ;;  %2393 = vadd.xlane.f32.xlu1 %v2348_v5 }
 0x7fd   :  { %v2277_v60 = vpop.xlane.xlu1 %2276 }
 0x7fe   :  { %v4808_v34 = vpop.eup %4807  ;;  %4813 = vrsqrt.f32 %v2426_v47  ;;  %v6967_v22 = vsub.f32 %v6864_v35, %v2301_v36  ;;  %v2302_v33 = vmul.f32 0.0078125, %v2277_v60 }
 0x7ff   :  { %v2471_v23 = vmul.f32 %v4808_v34, %v6832_v37  ;;  %v2360_v43 = vpop.xlane.xlu0 %2359 }
 0x800   :  { %v4810_v40 = vpop.eup %4809  ;;  %v6971_v14 = vsub.f32 %v6871_v45, %v2302_v33  ;;  %v2403_v41 = vmul.f32 0.0078125, %v2360_v43  ;;  %v2349_v52 = vmul.f32 %v6967_v22, %v6967_v22 }
 0x801   :  { %v2499_v35 = vmul.f32 %v6964_v44, %v2471_v23  ;;  %v2472_v11 = vmul.f32 %v4810_v40, %v6838_v63  ;;  %v2362_v13 = vpop.xlane.xlu1 %2361 }
 0x802   :  { %v2427_v37 = vadd.f32 1e-05, %v2403_v41  ;;  %v2404_v19 = vmul.f32 0.0078125, %v2362_v13  ;;  %2395 = vadd.xlane.f32.xlu0 %v2349_v52  ;;  %v2350_v45 = vmul.f32 %v6971_v14, %v6971_v14 }
 0x803   :  { %v2500_v25 = vmul.f32 %v6964_v44, %v2472_v11  ;;  %v2364_v15 = vpop.xlane.xlu0 %2363  ;;  %v6986_v9 = vadd.f32 %v6978_v48, %v2499_v35 }
 0x804   :  { %4815 = vrsqrt.f32 %v2427_v37  ;;  %v2428_v4 = vadd.f32 1e-05, %v2404_v19  ;;  %v2405_v61 = vmul.f32 0.0078125, %v2364_v15  ;;  %2397 = vadd.xlane.f32.xlu1 %v2350_v45 }
 0x805   :  { %v2366_v56 = vpop.xlane.xlu1 %2365  ;;  %v6989_v63 = vadd.f32 %v6978_v48, %v2500_v25 }
 0x806   :  { %v4812_v24 = vpop.eup %4811  ;;  %4817 = vrsqrt.f32 %v2428_v4  ;;  %v2429_v54 = vadd.f32 1e-05, %v2405_v61  ;;  %v2406_v6 = vmul.f32 0.0078125, %v2366_v56 }
 0x807   :  { %v2551_v46 = vpack.c.bf16 %v6989_v63, %v6986_v9  ;;  %v2473_v26 = vmul.f32 %v4812_v24, %v6844_v59 }
 0x808   :  { %v4814_v0 = vpop.eup %4813  ;;  %4819 = vrsqrt.f32 %v2429_v54  ;;  %v2430_v42 = vadd.f32 1e-05, %v2406_v6 }
 0x809   :  { %2704 = vmatmul.mubr.bf16.vlgmr.msra.gmra.mrb[96].mxu1 %v2551_v46  ;;  %v2474_v53 = vmul.f32 %v4814_v0, %v6850_v49  ;;  %v2501_v3 = vmul.f32 %v6964_v44, %v2473_v26 }
 0x80a   :  { %4821 = vrsqrt.f32 %v2430_v42  ;;  %2713 = vmatprep.mubr.bf16.mxu1 %v7815_v28 }
 0x80b   :  { %v2502_v1 = vmul.f32 %v6964_v44, %v2474_v53  ;;  %v6999_v5 = vadd.f32 %v6978_v48, %v2501_v3 }
 0x80d   :  { %v7002_v55 = vadd.f32 %v6978_v48, %v2502_v1 }
 0x80e   :  { %v4816_v59 = vpop.eup %4815 }
 0x80f   :  { %v2368_v47 = vpop.xlane.xlu0 %2367  ;;  %v2552_v36 = vpack.c.bf16 %v7002_v55, %v6999_v5  ;;  %v2475_v49 = vmul.f32 %v4816_v59, %v6867_v17 }
 0x810   :  { %v4818_v60 = vpop.eup %4817  ;;  %v2407_v34 = vmul.f32 0.0078125, %v2368_v47 }
 0x811   :  { %v2370_v33 = vpop.xlane.xlu1 %2369  ;;  %2714 = vmatmul.mubr.bf16.gmra.mrb[100].mxu1 %v2552_v36  ;;  %v2476_v23 = vmul.f32 %v4818_v60, %v6874_v57  ;;  %v2503_v43 = vmul.f32 %v6964_v44, %v2475_v49 }
 0x812   :  { %v4820_v40 = vpop.eup %4819  ;;  %v2431_v41 = vadd.f32 1e-05, %v2407_v34  ;;  %v2408_v52 = vmul.f32 0.0078125, %v2370_v33  ;;  %2723 = vmatprep.mubr.bf16.mxu1 %v7815_v28 }
 0x813   :  { %v2372_v58 = vpop.xlane.xlu0 %2371  ;;  %v2504_v35 = vmul.f32 %v6964_v44, %v2476_v23  ;;  %v7012_v19 = vadd.f32 %v6978_v48, %v2503_v43  ;;  %v2477_v45 = vmul.f32 %v4820_v40, %v6880_v50 }
 0x814   :  { %v4822_v11 = vpop.eup %4821  ;;  %4823 = vrsqrt.f32 %v2431_v41  ;;  %v2432_v13 = vadd.f32 1e-05, %v2408_v52  ;;  %v2409_v17 = vmul.f32 0.0078125, %v2372_v58 }
 0x815   :  { %v2374_v37 = vpop.xlane.xlu1 %2373  ;;  %v7015_v57 = vadd.f32 %v6978_v48, %v2504_v35  ;;  %v2478_v25 = vmul.f32 %v4822_v11, %v6885_v39  ;;  %v2505_v54 = vmul.f32 %v6964_v44, %v2477_v45  ;;  %v4615_v45 = vld [vmem:[#allocation7 + $0x40] sm:$0xff]  }
 0x816   :  { %4825 = vrsqrt.f32 %v2432_v13  ;;  %v2433_v15 = vadd.f32 1e-05, %v2409_v17  ;;  %v2410_v4 = vmul.f32 0.0078125, %v2374_v37  ;;  %4276 = vmatprep.subr.bf16.mxu0 %v4615_v45  ;;  %v4624_v45 = vld [vmem:[#allocation7 + $0x20] sm:$0xff]  }
 0x817   :  { %v2553_v61 = vpack.c.bf16 %v7015_v57, %v7012_v19  ;;  %v2506_v56 = vmul.f32 %v6964_v44, %v2478_v25  ;;  %v7028_v39 = vadd.f32 %v6978_v48, %v2505_v54  ;;  %v4616_v25 = vld [vmem:[#allocation7] sm:$0xff]  }
 0x818   :  { %4827 = vrsqrt.f32 %v2433_v15  ;;  %v2434_v24 = vadd.f32 1e-05, %v2410_v4  ;;  %v4617_v15 = vld [vmem:[#allocation7 + $0x48] sm:$0xff]   ;;  %4277 = vmatpush3.bf16.msra.mxu0 %v4616_v25 }
 0x819   :  { %2724 = vmatmul.mubr.bf16.gmra.mrb[104].mxu1 %v2553_v61  ;;  %v7025_v50 = vadd.f32 %v6978_v48, %v2506_v56  ;;  %4278 = vmatprep.subr.bf16.mxu0 %v4617_v15  ;;  %v4619_v61 = vld [vmem:[#allocation7 + $0x50] sm:$0xff]  }
 0x81a   :  { %4829 = vrsqrt.f32 %v2434_v24  ;;  %2733 = vmatprep.mubr.bf16.mxu1 %v7815_v28 }
 0x81b   :  { %v2554_v26 = vpack.c.bf16 %v7025_v50, %v7028_v39 }
 0x81e   :  { %v4824_v6 = vpop.eup %4823 }
 0x81f   :  { %v2376_v46 = vpop.xlane.xlu0 %2375  ;;  %v2479_v0 = vmul.f32 %v4824_v6, %v6892_v20 }
 0x820   :  { %v4826_v42 = vpop.eup %4825  ;;  %v2411_v53 = vmul.f32 0.0078125, %v2376_v46 }
 0x821   :  { %v2378_v3 = vpop.xlane.xlu1 %2377  ;;  %2734 = vmatmul.mubr.bf16.gmra.mrb[108].mxu1 %v2554_v26  ;;  %v2480_v1 = vmul.f32 %v4826_v42, %v6895_v16  ;;  %v2507_v59 = vmul.f32 %v6964_v44, %v2479_v0  ;;  %v4620_v0 = vld [vmem:[#allocation7 + $0x10] sm:$0xff]  }
 0x822   :  { %v4828_v47 = vpop.eup %4827  ;;  %v2435_v36 = vadd.f32 1e-05, %v2411_v53  ;;  %v2412_v49 = vmul.f32 0.0078125, %v2378_v3  ;;  %2743 = vmatprep.mubr.bf16.mxu1 %v7815_v28 }
 0x823   :  { %v2380_v60 = vpop.xlane.xlu0 %2379  ;;  %v2508_v34 = vmul.f32 %v6964_v44, %v2480_v1  ;;  %v7038_v40 = vadd.f32 %v6978_v48, %v2507_v59  ;;  %v2481_v41 = vmul.f32 %v4828_v47, %v6900_v8  ;;  %v4621_v1 = vld [vmem:[#allocation7 + $0x58] sm:$0xff]  }
 0x824   :  { %v4830_v33 = vpop.eup %4829  ;;  %4831 = vrsqrt.f32 %v2435_v36  ;;  %v2436_v23 = vadd.f32 1e-05, %v2412_v49  ;;  %v2413_v20 = vmul.f32 0.0078125, %v2380_v60 }
 0x825   :  { %v2382_v43 = vpop.xlane.xlu1 %2381  ;;  %v7041_v16 = vadd.f32 %v6978_v48, %v2508_v34  ;;  %v2482_v52 = vmul.f32 %v4830_v33, %v6905_v30  ;;  %v2509_v37 = vmul.f32 %v6964_v44, %v2481_v41  ;;  %v4618_v30 = vld [vmem:[#allocation7 + $0x8] sm:$0xff]  }
 0x826   :  { %4833 = vrsqrt.f32 %v2436_v23  ;;  %v2437_v58 = vadd.f32 1e-05, %v2413_v20  ;;  %v2414_v35 = vmul.f32 0.0078125, %v2382_v43  ;;  %4279 = vmatpush3.bf16.msra.mxu0 %v4618_v30  ;;  %v4622_v23 = vld [vmem:[#allocation7 + $0x18] sm:$0xff]  }
 0x827   :  { %v2555_v11 = vpack.c.bf16 %v7041_v16, %v7038_v40  ;;  %v2510_v13 = vmul.f32 %v6964_v44, %v2482_v52  ;;  %v7054_v4 = vadd.f32 %v6978_v48, %v2509_v37  ;;  %4280 = vmatprep.subr.bf16.mxu0 %v4619_v61 }
 0x828   :  { %4835 = vrsqrt.f32 %v2437_v58  ;;  %v2438_v17 = vadd.f32 1e-05, %v2414_v35  ;;  %v4623_v58 = vld [vmem:[#allocation7 + $0x60] sm:$0xff]  }
 0x829   :  { %2744 = vmatmul.mubr.bf16.gmra.mrb[112].mxu1 %v2555_v11  ;;  %v7051_v8 = vadd.f32 %v6978_v48, %v2510_v13 }
 0x82a   :  { %4837 = vrsqrt.f32 %v2438_v17  ;;  %2753 = vmatprep.mubr.bf16.mxu1 %v7815_v28  ;;  %4281 = vmatpush3.bf16.msra.mxu0 %v4620_v0 }
 0x82b   :  { %v2556_v54 = vpack.c.bf16 %v7051_v8, %v7054_v4  ;;  %4282 = vmatprep.subr.bf16.mxu0 %v4621_v1 }
 0x82e   :  { %v4832_v56 = vpop.eup %4831  ;;  %4283 = vmatpush3.bf16.msra.mxu0 %v4622_v23 }
 0x82f   :  { %v2384_v24 = vpop.xlane.xlu0 %2383  ;;  %v2483_v6 = vmul.f32 %v4832_v56, %v6913_v7  ;;  %4284 = vmatprep.subr.bf16.mxu0 %v4623_v58 }
 0x830   :  { %v4834_v46 = vpop.eup %4833  ;;  %v2415_v26 = vmul.f32 0.0078125, %v2384_v24 }
 0x831   :  { %v2386_v42 = vpop.xlane.xlu1 %2385  ;;  %2754 = vmatmul.mubr.bf16.gmra.mrb[116].mxu1 %v2556_v54  ;;  %v2484_v53 = vmul.f32 %v4834_v46, %v6916_v27  ;;  %v2511_v3 = vmul.f32 %v6964_v44, %v2483_v6 }
 0x832   :  { %v4836_v59 = vpop.eup %4835  ;;  %v2439_v47 = vadd.f32 1e-05, %v2415_v26  ;;  %v2416_v36 = vmul.f32 0.0078125, %v2386_v42  ;;  %2763 = vmatprep.mubr.bf16.mxu1 %v7815_v28  ;;  %4285 = vmatpush3.bf16.msra.mxu0 %v4624_v45 }
 0x833   :  { %v2388_v49 = vpop.xlane.xlu0 %2387  ;;  %v2512_v7 = vmul.f32 %v6964_v44, %v2484_v53  ;;  %v7064_v27 = vadd.f32 %v6978_v48, %v2511_v3  ;;  %v2485_v41 = vmul.f32 %v4836_v59, %v6921_v31  ;;  %v4625_v31 = vld [vmem:[#allocation7 + $0x68] sm:$0xff]  }
 0x834   :  { %v4838_v60 = vpop.eup %4837  ;;  %4839 = vrsqrt.f32 %v2439_v47  ;;  %v2440_v34 = vadd.f32 1e-05, %v2416_v36  ;;  %v2417_v33 = vmul.f32 0.0078125, %v2388_v49  ;;  %4286 = vmatprep.subr.bf16.mxu0 %v4625_v31  ;;  %v4627_v49 = vld [vmem:[#allocation7 + $0x70] sm:$0xff]  }
 0x835   :  { %v2390_v20 = vpop.xlane.xlu1 %2389  ;;  %v7067_v43 = vadd.f32 %v6978_v48, %v2512_v7  ;;  %v2486_v52 = vmul.f32 %v4838_v60, %v6926_v21  ;;  %v2513_v25 = vmul.f32 %v6964_v44, %v2485_v41  ;;  %v4628_v7 = vld [vmem:[#allocation7 + $0x30] sm:$0xff]   ;;  %v4629_v60 = vld [vmem:[#allocation7 + $0x78] sm:$0xff]  }
 0x836   :  { %4841 = vrsqrt.f32 %v2440_v34  ;;  %v2441_v35 = vadd.f32 1e-05, %v2417_v33  ;;  %v2418_v11 = vmul.f32 0.0078125, %v2390_v20  ;;  %v4630_v34 = vld [vmem:[#allocation7 + $0x38] sm:$0xff]  }
 0x837   :  { %v2557_v13 = vpack.c.bf16 %v7067_v43, %v7064_v27  ;;  %v2514_v17 = vmul.f32 %v6964_v44, %v2486_v52  ;;  %v7080_v15 = vadd.f32 %v6978_v48, %v2513_v25 }
 0x838   :  { %4843 = vrsqrt.f32 %v2441_v35  ;;  %v2442_v37 = vadd.f32 1e-05, %v2418_v11 }
 0x839   :  { %2764 = vmatmul.mubr.bf16.gmra.mrb[120].mxu1 %v2557_v13  ;;  %v7077_v21 = vadd.f32 %v6978_v48, %v2514_v17 }
 0x83a   :  { %4845 = vrsqrt.f32 %v2442_v37  ;;  %2773 = vmatprep.mubr.bf16.mxu1 %v7815_v28 }
 0x83b   :  { %v2558_v61 = vpack.c.bf16 %v7077_v21, %v7080_v15 }
 0x83e   :  { %v4840_v30 = vpop.eup %4839 }
 0x83f   :  { %v2487_v56 = vmul.f32 %v4840_v30, %v6933_v62 }
 0x840   :  { %v4842_v24 = vpop.eup %4841 }
 0x841   :  { %2774 = vmatmul.mubr.bf16.gmra.mrb[124].mxu1 %v2558_v61  ;;  %v2488_v54 = vmul.f32 %v4842_v24, %v6936_v18  ;;  %v2515_v6 = vmul.f32 %v6964_v44, %v2487_v56 }
 0x842   :  { %v4844_v46 = vpop.eup %4843  ;;  %2783 = vmatprep.mubr.bf16.mxu1 %v7815_v28 }
 0x843   :  { %v2516_v26 = vmul.f32 %v6964_v44, %v2488_v54  ;;  %v7090_v42 = vadd.f32 %v6978_v48, %v2515_v6  ;;  %v2489_v62 = vmul.f32 %v4844_v46, %v6941_v10 }
 0x844   :  { %v4846_v0 = vpop.eup %4845 }
 0x845   :  { %v7093_v53 = vadd.f32 %v6978_v48, %v2516_v26  ;;  %v2490_v3 = vmul.f32 %v4846_v0, %v6946_v12  ;;  %v2517_v59 = vmul.f32 %v6964_v44, %v2489_v62  ;;  %v4626_v12 = vld [vmem:[#allocation7 + $0x28] sm:$0xff]  }
 0x846   :  { %4287 = vmatpush3.bf16.msra.mxu0 %v4626_v12 }
 0x847   :  { %v2559_v18 = vpack.c.bf16 %v7093_v53, %v7090_v42  ;;  %v2518_v1 = vmul.f32 %v6964_v44, %v2490_v3  ;;  %v7106_v36 = vadd.f32 %v6978_v48, %v2517_v59  ;;  %4288 = vmatprep.subr.bf16.mxu0 %v4627_v49 }
 0x849   :  { %2784 = vmatmul.mubr.bf16.gmra.mrb[128].mxu1 %v2559_v18  ;;  %v7103_v47 = vadd.f32 %v6978_v48, %v2518_v1 }
 0x84a   :  { %2793 = vmatprep.mubr.bf16.mxu1 %v7815_v28  ;;  %4289 = vmatpush3.bf16.msra.mxu0 %v4628_v7 }
 0x84b   :  { %v2560_v10 = vpack.c.bf16 %v7103_v47, %v7106_v36  ;;  %4290 = vmatprep.subr.bf16.mxu0 %v4629_v60 }
 0x84e   :  { %4291 = vmatpush3.bf16.msra.mxu0 %v4630_v34 }
 0x851   :  { %2794 = vmatmul.mubr.bf16.gmra.mrb[132].mxu1 %v2560_v10 }
 0x852   :  { %2803 = vmatprep.mubr.bf16.mxu1 %v7815_v28 }
 0x887   :  { %v2392_v33 = vpop.xlane.xlu0 %2391 }
 0x888   :  { %v2419_v23 = vmul.f32 0.0078125, %v2392_v33 }
 0x889   :  { %v2394_v20 = vpop.xlane.xlu1 %2393 }
 0x88a   :  { %v2443_v41 = vadd.f32 1e-05, %v2419_v23  ;;  %v2420_v52 = vmul.f32 0.0078125, %v2394_v20 }
 0x88c   :  { %4847 = vrsqrt.f32 %v2443_v41  ;;  %v2444_v58 = vadd.f32 1e-05, %v2420_v52 }
 0x88e   :  { %4849 = vrsqrt.f32 %v2444_v58 }
 0x88f   :  { %v2396_v35 = vpop.xlane.xlu0 %2395 }
 0x890   :  { %v2421_v11 = vmul.f32 0.0078125, %v2396_v35 }
 0x891   :  { %v2398_v13 = vpop.xlane.xlu1 %2397 }
 0x892   :  { %v2445_v17 = vadd.f32 1e-05, %v2421_v11  ;;  %v2422_v37 = vmul.f32 0.0078125, %v2398_v13 }
 0x894   :  { %4851 = vrsqrt.f32 %v2445_v17  ;;  %v2446_v45 = vadd.f32 1e-05, %v2422_v37 }
 0x896   :  { %v4848_v25 = vpop.eup %4847  ;;  %4853 = vrsqrt.f32 %v2446_v45 }
 0x897   :  { %v2491_v31 = vmul.f32 %v4848_v25, %v6953_v32 }
 0x898   :  { %v4850_v30 = vpop.eup %4849 }
 0x899   :  { %v2492_v61 = vmul.f32 %v4850_v30, %v6956_v38  ;;  %v2519_v56 = vmul.f32 %v6964_v44, %v2491_v31 }
 0x89b   :  { %v2520_v24 = vmul.f32 %v6964_v44, %v2492_v61  ;;  %v7116_v54 = vadd.f32 %v6978_v48, %v2519_v56 }
 0x89d   :  { %v7119_v6 = vadd.f32 %v6978_v48, %v2520_v24 }
 0x89e   :  { %v4852_v46 = vpop.eup %4851 }
 0x89f   :  { %v2561_v26 = vpack.c.bf16 %v7119_v6, %v7116_v54  ;;  %v2493_v0 = vmul.f32 %v4852_v46, %v6967_v22  ;;  %v2579_v22 = vld [vmem:[%s7605_s8] sm:$0x3] }
 0x8a0   :  { %v4854_v32 = vpop.eup %4853  ;;  %v7143_v10 = vrot.slane %v2579_v22, %v7816_v29 }
 0x8a1   :  { %2804 = vmatmul.mubr.bf16.gmra.mrb[136].mxu1 %v2561_v26  ;;  %v2494_v38 = vmul.f32 %v4854_v32, %v6971_v14  ;;  %v2521_v62 = vmul.f32 %v6964_v44, %v2493_v0  ;;  %v7140_v14 = vrot.slane %v2579_v22, %v5255_v2 }
 0x8a2   :  { %2813 = vmatprep.mubr.bf16.mxu1 %v7815_v28 }
 0x8a3   :  { %v2522_v3 = vmul.f32 %v6964_v44, %v2494_v38  ;;  %v7129_v18 = vadd.f32 %v6978_v48, %v2521_v62 }
 0x8a5   :  { %v7132_v1 = vadd.f32 %v6978_v48, %v2522_v3 }
 0x8a7   :  { %v2562_v59 = vpack.c.bf16 %v7132_v1, %v7129_v18 }
 0x8a9   :  { %2814 = vmatmul.mubr.bf16.gmra.mrb[140].mxu1 %v2562_v59 }
 0x8dc   :  { %v2705_v44 = vpop.f32.mrb[96].mxu1 }
 0x8dd   :  { %v2706_v12 = vadd.f32 %v2705_v44, %v7140_v14  ;;  %v2707_v49 = vpop.f32.mrb[97].mxu1 }
 0x8de   :  { %v2708_v48 = vadd.f32 %v2707_v49, %v7143_v10  ;;  %v2709_v7 = vpop.f32.mrb[98].mxu1 }
 0x8df   :  { %v2710_v60 = vadd.f32 %v2709_v7, %v7140_v14  ;;  %v2711_v34 = vpop.f32.mrb[99].mxu1  ;;  %v2824_v23 = vmax.f32 %v2706_v12, 0.0 }
 0x8e0   :  { %v2712_v33 = vadd.f32 %v2711_v34, %v7143_v10  ;;  %v2825_v41 = vmax.f32 %v2708_v48, 0.0 }
 0x8e1   :  { %v2826_v20 = vmax.f32 %v2710_v60, 0.0 }
 0x8e2   :  { %v2827_v52 = vmax.f32 %v2712_v33, 0.0 }
 0x8e3   :  { %v2872_v58 = vpack.c.bf16 %v2826_v20, %v2824_v23 }
 0x8e4   :  { %v2873_v35 = vpack.c.bf16 %v2827_v52, %v2825_v41  ;;  %v2715_v11 = vpop.f32.mrb[100].mxu1 }
 0x8e5   :  { %v2716_v13 = vadd.f32 %v2715_v11, %v7140_v14  ;;  %v2717_v17 = vpop.f32.mrb[101].mxu1 }
 0x8e6   :  { %v2718_v37 = vadd.f32 %v2717_v17, %v7143_v10  ;;  %v2719_v45 = vpop.f32.mrb[102].mxu1  ;;  %3060 = vmatprep.mubr.bf16.mxu0 %v2873_v35 }
 0x8e7   :  { %v2720_v25 = vadd.f32 %v2719_v45, %v7140_v14  ;;  %v2721_v31 = vpop.f32.mrb[103].mxu1  ;;  %3061 = vmatmul.mubr.bf16.vlgmr.msra.gmra.mrb[120].mxu0 %v2872_v58  ;;  %v2828_v61 = vmax.f32 %v2716_v13, 0.0 }
 0x8e8   :  { %v2722_v30 = vadd.f32 %v2721_v31, %v7143_v10  ;;  %v2829_v24 = vmax.f32 %v2718_v37, 0.0 }
 0x8e9   :  { %v2830_v56 = vmax.f32 %v2720_v25, 0.0 }
 0x8ea   :  { %v2831_v46 = vmax.f32 %v2722_v30, 0.0 }
 0x8eb   :  { %v2874_v26 = vpack.c.bf16 %v2830_v56, %v2828_v61 }
 0x8ec   :  { %v2875_v0 = vpack.c.bf16 %v2831_v46, %v2829_v24  ;;  %v2725_v32 = vpop.f32.mrb[104].mxu1 }
 0x8ed   :  { %v2726_v38 = vadd.f32 %v2725_v32, %v7140_v14  ;;  %v2727_v62 = vpop.f32.mrb[105].mxu1 }
 0x8ee   :  { %v2728_v3 = vadd.f32 %v2727_v62, %v7143_v10  ;;  %v2729_v59 = vpop.f32.mrb[106].mxu1  ;;  %3068 = vmatprep.mubr.bf16.mxu0 %v2875_v0 }
 0x8ef   :  { %v2730_v22 = vadd.f32 %v2729_v59, %v7140_v14  ;;  %v2731_v44 = vpop.f32.mrb[107].mxu1  ;;  %3069 = vmatmul.mubr.bf16.gmra.mrb[124].mxu0 %v2874_v26  ;;  %v2832_v49 = vmax.f32 %v2726_v38, 0.0 }
 0x8f0   :  { %v2732_v12 = vadd.f32 %v2731_v44, %v7143_v10  ;;  %v2833_v7 = vmax.f32 %v2728_v3, 0.0 }
 0x8f1   :  { %v2834_v48 = vmax.f32 %v2730_v22, 0.0 }
 0x8f2   :  { %v2835_v60 = vmax.f32 %v2732_v12, 0.0 }
 0x8f3   :  { %v2876_v34 = vpack.c.bf16 %v2834_v48, %v2832_v49 }
 0x8f4   :  { %v2877_v33 = vpack.c.bf16 %v2835_v60, %v2833_v7  ;;  %v2735_v23 = vpop.f32.mrb[108].mxu1 }
 0x8f5   :  { %v2736_v20 = vadd.f32 %v2735_v23, %v7140_v14  ;;  %v2737_v41 = vpop.f32.mrb[109].mxu1 }
 0x8f6   :  { %v2738_v52 = vadd.f32 %v2737_v41, %v7143_v10  ;;  %v2739_v58 = vpop.f32.mrb[110].mxu1  ;;  %3076 = vmatprep.mubr.bf16.mxu0 %v2877_v33 }
 0x8f7   :  { %v2740_v35 = vadd.f32 %v2739_v58, %v7140_v14  ;;  %v2741_v11 = vpop.f32.mrb[111].mxu1  ;;  %3077 = vmatmul.mubr.bf16.gmra.mrb[128].mxu0 %v2876_v34  ;;  %v2836_v17 = vmax.f32 %v2736_v20, 0.0 }
 0x8f8   :  { %v2742_v13 = vadd.f32 %v2741_v11, %v7143_v10  ;;  %v2837_v45 = vmax.f32 %v2738_v52, 0.0 }
 0x8f9   :  { %v2838_v37 = vmax.f32 %v2740_v35, 0.0 }
 0x8fa   :  { %v2839_v25 = vmax.f32 %v2742_v13, 0.0 }
 0x8fb   :  { %v2878_v31 = vpack.c.bf16 %v2838_v37, %v2836_v17 }
 0x8fc   :  { %v2879_v30 = vpack.c.bf16 %v2839_v25, %v2837_v45  ;;  %v2745_v61 = vpop.f32.mrb[112].mxu1 }
 0x8fd   :  { %v2746_v56 = vadd.f32 %v2745_v61, %v7140_v14  ;;  %v2747_v24 = vpop.f32.mrb[113].mxu1 }
 0x8fe   :  { %v2748_v46 = vadd.f32 %v2747_v24, %v7143_v10  ;;  %v2749_v26 = vpop.f32.mrb[114].mxu1  ;;  %3084 = vmatprep.mubr.bf16.mxu0 %v2879_v30 }
 0x8ff   :  { %v2750_v0 = vadd.f32 %v2749_v26, %v7140_v14  ;;  %v2751_v32 = vpop.f32.mrb[115].mxu1  ;;  %3085 = vmatmul.mubr.bf16.gmra.mrb[132].mxu0 %v2878_v31  ;;  %v2840_v62 = vmax.f32 %v2746_v56, 0.0 }
 0x900   :  { %v2752_v38 = vadd.f32 %v2751_v32, %v7143_v10  ;;  %v2841_v59 = vmax.f32 %v2748_v46, 0.0 }
 0x901   :  { %v2842_v3 = vmax.f32 %v2750_v0, 0.0 }
 0x902   :  { %v2843_v22 = vmax.f32 %v2752_v38, 0.0 }
 0x903   :  { %v2880_v44 = vpack.c.bf16 %v2842_v3, %v2840_v62 }
 0x904   :  { %v2881_v12 = vpack.c.bf16 %v2843_v22, %v2841_v59  ;;  %v2755_v49 = vpop.f32.mrb[116].mxu1 }
 0x905   :  { %v2756_v48 = vadd.f32 %v2755_v49, %v7140_v14  ;;  %v2757_v7 = vpop.f32.mrb[117].mxu1 }
 0x906   :  { %v2758_v60 = vadd.f32 %v2757_v7, %v7143_v10  ;;  %v2759_v34 = vpop.f32.mrb[118].mxu1  ;;  %3092 = vmatprep.mubr.bf16.mxu0 %v2881_v12 }
 0x907   :  { %v2760_v33 = vadd.f32 %v2759_v34, %v7140_v14  ;;  %v2761_v23 = vpop.f32.mrb[119].mxu1  ;;  %3093 = vmatmul.mubr.bf16.gmra.mrb[136].mxu0 %v2880_v44  ;;  %v2844_v41 = vmax.f32 %v2756_v48, 0.0 }
 0x908   :  { %v2762_v20 = vadd.f32 %v2761_v23, %v7143_v10  ;;  %v2845_v58 = vmax.f32 %v2758_v60, 0.0 }
 0x909   :  { %v2846_v52 = vmax.f32 %v2760_v33, 0.0 }
 0x90a   :  { %v2847_v35 = vmax.f32 %v2762_v20, 0.0 }
 0x90b   :  { %v2882_v11 = vpack.c.bf16 %v2846_v52, %v2844_v41 }
 0x90c   :  { %v2883_v13 = vpack.c.bf16 %v2847_v35, %v2845_v58  ;;  %v2765_v17 = vpop.f32.mrb[120].mxu1 }
 0x90d   :  { %v2766_v37 = vadd.f32 %v2765_v17, %v7140_v14  ;;  %v2767_v45 = vpop.f32.mrb[121].mxu1 }
 0x90e   :  { %v2768_v25 = vadd.f32 %v2767_v45, %v7143_v10  ;;  %v2769_v31 = vpop.f32.mrb[122].mxu1  ;;  %3100 = vmatprep.mubr.bf16.mxu0 %v2883_v13 }
 0x90f   :  { %v2770_v30 = vadd.f32 %v2769_v31, %v7140_v14  ;;  %v2771_v61 = vpop.f32.mrb[123].mxu1  ;;  %3101 = vmatmul.mubr.bf16.gmra.mrb[140].mxu0 %v2882_v11  ;;  %v2848_v24 = vmax.f32 %v2766_v37, 0.0 }
 0x910   :  { %v2772_v56 = vadd.f32 %v2771_v61, %v7143_v10  ;;  %v2849_v26 = vmax.f32 %v2768_v25, 0.0 }
 0x911   :  { %v2850_v46 = vmax.f32 %v2770_v30, 0.0 }
 0x912   :  { %v2851_v0 = vmax.f32 %v2772_v56, 0.0 }
 0x913   :  { %v2884_v32 = vpack.c.bf16 %v2850_v46, %v2848_v24 }
 0x914   :  { %v2885_v38 = vpack.c.bf16 %v2851_v0, %v2849_v26  ;;  %v2775_v62 = vpop.f32.mrb[124].mxu1 }
 0x915   :  { %v2776_v3 = vadd.f32 %v2775_v62, %v7140_v14  ;;  %v2777_v59 = vpop.f32.mrb[125].mxu1 }
 0x916   :  { %v2778_v22 = vadd.f32 %v2777_v59, %v7143_v10  ;;  %v2779_v44 = vpop.f32.mrb[126].mxu1  ;;  %3108 = vmatprep.mubr.bf16.mxu0 %v2885_v38 }
 0x917   :  { %v2780_v12 = vadd.f32 %v2779_v44, %v7140_v14  ;;  %v2781_v49 = vpop.f32.mrb[127].mxu1  ;;  %3109 = vmatmul.mubr.bf16.gmra.mrb[144].mxu0 %v2884_v32  ;;  %v2852_v7 = vmax.f32 %v2776_v3, 0.0 }
 0x918   :  { %v2782_v48 = vadd.f32 %v2781_v49, %v7143_v10  ;;  %v2853_v34 = vmax.f32 %v2778_v22, 0.0 }
 0x919   :  { %v2854_v60 = vmax.f32 %v2780_v12, 0.0 }
 0x91a   :  { %v2855_v33 = vmax.f32 %v2782_v48, 0.0 }
 0x91b   :  { %v2886_v23 = vpack.c.bf16 %v2854_v60, %v2852_v7 }
 0x91c   :  { %v2887_v20 = vpack.c.bf16 %v2855_v33, %v2853_v34  ;;  %v2785_v41 = vpop.f32.mrb[128].mxu1 }
 0x91d   :  { %v2786_v52 = vadd.f32 %v2785_v41, %v7140_v14  ;;  %v2787_v58 = vpop.f32.mrb[129].mxu1 }
 0x91e   :  { %v2788_v35 = vadd.f32 %v2787_v58, %v7143_v10  ;;  %v2789_v11 = vpop.f32.mrb[130].mxu1  ;;  %3116 = vmatprep.mubr.bf16.mxu0 %v2887_v20 }
 0x91f   :  { %v2790_v13 = vadd.f32 %v2789_v11, %v7140_v14  ;;  %v2791_v17 = vpop.f32.mrb[131].mxu1  ;;  %3117 = vmatmul.mubr.bf16.gmra.mrb[148].mxu0 %v2886_v23  ;;  %v2856_v45 = vmax.f32 %v2786_v52, 0.0 }
 0x920   :  { %v2792_v37 = vadd.f32 %v2791_v17, %v7143_v10  ;;  %v2857_v31 = vmax.f32 %v2788_v35, 0.0 }
 0x921   :  { %v2858_v25 = vmax.f32 %v2790_v13, 0.0 }
 0x922   :  { %v2859_v30 = vmax.f32 %v2792_v37, 0.0 }
 0x923   :  { %v2888_v61 = vpack.c.bf16 %v2858_v25, %v2856_v45 }
 0x924   :  { %v2889_v56 = vpack.c.bf16 %v2859_v30, %v2857_v31  ;;  %v2795_v24 = vpop.f32.mrb[132].mxu1 }
 0x925   :  { %v2796_v46 = vadd.f32 %v2795_v24, %v7140_v14  ;;  %v2797_v26 = vpop.f32.mrb[133].mxu1 }
 0x926   :  { %v2798_v0 = vadd.f32 %v2797_v26, %v7143_v10  ;;  %v2799_v32 = vpop.f32.mrb[134].mxu1  ;;  %3124 = vmatprep.mubr.bf16.mxu0 %v2889_v56 }
 0x927   :  { %v2800_v38 = vadd.f32 %v2799_v32, %v7140_v14  ;;  %v2801_v62 = vpop.f32.mrb[135].mxu1  ;;  %3125 = vmatmul.mubr.bf16.gmra.mrb[152].mxu0 %v2888_v61  ;;  %v2860_v59 = vmax.f32 %v2796_v46, 0.0 }
 0x928   :  { %v2802_v3 = vadd.f32 %v2801_v62, %v7143_v10  ;;  %v2861_v44 = vmax.f32 %v2798_v0, 0.0 }
 0x929   :  { %v2862_v22 = vmax.f32 %v2800_v38, 0.0 }
 0x92a   :  { %v2863_v12 = vmax.f32 %v2802_v3, 0.0 }
 0x92b   :  { %v2890_v49 = vpack.c.bf16 %v2862_v22, %v2860_v59  ;;  %v2930_v59 = vsub.s32 3, %v7817_v51  ;;  %v7197_v22 = vld [vmem:[%s7610_s13] sm:$0xff] }
 0x92c   :  { %v2891_v48 = vpack.c.bf16 %v2863_v12, %v2861_v44 }
 0x92e   :  { %3132 = vmatprep.mubr.bf16.mxu0 %v2891_v48 }
 0x92f   :  { %3133 = vmatmul.mubr.bf16.gmra.mrb[156].mxu0 %v2890_v49 }
 0x974   :  { %v2805_v7 = vpop.f32.mrb[136].mxu1 }
 0x975   :  { %v2806_v60 = vadd.f32 %v2805_v7, %v7140_v14  ;;  %v2807_v34 = vpop.f32.mrb[137].mxu1 }
 0x976   :  { %v2808_v33 = vadd.f32 %v2807_v34, %v7143_v10  ;;  %v2809_v23 = vpop.f32.mrb[138].mxu1 }
 0x977   :  { %v2810_v20 = vadd.f32 %v2809_v23, %v7140_v14  ;;  %v2811_v41 = vpop.f32.mrb[139].mxu1  ;;  %v2864_v58 = vmax.f32 %v2806_v60, 0.0 }
 0x978   :  { %v2812_v52 = vadd.f32 %v2811_v41, %v7143_v10  ;;  %v2865_v11 = vmax.f32 %v2808_v33, 0.0 }
 0x979   :  { %v2866_v35 = vmax.f32 %v2810_v20, 0.0 }
 0x97a   :  { %v2867_v13 = vmax.f32 %v2812_v52, 0.0 }
 0x97b   :  { %v2892_v17 = vpack.c.bf16 %v2866_v35, %v2864_v58 }
 0x97c   :  { %v2893_v37 = vpack.c.bf16 %v2867_v13, %v2865_v11  ;;  %v2815_v45 = vpop.f32.mrb[140].mxu1 }
 0x97d   :  { %v2816_v25 = vadd.f32 %v2815_v45, %v7140_v14  ;;  %v2817_v31 = vpop.f32.mrb[141].mxu1 }
 0x97e   :  { %v2818_v30 = vadd.f32 %v2817_v31, %v7143_v10  ;;  %v2819_v61 = vpop.f32.mrb[142].mxu1  ;;  %3140 = vmatprep.mubr.bf16.mxu0 %v2893_v37 }
 0x97f   :  { %v2820_v56 = vadd.f32 %v2819_v61, %v7140_v14  ;;  %v2821_v24 = vpop.f32.mrb[143].mxu1  ;;  %3141 = vmatmul.mubr.bf16.gmra.mrb[160].mxu0 %v2892_v17  ;;  %v2868_v26 = vmax.f32 %v2816_v25, 0.0  ;;  %v7200_v14 = vrot.slane %v7197_v22, %v2930_v59 }
 0x980   :  { %v2822_v46 = vadd.f32 %v2821_v24, %v7143_v10  ;;  %v2869_v32 = vmax.f32 %v2818_v30, 0.0 }
 0x981   :  { %v2870_v0 = vmax.f32 %v2820_v56, 0.0 }
 0x982   :  { %v2871_v38 = vmax.f32 %v2822_v46, 0.0 }
 0x983   :  { %v2894_v62 = vpack.c.bf16 %v2870_v0, %v2868_v26 }
 0x984   :  { %v2895_v3 = vpack.c.bf16 %v2871_v38, %v2869_v32 }
 0x986   :  { %3148 = vmatprep.mubr.bf16.mxu0 %v2895_v3 }
 0x987   :  { %3149 = vmatmul.mubr.bf16.gmra.mrb[164].mxu0 %v2894_v62 }
 0x9ba   :  { %v4292_v44 = vpop.f32.mrb[120].mxu0 }
 0x9bb   :  { %v4293_v10 = vpop.f32.mrb[121].mxu0 }
 0x9bc   :  { %v4294_v12 = vadd.f32 %v4293_v10, %v4292_v44  ;;  %v4295_v49 = vpop.f32.mrb[122].mxu0 }
 0x9bd   :  { %v4296_v48 = vpop.f32.mrb[123].mxu0 }
 0x9be   :  { %v3063_v7 = vadd.f32 %v4294_v12, %v7200_v14  ;;  %v4297_v60 = vadd.f32 %v4296_v48, %v4295_v49 }
 0x9c0   :  { %v3066_v34 = vadd.f32 %v4297_v60, %v7200_v14  ;;  %v7205_v33 = vadd.f32 %v3063_v7, %v6986_v9 }
 0x9c2   :  { %v4298_v23 = vpop.f32.mrb[124].mxu0  ;;  %3181 = vadd.xlane.f32.xlu0 %v7205_v33  ;;  %v7209_v20 = vadd.f32 %v3066_v34, %v6989_v63 }
 0x9c3   :  { %v4299_v41 = vpop.f32.mrb[125].mxu0 }
 0x9c4   :  { %v4300_v52 = vadd.f32 %v4299_v41, %v4298_v23  ;;  %3183 = vadd.xlane.f32.xlu1 %v7209_v20  ;;  %v4301_v58 = vpop.f32.mrb[126].mxu0 }
 0x9c5   :  { %v4302_v35 = vpop.f32.mrb[127].mxu0 }
 0x9c6   :  { %v3071_v11 = vadd.f32 %v4300_v52, %v7200_v14  ;;  %v4303_v13 = vadd.f32 %v4302_v35, %v4301_v58 }
 0x9c8   :  { %v3074_v17 = vadd.f32 %v4303_v13, %v7200_v14  ;;  %v7215_v9 = vadd.f32 %v3071_v11, %v6999_v5 }
 0x9ca   :  { %3185 = vadd.xlane.f32.xlu0 %v7215_v9  ;;  %v4304_v37 = vpop.f32.mrb[128].mxu0  ;;  %v7219_v63 = vadd.f32 %v3074_v17, %v7002_v55 }
 0x9cb   :  { %v4305_v45 = vpop.f32.mrb[129].mxu0 }
 0x9cc   :  { %v4306_v25 = vadd.f32 %v4305_v45, %v4304_v37  ;;  %3187 = vadd.xlane.f32.xlu1 %v7219_v63  ;;  %v4307_v31 = vpop.f32.mrb[130].mxu0 }
 0x9cd   :  { %v4308_v30 = vpop.f32.mrb[131].mxu0 }
 0x9ce   :  { %v3079_v61 = vadd.f32 %v4306_v25, %v7200_v14  ;;  %v4309_v56 = vadd.f32 %v4308_v30, %v4307_v31 }
 0x9d0   :  { %v3082_v24 = vadd.f32 %v4309_v56, %v7200_v14  ;;  %v7225_v5 = vadd.f32 %v3079_v61, %v7012_v19 }
 0x9d2   :  { %3189 = vadd.xlane.f32.xlu0 %v7225_v5  ;;  %v4310_v46 = vpop.f32.mrb[132].mxu0  ;;  %v7229_v55 = vadd.f32 %v3082_v24, %v7015_v57 }
 0x9d3   :  { %v4311_v26 = vpop.f32.mrb[133].mxu0 }
 0x9d4   :  { %v4312_v0 = vadd.f32 %v4311_v26, %v4310_v46  ;;  %3191 = vadd.xlane.f32.xlu1 %v7229_v55  ;;  %v4313_v32 = vpop.f32.mrb[134].mxu0 }
 0x9d5   :  { %v4314_v38 = vpop.f32.mrb[135].mxu0 }
 0x9d6   :  { %v3087_v62 = vadd.f32 %v4312_v0, %v7200_v14  ;;  %v4315_v3 = vadd.f32 %v4314_v38, %v4313_v32 }
 0x9d8   :  { %v3090_v59 = vadd.f32 %v4315_v3, %v7200_v14  ;;  %v7235_v19 = vadd.f32 %v3087_v62, %v7028_v39 }
 0x9da   :  { %3193 = vadd.xlane.f32.xlu0 %v7235_v19  ;;  %v4316_v44 = vpop.f32.mrb[136].mxu0  ;;  %v7239_v57 = vadd.f32 %v3090_v59, %v7025_v50 }
 0x9db   :  { %v4317_v10 = vpop.f32.mrb[137].mxu0 }
 0x9dc   :  { %v4318_v12 = vadd.f32 %v4317_v10, %v4316_v44  ;;  %3195 = vadd.xlane.f32.xlu1 %v7239_v57  ;;  %v4319_v49 = vpop.f32.mrb[138].mxu0 }
 0x9dd   :  { %v4320_v48 = vpop.f32.mrb[139].mxu0 }
 0x9de   :  { %v3095_v7 = vadd.f32 %v4318_v12, %v7200_v14  ;;  %v4321_v60 = vadd.f32 %v4320_v48, %v4319_v49 }
 0x9e0   :  { %v3098_v34 = vadd.f32 %v4321_v60, %v7200_v14  ;;  %v7245_v39 = vadd.f32 %v3095_v7, %v7038_v40 }
 0x9e2   :  { %3197 = vadd.xlane.f32.xlu0 %v7245_v39  ;;  %v4322_v23 = vpop.f32.mrb[140].mxu0  ;;  %v7249_v50 = vadd.f32 %v3098_v34, %v7041_v16 }
 0x9e3   :  { %v4323_v41 = vpop.f32.mrb[141].mxu0 }
 0x9e4   :  { %v4324_v52 = vadd.f32 %v4323_v41, %v4322_v23  ;;  %3199 = vadd.xlane.f32.xlu1 %v7249_v50  ;;  %v4325_v58 = vpop.f32.mrb[142].mxu0 }
 0x9e5   :  { %v4326_v35 = vpop.f32.mrb[143].mxu0 }
 0x9e6   :  { %v3103_v11 = vadd.f32 %v4324_v52, %v7200_v14  ;;  %v4327_v13 = vadd.f32 %v4326_v35, %v4325_v58 }
 0x9e8   :  { %v3106_v17 = vadd.f32 %v4327_v13, %v7200_v14  ;;  %v7255_v40 = vadd.f32 %v3103_v11, %v7054_v4 }
 0x9ea   :  { %3201 = vadd.xlane.f32.xlu0 %v7255_v40  ;;  %v4328_v37 = vpop.f32.mrb[144].mxu0  ;;  %v7259_v16 = vadd.f32 %v3106_v17, %v7051_v8 }
 0x9eb   :  { %v4329_v45 = vpop.f32.mrb[145].mxu0 }
 0x9ec   :  { %v4330_v25 = vadd.f32 %v4329_v45, %v4328_v37  ;;  %3203 = vadd.xlane.f32.xlu1 %v7259_v16  ;;  %v4331_v31 = vpop.f32.mrb[146].mxu0 }
 0x9ed   :  { %v4332_v30 = vpop.f32.mrb[147].mxu0 }
 0x9ee   :  { %v3111_v61 = vadd.f32 %v4330_v25, %v7200_v14  ;;  %v4333_v56 = vadd.f32 %v4332_v30, %v4331_v31 }
 0x9f0   :  { %v3114_v24 = vadd.f32 %v4333_v56, %v7200_v14  ;;  %v7265_v4 = vadd.f32 %v3111_v61, %v7064_v27 }
 0x9f2   :  { %3205 = vadd.xlane.f32.xlu0 %v7265_v4  ;;  %v4334_v46 = vpop.f32.mrb[148].mxu0  ;;  %v7269_v8 = vadd.f32 %v3114_v24, %v7067_v43 }
 0x9f3   :  { %v4335_v26 = vpop.f32.mrb[149].mxu0 }
 0x9f4   :  { %v4336_v0 = vadd.f32 %v4335_v26, %v4334_v46  ;;  %3207 = vadd.xlane.f32.xlu1 %v7269_v8  ;;  %v4337_v32 = vpop.f32.mrb[150].mxu0 }
 0x9f5   :  { %v4338_v38 = vpop.f32.mrb[151].mxu0 }
 0x9f6   :  { %v3119_v62 = vadd.f32 %v4336_v0, %v7200_v14  ;;  %v4339_v3 = vadd.f32 %v4338_v38, %v4337_v32 }
 0x9f8   :  { %v3122_v59 = vadd.f32 %v4339_v3, %v7200_v14  ;;  %v7275_v27 = vadd.f32 %v3119_v62, %v7080_v15 }
 0x9fa   :  { %3209 = vadd.xlane.f32.xlu0 %v7275_v27  ;;  %v4340_v44 = vpop.f32.mrb[152].mxu0  ;;  %v7279_v43 = vadd.f32 %v3122_v59, %v7077_v21 }
 0x9fb   :  { %v4341_v10 = vpop.f32.mrb[153].mxu0 }
 0x9fc   :  { %v4342_v12 = vadd.f32 %v4341_v10, %v4340_v44  ;;  %3211 = vadd.xlane.f32.xlu1 %v7279_v43  ;;  %v4343_v49 = vpop.f32.mrb[154].mxu0 }
 0x9fd   :  { %v4344_v48 = vpop.f32.mrb[155].mxu0 }
 0x9fe   :  { %v3127_v7 = vadd.f32 %v4342_v12, %v7200_v14  ;;  %v4345_v60 = vadd.f32 %v4344_v48, %v4343_v49 }
 0xa00   :  { %v3130_v34 = vadd.f32 %v4345_v60, %v7200_v14  ;;  %v7285_v15 = vadd.f32 %v3127_v7, %v7090_v42 }
 0xa02   :  { %3213 = vadd.xlane.f32.xlu0 %v7285_v15  ;;  %v4346_v23 = vpop.f32.mrb[156].mxu0  ;;  %v7289_v21 = vadd.f32 %v3130_v34, %v7093_v53 }
 0xa03   :  { %v4347_v41 = vpop.f32.mrb[157].mxu0 }
 0xa04   :  { %v4348_v52 = vadd.f32 %v4347_v41, %v4346_v23  ;;  %3215 = vadd.xlane.f32.xlu1 %v7289_v21  ;;  %v4349_v58 = vpop.f32.mrb[158].mxu0 }
 0xa05   :  { %v4350_v35 = vpop.f32.mrb[159].mxu0 }
 0xa06   :  { %v3135_v11 = vadd.f32 %v4348_v52, %v7200_v14  ;;  %v4351_v13 = vadd.f32 %v4350_v35, %v4349_v58 }
 0xa08   :  { %v3138_v17 = vadd.f32 %v4351_v13, %v7200_v14  ;;  %v7295_v42 = vadd.f32 %v3135_v11, %v7106_v36 }
 0xa0a   :  { %3217 = vadd.xlane.f32.xlu0 %v7295_v42  ;;  %v7299_v37 = vadd.f32 %v3138_v17, %v7103_v47 }
 0xa0c   :  { %3219 = vadd.xlane.f32.xlu1 %v7299_v37 }
 0xa4f   :  { %v3182_v46 = vpop.xlane.xlu0 %3181 }
 0xa50   :  { %v3229_v38 = vmul.f32 0.0078125, %v3182_v46 }
 0xa51   :  { %v3184_v0 = vpop.xlane.xlu1 %3183 }
 0xa52   :  { %v4352_v53 = vpop.f32.mrb[160].mxu0  ;;  %v3230_v10 = vmul.f32 0.0078125, %v3184_v0  ;;  %v7314_v48 = vsub.f32 %v7205_v33, %v3229_v38 }
 0xa53   :  { %v4353_v45 = vpop.f32.mrb[161].mxu0 }
 0xa54   :  { %v4354_v25 = vadd.f32 %v4353_v45, %v4352_v53  ;;  %v4355_v31 = vpop.f32.mrb[162].mxu0  ;;  %v7321_v23 = vsub.f32 %v7209_v20, %v3230_v10 }
 0xa55   :  { %v4356_v30 = vpop.f32.mrb[163].mxu0 }
 0xa56   :  { %v3143_v61 = vadd.f32 %v4354_v25, %v7200_v14  ;;  %v4357_v56 = vadd.f32 %v4356_v30, %v4355_v31  ;;  %v3278_v11 = vmul.f32 %v7321_v23, %v7321_v23 }
 0xa57   :  { %v3186_v59 = vpop.xlane.xlu0 %3185 }
 0xa58   :  { %v3146_v24 = vadd.f32 %v4357_v56, %v7200_v14  ;;  %v7305_v36 = vadd.f32 %v3143_v61, %v7116_v54  ;;  %v3231_v7 = vmul.f32 0.0078125, %v3186_v59 }
 0xa59   :  { %v3188_v49 = vpop.xlane.xlu1 %3187 }
 0xa5a   :  { %3221 = vadd.xlane.f32.xlu0 %v7305_v36  ;;  %v4358_v47 = vpop.f32.mrb[164].mxu0  ;;  %v7309_v26 = vadd.f32 %v3146_v24, %v7119_v6  ;;  %v3232_v41 = vmul.f32 0.0078125, %v3188_v49  ;;  %v7328_v33 = vsub.f32 %v7215_v9, %v3231_v7 }
 0xa5b   :  { %v4359_v32 = vpop.f32.mrb[165].mxu0 }
 0xa5c   :  { %v4360_v62 = vadd.f32 %v4359_v32, %v4358_v47  ;;  %3223 = vadd.xlane.f32.xlu1 %v7309_v26  ;;  %v4361_v3 = vpop.f32.mrb[166].mxu0  ;;  %v3279_v17 = vmul.f32 %v7328_v33, %v7328_v33 }
 0xa5d   :  { %v4362_v44 = vpop.f32.mrb[167].mxu0 }
 0xa5e   :  { %v3151_v54 = vadd.f32 %v4360_v62, %v7200_v14  ;;  %v4363_v12 = vadd.f32 %v4362_v44, %v4361_v3 }
 0xa5f   :  { %v3190_v34 = vpop.xlane.xlu0 %3189 }
 0xa60   :  { %v3154_v6 = vadd.f32 %v4363_v12, %v7200_v14  ;;  %v7318_v60 = vadd.f32 %v3151_v54, %v7129_v18  ;;  %v3233_v35 = vmul.f32 0.0078125, %v3190_v34  ;;  %v3277_v18 = vmul.f32 %v7314_v48, %v7314_v48 }
 0xa61   :  { %v3192_v58 = vpop.xlane.xlu1 %3191  ;;  %v7334_v14 = vsub.f32 %v7219_v63, %v3232_v41 }
 0xa62   :  { %3225 = vadd.xlane.f32.xlu0 %v7318_v60  ;;  %v7325_v52 = vadd.f32 %v3154_v6, %v7132_v1  ;;  %v3234_v20 = vmul.f32 0.0078125, %v3192_v58  ;;  %v7339_v13 = vsub.f32 %v7225_v5, %v3233_v35 }
 0xa63   :  { %v3280_v25 = vmul.f32 %v7334_v14, %v7334_v14 }
 0xa64   :  { %3227 = vadd.xlane.f32.xlu1 %v7325_v52  ;;  %v7344_v45 = vsub.f32 %v7229_v55, %v3234_v20  ;;  %v3281_v5 = vmul.f32 %v7339_v13, %v7339_v13 }
 0xa66   :  { %3301 = vadd.xlane.f32.xlu0 %v3277_v18  ;;  %v3282_v55 = vmul.f32 %v7344_v45, %v7344_v45 }
 0xa67   :  { %v3194_v1 = vpop.xlane.xlu0 %3193 }
 0xa68   :  { %v3235_v9 = vmul.f32 0.0078125, %v3194_v1  ;;  %3303 = vadd.xlane.f32.xlu1 %v3278_v11 }
 0xa69   :  { %v3196_v53 = vpop.xlane.xlu1 %3195 }
 0xa6a   :  { %v3236_v63 = vmul.f32 0.0078125, %v3196_v53  ;;  %3305 = vadd.xlane.f32.xlu0 %v3279_v17  ;;  %v7349_v31 = vsub.f32 %v7235_v19, %v3235_v9 }
 0xa6c   :  { %3307 = vadd.xlane.f32.xlu1 %v3280_v25  ;;  %v7354_v30 = vsub.f32 %v7239_v57, %v3236_v63  ;;  %v3283_v24 = vmul.f32 %v7349_v31, %v7349_v31 }
 0xa6e   :  { %3309 = vadd.xlane.f32.xlu0 %v3281_v5  ;;  %v3284_v57 = vmul.f32 %v7354_v30, %v7354_v30 }
 0xa6f   :  { %v3198_v61 = vpop.xlane.xlu0 %3197 }
 0xa70   :  { %v3237_v56 = vmul.f32 0.0078125, %v3198_v61  ;;  %3311 = vadd.xlane.f32.xlu1 %v3282_v55 }
 0xa71   :  { %v3200_v46 = vpop.xlane.xlu1 %3199 }
 0xa72   :  { %v7361_v19 = vsub.f32 %v7245_v39, %v3237_v56  ;;  %v3238_v47 = vmul.f32 0.0078125, %v3200_v46  ;;  %3313 = vadd.xlane.f32.xlu0 %v3283_v24 }
 0xa74   :  { %v7366_v0 = vsub.f32 %v7249_v50, %v3238_v47  ;;  %3315 = vadd.xlane.f32.xlu1 %v3284_v57  ;;  %v3285_v32 = vmul.f32 %v7361_v19, %v7361_v19 }
 0xa76   :  { %3317 = vadd.xlane.f32.xlu0 %v3285_v32  ;;  %v3286_v38 = vmul.f32 %v7366_v0, %v7366_v0 }
 0xa77   :  { %v3202_v62 = vpop.xlane.xlu0 %3201 }
 0xa78   :  { %v3239_v3 = vmul.f32 0.0078125, %v3202_v62  ;;  %3319 = vadd.xlane.f32.xlu1 %v3286_v38 }
 0xa79   :  { %v3204_v39 = vpop.xlane.xlu1 %3203 }
 0xa7a   :  { %v7373_v59 = vsub.f32 %v7255_v40, %v3239_v3  ;;  %v3240_v44 = vmul.f32 0.0078125, %v3204_v39 }
 0xa7c   :  { %v7376_v10 = vsub.f32 %v7259_v16, %v3240_v44  ;;  %v3287_v50 = vmul.f32 %v7373_v59, %v7373_v59 }
 0xa7e   :  { %3321 = vadd.xlane.f32.xlu0 %v3287_v50  ;;  %v3288_v54 = vmul.f32 %v7376_v10, %v7376_v10 }
 0xa7f   :  { %v3206_v12 = vpop.xlane.xlu0 %3205 }
 0xa80   :  { %v3241_v49 = vmul.f32 0.0078125, %v3206_v12  ;;  %3323 = vadd.xlane.f32.xlu1 %v3288_v54 }
 0xa81   :  { %v3208_v7 = vpop.xlane.xlu1 %3207 }
 0xa82   :  { %v7383_v6 = vsub.f32 %v7265_v4, %v3241_v49  ;;  %v3242_v40 = vmul.f32 0.0078125, %v3208_v7 }
 0xa84   :  { %v7386_v34 = vsub.f32 %v7269_v8, %v3242_v40  ;;  %v3289_v16 = vmul.f32 %v7383_v6, %v7383_v6 }
 0xa86   :  { %3325 = vadd.xlane.f32.xlu0 %v3289_v16  ;;  %v3290_v41 = vmul.f32 %v7386_v34, %v7386_v34 }
 0xa87   :  { %v3210_v58 = vpop.xlane.xlu0 %3209 }
 0xa88   :  { %v3243_v35 = vmul.f32 0.0078125, %v3210_v58  ;;  %3327 = vadd.xlane.f32.xlu1 %v3290_v41 }
 0xa89   :  { %v3212_v18 = vpop.xlane.xlu1 %3211 }
 0xa8a   :  { %v7393_v20 = vsub.f32 %v7275_v27, %v3243_v35  ;;  %v3244_v4 = vmul.f32 0.0078125, %v3212_v18 }
 0xa8c   :  { %v7396_v11 = vsub.f32 %v7279_v43, %v3244_v4  ;;  %v3291_v8 = vmul.f32 %v7393_v20, %v7393_v20 }
 0xa8e   :  { %3329 = vadd.xlane.f32.xlu0 %v3291_v8  ;;  %v3292_v1 = vmul.f32 %v7396_v11, %v7396_v11 }
 0xa8f   :  { %v3214_v9 = vpop.xlane.xlu0 %3213 }
 0xa90   :  { %v3245_v17 = vmul.f32 0.0078125, %v3214_v9  ;;  %3331 = vadd.xlane.f32.xlu1 %v3292_v1 }
 0xa91   :  { %v3216_v53 = vpop.xlane.xlu1 %3215 }
 0xa92   :  { %v7403_v63 = vsub.f32 %v7285_v15, %v3245_v17  ;;  %v3246_v27 = vmul.f32 0.0078125, %v3216_v53 }
 0xa94   :  { %v7406_v25 = vsub.f32 %v7289_v21, %v3246_v27  ;;  %v3293_v43 = vmul.f32 %v7403_v63, %v7403_v63  ;;  %v3447_v27 = vsub.s32 4, %v7817_v51 }
 0xa96   :  { %3333 = vadd.xlane.f32.xlu0 %v3293_v43  ;;  %v3294_v5 = vmul.f32 %v7406_v25, %v7406_v25 }
 0xa97   :  { %v3218_v55 = vpop.xlane.xlu0 %3217 }
 0xa98   :  { %v3247_v61 = vmul.f32 0.0078125, %v3218_v55  ;;  %3335 = vadd.xlane.f32.xlu1 %v3294_v5 }
 0xa99   :  { %v3220_v56 = vpop.xlane.xlu1 %3219 }
 0xa9a   :  { %v7413_v24 = vsub.f32 %v7295_v42, %v3247_v61  ;;  %v3248_v15 = vmul.f32 0.0078125, %v3220_v56 }
 0xa9c   :  { %v7416_v46 = vsub.f32 %v7299_v37, %v3248_v15  ;;  %v3295_v21 = vmul.f32 %v7413_v24, %v7413_v24 }
 0xa9e   :  { %3337 = vadd.xlane.f32.xlu0 %v3295_v21  ;;  %v3296_v47 = vmul.f32 %v7416_v46, %v7416_v46  ;;  %v3475_v21 = vsub.s32 5, %v7817_v51 }
 0xaa0   :  { %3339 = vadd.xlane.f32.xlu1 %v3296_v47  ;;  %v7445_v47 = vrot.slane %v7197_v22, %v3447_v27 }
 0xae7   :  { %v3222_v57 = vpop.xlane.xlu0 %3221 }
 0xae8   :  { %v3249_v32 = vmul.f32 0.0078125, %v3222_v57 }
 0xae9   :  { %v3224_v38 = vpop.xlane.xlu1 %3223 }
 0xaea   :  { %v7423_v62 = vsub.f32 %v7305_v36, %v3249_v32  ;;  %v3250_v42 = vmul.f32 0.0078125, %v3224_v38 }
 0xaec   :  { %v7426_v3 = vsub.f32 %v7309_v26, %v3250_v42  ;;  %v3297_v37 = vmul.f32 %v7423_v62, %v7423_v62 }
 0xaee   :  { %3341 = vadd.xlane.f32.xlu0 %v3297_v37  ;;  %v3298_v39 = vmul.f32 %v7426_v3, %v7426_v3 }
 0xaef   :  { %v3226_v44 = vpop.xlane.xlu0 %3225 }
 0xaf0   :  { %v3251_v50 = vmul.f32 0.0078125, %v3226_v44  ;;  %3343 = vadd.xlane.f32.xlu1 %v3298_v39 }
 0xaf1   :  { %v3228_v54 = vpop.xlane.xlu1 %3227 }
 0xaf2   :  { %v7433_v12 = vsub.f32 %v7318_v60, %v3251_v50  ;;  %v3252_v36 = vmul.f32 0.0078125, %v3228_v54 }
 0xaf3   :  { %v3302_v49 = vpop.xlane.xlu0 %3301 }
 0xaf4   :  { %v7436_v7 = vsub.f32 %v7325_v52, %v3252_v36  ;;  %v3349_v26 = vmul.f32 0.0078125, %v3302_v49  ;;  %v3299_v40 = vmul.f32 %v7433_v12, %v7433_v12  ;;  %v7449_v36 = vrot.slane %v7197_v22, %v3475_v21 }
 0xaf5   :  { %v3304_v16 = vpop.xlane.xlu1 %3303 }
 0xaf6   :  { %v3373_v41 = vadd.f32 1e-05, %v3349_v26  ;;  %v3350_v58 = vmul.f32 0.0078125, %v3304_v16  ;;  %3345 = vadd.xlane.f32.xlu0 %v3299_v40  ;;  %v3300_v35 = vmul.f32 %v7436_v7, %v7436_v7 }
 0xaf7   :  { %v3306_v18 = vpop.xlane.xlu0 %3305 }
 0xaf8   :  { %4855 = vrsqrt.f32 %v3373_v41  ;;  %v3374_v60 = vadd.f32 1e-05, %v3350_v58  ;;  %v3351_v4 = vmul.f32 0.0078125, %v3306_v18  ;;  %3347 = vadd.xlane.f32.xlu1 %v3300_v35 }
 0xaf9   :  { %v3308_v8 = vpop.xlane.xlu1 %3307 }
 0xafa   :  { %4857 = vrsqrt.f32 %v3374_v60  ;;  %v3375_v52 = vadd.f32 1e-05, %v3351_v4  ;;  %v3352_v1 = vmul.f32 0.0078125, %v3308_v8 }
 0xafb   :  { %v3310_v9 = vpop.xlane.xlu0 %3309 }
 0xafc   :  { %4859 = vrsqrt.f32 %v3375_v52  ;;  %v3376_v17 = vadd.f32 1e-05, %v3352_v1  ;;  %v3353_v53 = vmul.f32 0.0078125, %v3310_v9 }
 0xafd   :  { %v3312_v43 = vpop.xlane.xlu1 %3311 }
 0xafe   :  { %4861 = vrsqrt.f32 %v3376_v17  ;;  %v3377_v5 = vadd.f32 1e-05, %v3353_v53  ;;  %v3354_v55 = vmul.f32 0.0078125, %v3312_v43 }
 0xaff   :  { %v3314_v61 = vpop.xlane.xlu0 %3313 }
 0xb00   :  { %4863 = vrsqrt.f32 %v3377_v5  ;;  %v3378_v56 = vadd.f32 1e-05, %v3354_v55  ;;  %v3355_v15 = vmul.f32 0.0078125, %v3314_v61 }
 0xb01   :  { %v3316_v57 = vpop.xlane.xlu1 %3315 }
 0xb02   :  { %v4856_v32 = vpop.eup %4855  ;;  %4865 = vrsqrt.f32 %v3378_v56  ;;  %v3379_v38 = vadd.f32 1e-05, %v3355_v15  ;;  %v3356_v42 = vmul.f32 0.0078125, %v3316_v57 }
 0xb03   :  { %v3421_v37 = vmul.f32 %v4856_v32, %v7314_v48  ;;  %v3318_v39 = vpop.xlane.xlu0 %3317 }
 0xb04   :  { %v4858_v44 = vpop.eup %4857  ;;  %4867 = vrsqrt.f32 %v3379_v38  ;;  %v3380_v50 = vadd.f32 1e-05, %v3356_v42  ;;  %v3357_v54 = vmul.f32 0.0078125, %v3318_v39 }
 0xb05   :  { %v3422_v49 = vmul.f32 %v4858_v44, %v7321_v23  ;;  %v3320_v26 = vpop.xlane.xlu1 %3319  ;;  %v3449_v40 = vmul.f32 %v7445_v47, %v3421_v37 }
 0xb06   :  { %v4860_v16 = vpop.eup %4859  ;;  %4869 = vrsqrt.f32 %v3380_v50  ;;  %v3381_v41 = vadd.f32 1e-05, %v3357_v54  ;;  %v3358_v58 = vmul.f32 0.0078125, %v3320_v26 }
 0xb07   :  { %v3423_v35 = vmul.f32 %v4860_v16, %v7328_v33  ;;  %v3450_v48 = vmul.f32 %v7445_v47, %v3422_v49  ;;  %v3477_v22 = vadd.f32 %v7449_v36, %v3449_v40 }
 0xb08   :  { %v4862_v18 = vpop.eup %4861  ;;  %4871 = vrsqrt.f32 %v3381_v41  ;;  %v3382_v60 = vadd.f32 1e-05, %v3358_v58 }
 0xb09   :  { %v3424_v4 = vmul.f32 %v4862_v18, %v7334_v14  ;;  %v3478_v23 = vadd.f32 %v7449_v36, %v3450_v48  ;;  %v3451_v8 = vmul.f32 %v7445_v47, %v3423_v35 }
 0xb0a   :  { %v4864_v52 = vpop.eup %4863  ;;  %4873 = vrsqrt.f32 %v3382_v60 }
 0xb0b   :  { %v3425_v1 = vmul.f32 %v4864_v52, %v7339_v13  ;;  %v3322_v9 = vpop.xlane.xlu0 %3321  ;;  %v3526_v17 = vpack.c.bf16 %v3478_v23, %v3477_v22  ;;  %v3452_v33 = vmul.f32 %v7445_v47, %v3424_v4  ;;  %v3479_v14 = vadd.f32 %v7449_v36, %v3451_v8  ;;  %v7819_v52 = vld [vmem:[#allocation17_spill] sm:$0xff] }
 0xb0c   :  { %v4866_v53 = vpop.eup %4865  ;;  %v3359_v27 = vmul.f32 0.0078125, %v3322_v9  ;;  %v3501_v8 = vmul.u32 8, %v7817_v51 }
 0xb0d   :  { %v3426_v43 = vmul.f32 %v4866_v53, %v7344_v45  ;;  %v3324_v5 = vpop.xlane.xlu1 %3323  ;;  %3545 = vmatpush1.bf16.msra.mxu1 %v3526_v17  ;;  %v3480_v55 = vadd.f32 %v7449_v36, %v3452_v33  ;;  %v3453_v61 = vmul.f32 %v7445_v47, %v3425_v1  ;;  %v3502_v1 = vmul.u32 8, %v7819_v52 }
 0xb0e   :  { %v4868_v56 = vpop.eup %4867  ;;  %v3383_v15 = vadd.f32 1e-05, %v3359_v27  ;;  %v3360_v21 = vmul.f32 0.0078125, %v3324_v5  ;;  %3546 = vmatprep.subr.bf16.mxu1 %v7815_v28  ;;  %v7820_v27 = vld [vmem:[#allocation44_spill] sm:$0xff] }
 0xb0f   :  { %v3427_v13 = vmul.f32 %v4868_v56, %v7349_v31  ;;  %v3527_v57 = vpack.c.bf16 %v3480_v55, %v3479_v14  ;;  %v3454_v32 = vmul.f32 %v7445_v47, %v3426_v43  ;;  %v3481_v37 = vadd.f32 %v7449_v36, %v3453_v61 }
 0xb10   :  { %v4870_v38 = vpop.eup %4869  ;;  %4875 = vrsqrt.f32 %v3383_v15  ;;  %v3384_v45 = vadd.f32 1e-05, %v3360_v21  ;;  %vm3505_vm2 = vcmp.eq.s32.totalorder %v7820_v27, %v3501_v8  ;;  %vm3507_vm4 = vcmp.eq.s32.totalorder %v7820_v27, %v3502_v1 }
 0xb11   :  { %v3428_v42 = vmul.f32 %v4870_v38, %v7354_v30  ;;  %3547 = vmatpush1.bf16.msra.mxu1 %v3527_v57  ;;  %v3482_v39 = vadd.f32 %v7449_v36, %v3454_v32  ;;  %v3455_v44 = vmul.f32 %v7445_v47, %v3427_v13  ;;  %v7821_v14 = vmov 0.0   ;;  %v4645_v57 = vld [vmem:[#allocation9 + $0x44] ss:$8 sps:$4 sm:$0xff]  }
 0xb12   :  { %v4872_v50 = vpop.eup %4871  ;;  %4877 = vrsqrt.f32 %v3384_v45  ;;  %3548 = vmatprep.subr.bf16.mxu1 %v7815_v28  ;;  %v4178_v55 = vsel %vm3505_vm2, 1.0, %v7821_v14  ;;  %v4180_v61 = vsel %vm3507_vm4, 1.0, %v7821_v14  ;;  %v4640_v45 = vld [vmem:[#allocation9 + $0x30] ss:$8 sps:$4 sm:$0xff]  }
 0xb13   :  { %v3429_v31 = vmul.f32 %v4872_v50, %v7361_v19  ;;  %v3326_v54 = vpop.xlane.xlu0 %3325  ;;  %v3528_v49 = vpack.c.bf16 %v3482_v39, %v3481_v37  ;;  %v3456_v26 = vmul.f32 %v7445_v47, %v3428_v42  ;;  %v3483_v58 = vadd.f32 %v7449_v36, %v3455_v44 }
 0xb14   :  { %v4874_v40 = vpop.eup %4873  ;;  %v3361_v16 = vmul.f32 0.0078125, %v3326_v54  ;;  %v3523_v13 = vpack.c.bf16 %v4180_v61, %v4178_v55 }
 0xb15   :  { %v3430_v30 = vmul.f32 %v4874_v40, %v7366_v0  ;;  %v3328_v41 = vpop.xlane.xlu1 %3327  ;;  %3549 = vmatpush1.bf16.msra.mxu1 %v3528_v49  ;;  %v3484_v35 = vadd.f32 %v7449_v36, %v3456_v26  ;;  %v3457_v48 = vmul.f32 %v7445_v47, %v3429_v31 }
 0xb16   :  { %v3385_v18 = vadd.f32 1e-05, %v3361_v16  ;;  %v3362_v60 = vmul.f32 0.0078125, %v3328_v41  ;;  %3550 = vmatprep.subr.bf16.mxu1 %v7815_v28  ;;  %4183 = vmatprep.mubr.msk.bf16.mxu1 %vm1387_vm9, %v3523_v13 }
 0xb17   :  { %v3529_v19 = vpack.c.bf16 %v3484_v35, %v3483_v58  ;;  %v3458_v4 = vmul.f32 %v7445_v47, %v3430_v30  ;;  %v3485_v0 = vadd.f32 %v7449_v36, %v3457_v48 }
 0xb18   :  { %4879 = vrsqrt.f32 %v3385_v18  ;;  %v3386_v22 = vadd.f32 1e-05, %v3362_v60 }
 0xb19   :  { %3551 = vmatpush1.bf16.msra.mxu1 %v3529_v19  ;;  %v3486_v23 = vadd.f32 %v7449_v36, %v3458_v4 }
 0xb1a   :  { %v4876_v9 = vpop.eup %4875  ;;  %4881 = vrsqrt.f32 %v3386_v22  ;;  %3552 = vmatprep.subr.bf16.mxu1 %v7815_v28 }
 0xb1b   :  { %v3431_v17 = vmul.f32 %v4876_v9, %v7373_v59  ;;  %v3330_v33 = vpop.xlane.xlu0 %3329  ;;  %v3530_v53 = vpack.c.bf16 %v3486_v23, %v3485_v0  ;;  %v7822_v59 = vld [vmem:[#allocation43_spill] sm:$0xff] }
 0xb1c   :  { %v4878_v43 = vpop.eup %4877  ;;  %v3363_v5 = vmul.f32 0.0078125, %v3330_v33  ;;  %vm7494_vm8 = vcmp.eq.s32.totalorder %v7822_v59, %v3501_v8  ;;  %vm7500_vm10 = vcmp.eq.s32.totalorder %v7822_v59, %v3502_v1  ;;  %vm3966_vm1 = vcmp.eq.s32.totalorder %v7822_v59, 3 }
 0xb1d   :  { %v3432_v56 = vmul.f32 %v4878_v43, %v7376_v10  ;;  %v3332_v15 = vpop.xlane.xlu1 %3331  ;;  %3553 = vmatpush1.bf16.msra.mxu1 %v3530_v53  ;;  %v3459_v21 = vmul.f32 %v7445_v47, %v3431_v17  ;;  %vm4184_vm11 = vmpackc.low %vm7500_vm10, %vm7494_vm8 }
 0xb1e   :  { %v3387_v32 = vadd.f32 1e-05, %v3363_v5  ;;  %v3364_v38 = vmul.f32 0.0078125, %v3332_v15  ;;  %3554 = vmatprep.subr.bf16.mxu1 %v7815_v28 }
 0xb1f   :  { %v3460_v10 = vmul.f32 %v7445_v47, %v3432_v56  ;;  %v3487_v37 = vadd.f32 %v7449_v36, %v3459_v21 }
 0xb20   :  { %4883 = vrsqrt.f32 %v3387_v32  ;;  %v3388_v42 = vadd.f32 1e-05, %v3364_v38 }
 0xb21   :  { %v3488_v39 = vadd.f32 %v7449_v36, %v3460_v10 }
 0xb22   :  { %v4880_v44 = vpop.eup %4879  ;;  %4885 = vrsqrt.f32 %v3388_v42 }
 0xb23   :  { %v3433_v50 = vmul.f32 %v4880_v44, %v7383_v6  ;;  %v3334_v31 = vpop.xlane.xlu0 %3333  ;;  %v3531_v54 = vpack.c.bf16 %v3488_v39, %v3487_v37 }
 0xb24   :  { %v4882_v49 = vpop.eup %4881  ;;  %v3365_v26 = vmul.f32 0.0078125, %v3334_v31 }
 0xb25   :  { %v3434_v40 = vmul.f32 %v4882_v49, %v7386_v34  ;;  %v3336_v16 = vpop.xlane.xlu1 %3335  ;;  %3555 = vmatpush1.bf16.msra.mxu1 %v3531_v54  ;;  %v3461_v30 = vmul.f32 %v7445_v47, %v3433_v50 }
 0xb26   :  { %v3389_v41 = vadd.f32 1e-05, %v3365_v26  ;;  %v3366_v58 = vmul.f32 0.0078125, %v3336_v16  ;;  %3556 = vmatprep.subr.bf16.mxu1 %v7815_v28 }
 0xb27   :  { %v3462_v35 = vmul.f32 %v7445_v47, %v3434_v40  ;;  %v3489_v6 = vadd.f32 %v7449_v36, %v3461_v30 }
 0xb28   :  { %4887 = vrsqrt.f32 %v3389_v41  ;;  %v3390_v48 = vadd.f32 1e-05, %v3366_v58 }
 0xb29   :  { %v3490_v18 = vadd.f32 %v7449_v36, %v3462_v35 }
 0xb2a   :  { %v4884_v60 = vpop.eup %4883  ;;  %4889 = vrsqrt.f32 %v3390_v48 }
 0xb2b   :  { %v3435_v34 = vmul.f32 %v4884_v60, %v7393_v20  ;;  %v3338_v19 = vpop.xlane.xlu0 %3337  ;;  %v3532_v4 = vpack.c.bf16 %v3490_v18, %v3489_v6 }
 0xb2c   :  { %v4886_v22 = vpop.eup %4885  ;;  %v3367_v0 = vmul.f32 0.0078125, %v3338_v19 }
 0xb2d   :  { %v3436_v23 = vmul.f32 %v4886_v22, %v7396_v11  ;;  %v3340_v8 = vpop.xlane.xlu1 %3339  ;;  %3557 = vmatpush1.bf16.msra.mxu1 %v3532_v4  ;;  %v3463_v52 = vmul.f32 %v7445_v47, %v3435_v34 }
 0xb2e   :  { %v3391_v1 = vadd.f32 1e-05, %v3367_v0  ;;  %v3368_v9 = vmul.f32 0.0078125, %v3340_v8  ;;  %3558 = vmatprep.subr.bf16.mxu1 %v7815_v28 }
 0xb2f   :  { %v3464_v17 = vmul.f32 %v7445_v47, %v3436_v23  ;;  %v3491_v20 = vadd.f32 %v7449_v36, %v3463_v52  ;;  %v7827_v52 = vld [vmem:[#allocation18_spill] sm:$0xff] }
 0xb30   :  { %4891 = vrsqrt.f32 %v3391_v1  ;;  %v3392_v33 = vadd.f32 1e-05, %v3368_v9  ;;  %v3503_v1 = vmul.u32 8, %v7827_v52 }
 0xb31   :  { %v3492_v53 = vadd.f32 %v7449_v36, %v3464_v17 }
 0xb32   :  { %v4888_v43 = vpop.eup %4887  ;;  %4893 = vrsqrt.f32 %v3392_v33  ;;  %vm3509_vm12 = vcmp.eq.s32.totalorder %v7820_v27, %v3503_v1  ;;  %vm3508_vm13 = vcmp.eq.s32.totalorder %v7822_v59, %v3503_v1  ;;  %v4637_v27 = vld [vmem:[#allocation9 + $0x20] ss:$8 sps:$4 sm:$0xff]  }
 0xb33   :  { %v3437_v11 = vmul.f32 %v4888_v43, %v7403_v63  ;;  %v3533_v5 = vpack.c.bf16 %v3492_v53, %v3491_v20  ;;  %v4633_v53 = vld [vmem:[#allocation9 + $0x4] ss:$8 sps:$4 sm:$0xff]   ;;  %vm4187_vm14 = vmpackc.low %vm3508_vm13, %vm3508_vm13 }
 0xb34   :  { %v4890_v55 = vpop.eup %4889 }
 0xb35   :  { %v3438_v61 = vmul.f32 %v4890_v55, %v7406_v25  ;;  %3559 = vmatpush1.bf16.msra.mxu1 %v3533_v5  ;;  %v3465_v56 = vmul.f32 %v7445_v47, %v3437_v11  ;;  %v4636_v5 = vld [vmem:[#allocation9 + $0x14] ss:$8 sps:$4 sm:$0xff]   ;;  %v5063_v55 = vmov 1.0|1.0  }
 0xb36   :  { %3560 = vmatprep.subr.bf16.mxu1 %v7815_v28 }
 0xb37   :  { %v3466_v15 = vmul.f32 %v7445_v47, %v3438_v61  ;;  %v3493_v21 = vadd.f32 %v7449_v36, %v3465_v56  ;;  %v4642_v61 = vld [vmem:[#allocation9 + $0x34] ss:$8 sps:$4 sm:$0xff]   ;;  %v4643_v56 = vld [vmem:[#allocation9 + $0x40] ss:$8 sps:$4 sm:$0xff]  }
 0xb39   :  { %v3494_v13 = vadd.f32 %v7449_v36, %v3466_v15  ;;  %v4648_v15 = vld [vmem:[#allocation9 + $0x54] ss:$8 sps:$4 sm:$0xff]  }
 0xb3a   :  { %v4892_v32 = vpop.eup %4891 }
 0xb3b   :  { %v3439_v38 = vmul.f32 %v4892_v32, %v7413_v24  ;;  %v3534_v10 = vpack.c.bf16 %v3494_v13, %v3493_v21  ;;  %v4646_v21 = vld [vmem:[#allocation9 + $0x50] ss:$8 sps:$4 sm:$0xff]   ;;  %v4651_v13 = vld [vmem:[#allocation9 + $0x64] ss:$8 sps:$4 sm:$0xff]   ;;  %v4649_v32 = vld [vmem:[#allocation9 + $0x60] ss:$8 sps:$4 sm:$0xff]  }
 0xb3c   :  { %v4894_v63 = vpop.eup %4893 }
 0xb3d   :  { %v3440_v42 = vmul.f32 %v4894_v63, %v7416_v46  ;;  %3561 = vmatpush1.bf16.msra.mxu1 %v3534_v10  ;;  %v3467_v25 = vmul.f32 %v7445_v47, %v3439_v38  ;;  %v4654_v38 = vld [vmem:[#allocation9 + $0x74] ss:$8 sps:$4 sm:$0xff]   ;;  %v4652_v10 = vld [vmem:[#allocation9 + $0x70] ss:$8 sps:$4 sm:$0xff]   ;;  %v4655_v63 = vld [vmem:[#allocation10] sm:$0xff]  }
 0xb3e   :  { %3562 = vmatprep.subr.bf16.mxu1 %v7815_v28  ;;  %4498 = vmatprep.subr.bf16.mxu0 %v4655_v63 }
 0xb3f   :  { %v3468_v37 = vmul.f32 %v7445_v47, %v3440_v42  ;;  %v3495_v39 = vadd.f32 %v7449_v36, %v3467_v25  ;;  %v4656_v42 = vld [vmem:[#allocation10 + $0x8] sm:$0xff]   ;;  %4499 = vmatpush3.bf16.msra.mxu0 %v4655_v63  ;;  %v4657_v25 = vld [vmem:[#allocation10 + $0x10] sm:$0xff]  }
 0xb40   :  { %4500 = vmatprep.subr.bf16.mxu0 %v4656_v42 }
 0xb41   :  { %v3496_v44 = vadd.f32 %v7449_v36, %v3468_v37  ;;  %v4658_v37 = vld [vmem:[#allocation10 + $0x18] sm:$0xff]  }
 0xb43   :  { %v3535_v50 = vpack.c.bf16 %v3496_v44, %v3495_v39  ;;  %4501 = vmatpush3.bf16.msra.mxu0 %v4656_v42  ;;  %v4659_v39 = vld [vmem:[#allocation10 + $0x20] sm:$0xff]   ;;  %v4660_v44 = vld [vmem:[#allocation10 + $0x28] sm:$0xff]  }
 0xb44   :  { %4502 = vmatprep.subr.bf16.mxu0 %v4657_v25 }
 0xb45   :  { %3563 = vmatpush1.bf16.msra.mxu1 %v3535_v50 }
 0xb46   :  { %3564 = vmatprep.subr.bf16.mxu1 %v7815_v28 }
 0xb47   :  { %4503 = vmatpush3.bf16.msra.mxu0 %v4657_v25  ;;  %v3969_v25 = vadd.s32 4, %v7817_v51 }
 0xb48   :  { %4504 = vmatprep.subr.bf16.mxu0 %v4658_v37 }
 0xb49   :  { %vm3970_vm15 = vcmp.eq.s32.totalorder %v7822_v59, %v3969_v25 }
 0xb4b   :  { %4505 = vmatpush3.bf16.msra.mxu0 %v4658_v37  ;;  %v5065_v37 = vmov 1.0  }
 0xb4c   :  { %4506 = vmatprep.subr.bf16.mxu0 %v4659_v39 }
 0xb4f   :  { %4507 = vmatpush3.bf16.msra.mxu0 %v4659_v39 }
 0xb50   :  { %4508 = vmatprep.subr.bf16.mxu0 %v4660_v44 }
 0xb53   :  { %4509 = vmatpush3.bf16.msra.mxu0 %v4660_v44 }
 0xb7b   :  { %v3342_v24 = vpop.xlane.xlu0 %3341 }
 0xb7c   :  { %v3369_v31 = vmul.f32 0.0078125, %v3342_v24 }
 0xb7d   :  { %v3344_v54 = vpop.xlane.xlu1 %3343 }
 0xb7e   :  { %v3393_v49 = vadd.f32 1e-05, %v3369_v31  ;;  %v3370_v46 = vmul.f32 0.0078125, %v3344_v54 }
 0xb80   :  { %4895 = vrsqrt.f32 %v3393_v49  ;;  %v3394_v26 = vadd.f32 1e-05, %v3370_v46 }
 0xb82   :  { %4897 = vrsqrt.f32 %v3394_v26 }
 0xb83   :  { %v3346_v40 = vpop.xlane.xlu0 %3345 }
 0xb84   :  { %v3371_v16 = vmul.f32 0.0078125, %v3346_v40 }
 0xb85   :  { %v3348_v30 = vpop.xlane.xlu1 %3347 }
 0xb86   :  { %v3395_v41 = vadd.f32 1e-05, %v3371_v16  ;;  %v3372_v58 = vmul.f32 0.0078125, %v3348_v30 }
 0xb88   :  { %4899 = vrsqrt.f32 %v3395_v41  ;;  %v3396_v35 = vadd.f32 1e-05, %v3372_v58  ;;  %v4661_v41 = vld [vmem:[#allocation10 + $0x30] sm:$0xff]   ;;  %v4662_v58 = vld [vmem:[#allocation10 + $0x38] sm:$0xff]  }
 0xb89   :  { %4510 = vmatprep.subr.bf16.mxu0 %v4661_v41 }
 0xb8a   :  { %v4896_v48 = vpop.eup %4895  ;;  %4901 = vrsqrt.f32 %v3396_v35  ;;  %4511 = vmatpush3.bf16.msra.mxu0 %v4661_v41  ;;  %v7570_v35 = vld [vmem:[%s7608_s11] sm:$0x3] }
 0xb8b   :  { %v3441_v6 = vmul.f32 %v4896_v48, %v7423_v62  ;;  %4512 = vmatprep.subr.bf16.mxu0 %v4662_v58 }
 0xb8c   :  { %v4898_v18 = vpop.eup %4897 }
 0xb8d   :  { %v3442_v60 = vmul.f32 %v4898_v18, %v7426_v3  ;;  %v3469_v34 = vmul.f32 %v7445_v47, %v3441_v6 }
 0xb8e   :  { %4513 = vmatpush3.bf16.msra.mxu0 %v4662_v58 }
 0xb8f   :  { %v3470_v19 = vmul.f32 %v7445_v47, %v3442_v60  ;;  %v3497_v4 = vadd.f32 %v7449_v36, %v3469_v34 }
 0xb91   :  { %v3498_v22 = vadd.f32 %v7449_v36, %v3470_v19 }
 0xb92   :  { %v4900_v0 = vpop.eup %4899 }
 0xb93   :  { %v3443_v23 = vmul.f32 %v4900_v0, %v7433_v12  ;;  %v3536_v8 = vpack.c.bf16 %v3498_v22, %v3497_v4  ;;  %v4182_v12 = vsel %vm3509_vm12, 1.0, %v7821_v14 }
 0xb94   :  { %v4902_v9 = vpop.eup %4901  ;;  %v3525_v11 = vpack.c.bf16 %v4182_v12, %v4182_v12 }
 0xb95   :  { %v3444_v62 = vmul.f32 %v4902_v9, %v7436_v7  ;;  %3565 = vmatpush1.bf16.msra.mxu1 %v3536_v8  ;;  %v3471_v3 = vmul.f32 %v7445_v47, %v3443_v23  ;;  %v4631_v7 = vld [vmem:[#allocation9] ss:$8 sps:$4 sm:$0xff]  }
 0xb96   :  { %3566 = vmatprep.subr.bf16.mxu1 %v7815_v28 }
 0xb97   :  { %v3472_v17 = vmul.f32 %v7445_v47, %v3444_v62  ;;  %v3499_v33 = vadd.f32 %v7449_v36, %v3471_v3  ;;  %v4634_v47 = vld [vmem:[#allocation9 + $0x10] ss:$8 sps:$4 sm:$0xff]  }
 0xb99   :  { %v3500_v20 = vadd.f32 %v7449_v36, %v3472_v17  ;;  %v4639_v36 = vld [vmem:[#allocation9 + $0x24] ss:$8 sps:$4 sm:$0xff]  }
 0xb9a   :  { %v4910_v17 = vld [vmem:[%s7610_s13] sm:$0xff] }
 0xb9b   :  { %v3537_v43 = vpack.c.bf16 %v3500_v20, %v3499_v33 }
 0xb9d   :  { %3567 = vmatpush1.bf16.msra.mxu1 %v3537_v43 }
 0xb9e   :  { %3702 = vmatprep.subr.bf16.mxu1 %v4633_v53 }
 0xba0   :  { %4185 = vmatmul.mubr.msk.bf16.vlgmr.msra.gmra.mrb[144].mxu1 %vm4184_vm11, %v5063_v55 }
 0xba1   :  { %4186 = vmatprep.mubr.msk.bf16.mxu1 %vm1387_vm9, %v3525_v11  ;;  %3703 = vmatpush1.bf16.msra.mxu1 %v4631_v7  ;;  %vm5064_vm9 = vmmov 0  }
 0xba2   :  { %3704 = vmatprep.subr.bf16.mxu1 %v4636_v5 }
 0xba5   :  { %3705 = vmatpush1.bf16.msra.mxu1 %v4634_v47 }
 0xba6   :  { %3706 = vmatprep.subr.bf16.mxu1 %v4639_v36 }
 0xba8   :  { %4188 = vmatmul.mubr.msk.bf16.gmra.mrb[148].mxu1 %vm4187_vm14, %v5063_v55 }
 0xba9   :  { %3707 = vmatpush1.bf16.msra.mxu1 %v4637_v27  ;;  %3734 = vmatprep.mubr.bf16.mxu1 %v7815_v28 }
 0xbaa   :  { %3708 = vmatprep.subr.bf16.mxu1 %v4642_v61 }
 0xbad   :  { %3709 = vmatpush1.bf16.msra.mxu1 %v4640_v45 }
 0xbae   :  { %3710 = vmatprep.subr.bf16.mxu1 %v4645_v57 }
 0xbb1   :  { %3711 = vmatpush1.bf16.msra.mxu1 %v4643_v56 }
 0xbb2   :  { %3712 = vmatprep.subr.bf16.mxu1 %v4648_v15 }
 0xbb5   :  { %3713 = vmatpush1.bf16.msra.mxu1 %v4646_v21 }
 0xbb6   :  { %3714 = vmatprep.subr.bf16.mxu1 %v4651_v13 }
 0xbb9   :  { %3715 = vmatpush1.bf16.msra.mxu1 %v4649_v32 }
 0xbba   :  { %3716 = vmatprep.subr.bf16.mxu1 %v4654_v38 }
 0xbbd   :  { %3717 = vmatpush1.bf16.msra.mxu1 %v4652_v10 }
 0xbbe   :  { %4518 = vmatprep.subr.mxu1 %v7821_v14 }
 0xc73   :  { %v3578_v50 = vpop.f32.mrb[144].mxu1 }
 0xc74   :  { %v3580_v24 = vpop.f32.mrb[145].mxu1 }
 0xc75   :  { %v3581_v31 = vpop.f32.mrb[146].mxu1 }
 0xc76   :  { %v3592_v54 = vpack.c.bf16 %v3581_v31, %v3578_v50  ;;  %v3583_v49 = vpop.f32.mrb[147].mxu1 }
 0xc78   :  { %3735 = vmatmul.mubr.bf16.vlgmr.msra.gmra.mrb[152].mxu1 %v3592_v54  ;;  %v3619_v54 = vrot.slane %v7570_v35, %v7816_v29 }
 0xc79   :  { %3743 = vmatprep.mubr.bf16.mxu1 %v7815_v28  ;;  %v3615_v28 = vrot.slane %v7570_v35, %v5255_v2  ;;  %v3774_v2 = vsub.s32 6, %v7817_v51 }
 0xc7b   :  { %v3586_v46 = vpop.f32.mrb[148].mxu1  ;;  %v3775_v33 = vrot.slane %v4910_v17, %v3774_v2 }
 0xc7c   :  { %v3593_v26 = vpack.c.bf16 %v3586_v46, %v3586_v46  ;;  %v3588_v40 = vpop.f32.mrb[149].mxu1 }
 0xc7d   :  { %v3589_v16 = vpop.f32.mrb[150].mxu1 }
 0xc7e   :  { %v3590_v30 = vpop.f32.mrb[151].mxu1 }
 0xc80   :  { %3744 = vmatmul.mubr.bf16.gmra.mrb[156].mxu1 %v3593_v26 }
 0xc81   :  { %4520 = vmatprep.mubr.msk.f32.mxu1 %vm5064_vm9, %v7821_v14 }
 0xd4b   :  { %v3736_v48 = vpop.f32.mrb[152].mxu1 }
 0xd4c   :  { %v3737_v6 = vadd.f32 %v3736_v48, %v3615_v28  ;;  %v7574_v18 = vpop.f32.mrb[153].mxu1 }
 0xd4d   :  { %v3740_v60 = vpop.f32.mrb[154].mxu1  ;;  %v3739_v49 = vadd.f32 %v7574_v18, %v3619_v54 }
 0xd4e   :  { %v3741_v34 = vadd.f32 %v3740_v60, %v3615_v28  ;;  %v3742_v19 = vpop.f32.mrb[155].mxu1  ;;  %v3751_v4 = vmax.f32 %v3737_v6, 0.0 }
 0xd50   :  { %v3752_v22 = vmax.f32 %v3741_v34, 0.0 }
 0xd52   :  { %v3754_v0 = vpack.c.bf16 %v3752_v22, %v3751_v4 }
 0xd53   :  { %v3745_v23 = vpop.f32.mrb[156].mxu1 }
 0xd54   :  { %v3746_v8 = vadd.f32 %v3745_v23, %v3615_v28  ;;  %v3747_v52 = vpop.f32.mrb[157].mxu1  ;;  %4514 = vmatprep.mubr.bf16.mxu0 %v3754_v0 }
 0xd55   :  { %v3748_v1 = vpop.f32.mrb[158].mxu1 }
 0xd56   :  { %v3753_v9 = vmax.f32 %v3746_v8, 0.0  ;;  %v3749_v62 = vpop.f32.mrb[159].mxu1 }
 0xd58   :  { %v3755_v3 = vpack.c.bf16 %v3753_v9, %v3753_v9 }
 0xd5a   :  { %4515 = vmatmul.mubr.bf16.vlgmr.msra.gmra.mrb[168].mxu0 %v3755_v3 }
 0xe2d   :  { %v4516_v20 = vpop.f32.mrb[168].mxu0 }
 0xe2e   :  { %v3867_v12 = vadd.f32 %v4516_v20, %v3775_v33  ;;  %v3858_v53 = vpop.f32.mrb[169].mxu0 }
 0xe2f   :  { %v3859_v43 = vadd.f32 %v3858_v53, %v3775_v33  ;;  %v4517_v11 = vpop.f32.mrb[170].mxu0 }
 0xe30   :  { %v3874_v7 = vmul.f32 %v3867_v12, %v3867_v12  ;;  %v3861_v5 = vpop.f32.mrb[171].mxu0 }
 0xe31   :  { %v3872_v55 = vmul.f32 %v3859_v43, %v3859_v43  ;;  %v3862_v47 = vadd.f32 %v3861_v5, %v3775_v33 }
 0xe32   :  { %3879 = vadd.xlane.f32.xlu0 %v3874_v7 }
 0xe33   :  { %v3873_v36 = vmul.f32 %v3862_v47, %v3862_v47  ;;  %3875 = vadd.xlane.f32.xlu1 %v3872_v55 }
 0xe36   :  { %3877 = vadd.xlane.f32.xlu0 %v3873_v36 }
 0xebf   :  { %v3880_v27 = vpop.xlane.xlu0 %3879 }
 0xec0   :  { %v3883_v61 = vmax.f32 %v3880_v27, 1e-24  ;;  %v3876_v45 = vpop.xlane.xlu1 %3875 }
 0xec1   :  { %v3881_v57 = vmax.f32 %v3876_v45, 1e-24 }
 0xec2   :  { %4903 = vrsqrt.f32 %v3883_v61 }
 0xec3   :  { %4905 = vrsqrt.f32 %v3881_v57  ;;  %v3878_v56 = vpop.xlane.xlu0 %3877 }
 0xec4   :  { %v3882_v15 = vmax.f32 %v3878_v56, 1e-24 }
 0xec6   :  { %4907 = vrsqrt.f32 %v3882_v15 }
 0xecc   :  { %v4904_v21 = vpop.eup %4903 }
 0xecd   :  { %v4906_v13 = vpop.eup %4905  ;;  %v3889_v32 = vmul.f32 %v4904_v21, %v3867_v12 }
 0xece   :  { %v3887_v38 = vmul.f32 %v4906_v13, %v3859_v43 }
 0xecf   :  { %4519 = vmatpush3.xpose.msra.mxu1 %v3889_v32 }
 0xed0   :  { %v4908_v10 = vpop.eup %4907  ;;  %3890 = vst [vmem:[%s7611_s14] sm:$0xff] %v3887_v38  ;;  %4523 = vmatprep.subr.mxu1 %v7821_v14 }
 0xed1   :  { %v3888_v63 = vmul.f32 %v4908_v10, %v3862_v47 }
 0xed2   :  { %4521 = vmatmul.mubr.f32.vlgmr.msra.gmra.mrb[160].mxu1 %v3887_v38 }
 0xed3   :  { %v3891_v42 = vmul.f32 %v3888_v63, %v3887_v38  ;;  %4525 = vmatprep.mubr.msk.f32.mxu1 %vm5064_vm9, %v7821_v14  ;;  %4524 = vmatpush3.msk.msra.mxu1 %vm3970_vm15, %v5065_v37 }
 0xed5   :  { %3892 = vadd.xlane.f32.xlu1 %v3891_v42 }
 0xf62   :  { %v3893_v24 = vpop.xlane.xlu1 %3892 }
 0xf63   :  { %v3894_v31 = vmul.f32 20.0, %v3893_v24 }
 0xf65   :  { %v3967_v14 = vsel %vm3966_vm1, %v3894_v31, 0.0 }
 0xf66   :  { %v3968_v51 = vadd.f32 %v3967_v14, %v3739_v49 }
 0xfa5   :  { %v3961_v39 = vpop.f32.mrb[160].mxu1 }
 0xfa6   :  { %v3965_v44 = vmul.f32 20.0, %v3961_v39  ;;  %v4522_v50 = vpop.f32.mrb[161].mxu1 }
 0xfa8   :  { %4526 = vmatmul.mubr.msk.f32.vlgmr.msra.gmra.mrb[162].mxu1 %vm3973_vm0, %v3965_v44 }
0x107b   :  { %v4043_v46 = vpop.f32.mrb[162].mxu1 }
0x107c   :  { %v4047_v26 = vadd.f32 %v4043_v46, %v3968_v51  ;;  %v4527_v40 = vpop.f32.mrb[163].mxu1 }
0x107e   :  { %4048 = vst [vmem:[%s7612_s15] sm:$0xff] %v4047_v26 }
0x107f   :  { %4057 = vsyncpa [#allocation3], 1 }
0x1080   :  { %4058 = vsyncpa [#allocation5], 1 }
0x1081   :  { %4059 = vsyncpa [#allocation8], 1 }
0x1082   :  { %4060 = vsyncpa [#allocation11], 1 }

</bundles_post_ra>
